<compile_context>
chip_gen: v5e
topology: v5e:2x2
jax: 0.10.0
libtpu: 0.0.40
codegen_flags: <defaults>
</compile_context>

<pallas_src>
import functools
import math

import jax
import jax.numpy as jnp
from jax.experimental import pallas as pl
from jax.experimental.pallas import tpu as pltpu

MXU_DTYPE = jnp.bfloat16          # operands of the big conv dots; accum stays f32
VMEM_LIMIT = 48 * 1024 * 1024     # <= v7x physical 64 MiB; fine on v5e/v6e
UNET_HALO = 8                     # sublane-aligned halo for the k=3 / k=4 convs


def _rup(x, m):
    return ((x + m - 1) // m) * m


# ----------------------------------------------------------------------------
# Kernel 1: time-embedding MLP  relu(emb @ W + b)   (tiny, single block)
# ----------------------------------------------------------------------------
def _time_mlp_kernel(x_ref, w_ref, b_ref, o_ref):
    y = jnp.dot(x_ref[...], w_ref[...],
                preferred_element_type=jnp.float32) + b_ref[...]
    o_ref[...] = jnp.maximum(y, 0.0)


def time_mlp(emb, w, b):
    B = emb.shape[0]
    N = w.shape[1]
    return pl.pallas_call(
        _time_mlp_kernel,
        out_shape=jax.ShapeDtypeStruct((B, N), jnp.float32),
    )(emb, w, b)


# ----------------------------------------------------------------------------
# Kernel 2: fully fused DiffWaveNet forward (one pallas_call per module).
# grid = (B,), per-step refs hold one batch element; h/skip stay on-chip.
# ----------------------------------------------------------------------------
def _wavenet_kernel(x_ref, temb_ref, inw_ref, inb_ref, tw_ref, tb_ref,
                    wfg_ref, bfg_ref, wrs_ref, brs_ref, outw_ref, outb_ref,
                    o_ref, hpad_ref, *, dilations, halo):
    L = x_ref.shape[1]
    C = inw_ref.shape[1]
    f32 = jnp.float32

    # 1x1 input conv and time projection (tiny -> keep f32 operands)
    h = jnp.dot(x_ref[0], inw_ref[...], preferred_element_type=f32) + inb_ref[...]
    tproj = jnp.dot(temb_ref[0], tw_ref[...],
                    preferred_element_type=f32) + tb_ref[...]          # (1, C)

    hpad_ref[...] = jnp.zeros_like(hpad_ref)       # zero halos once
    skip = jnp.zeros((L, C), f32)

    for i, d in enumerate(dilations):
        # gate input = h + temb, zero-padded by the dilation (halo stays zero)
        hpad_ref[pl.ds(halo, L), :] = h + tproj
        taps = [hpad_ref[pl.ds(halo + (k - 1) * d, L), :] for k in range(3)]
        xcat = jnp.concatenate(taps, axis=-1).astype(MXU_DTYPE)        # (L, 3C)
        fg = jnp.dot(xcat, wfg_ref[i].astype(MXU_DTYPE),
                     preferred_element_type=f32) + bfg_ref[i]          # (L, 2C)
        z = jnp.tanh(fg[:, :C]) * jax.nn.sigmoid(fg[:, C:])
        rs = jnp.dot(z.astype(MXU_DTYPE), wrs_ref[i].astype(MXU_DTYPE),
                     preferred_element_type=f32) + brs_ref[i]          # (L, 2C)
        h = h + rs[:, :C]
        skip = skip + rs[:, C:]

    out = jnp.dot(jnp.maximum(skip, 0.0), outw_ref[...],
                  preferred_element_type=f32) + outb_ref[...]
    o_ref[0] = out.astype(o_ref.dtype)


def run_wavenet(p, x, temb3):
    B, L, Cin = x.shape
    C = p["in_w"].shape[1]
    out_ch = p["out_w"].shape[1]
    halo = p["halo"]
    Lp = L + 2 * halo
    t_dim = temb3.shape[2]
    kernel = functools.partial(_wavenet_kernel,
                               dilations=p["dilations"], halo=halo)
    return pl.pallas_call(
        kernel,
        out_shape=jax.ShapeDtypeStruct((B, L, out_ch), jnp.float32),
        grid_spec=pltpu.PrefetchScalarGridSpec(
            num_scalar_prefetch=0,
            grid=(B,),
            in_specs=[
                pl.BlockSpec((1, L, Cin), lambda b: (b, 0, 0)),
                pl.BlockSpec((1, 1, t_dim), lambda b: (b, 0, 0)),
                pl.BlockSpec(p["in_w"].shape, lambda b: (0, 0)),
                pl.BlockSpec(p["in_b"].shape, lambda b: (0, 0)),
                pl.BlockSpec(p["t_w"].shape, lambda b: (0, 0)),
                pl.BlockSpec(p["t_b"].shape, lambda b: (0, 0)),
                pl.BlockSpec(p["wfg"].shape, lambda b: (0, 0, 0)),
                pl.BlockSpec(p["bfg"].shape, lambda b: (0, 0, 0)),
                pl.BlockSpec(p["wrs"].shape, lambda b: (0, 0, 0)),
                pl.BlockSpec(p["brs"].shape, lambda b: (0, 0, 0)),
                pl.BlockSpec(p["out_w"].shape, lambda b: (0, 0)),
                pl.BlockSpec(p["out_b"].shape, lambda b: (0, 0)),
            ],
            out_specs=pl.BlockSpec((1, L, out_ch), lambda b: (b, 0, 0)),
            scratch_shapes=[pltpu.VMEM((Lp, C), jnp.float32)],
        ),
        compiler_params=pltpu.CompilerParams(
            dimension_semantics=("parallel",),
            vmem_limit_bytes=VMEM_LIMIT),
    )(x, temb3, p["in_w"], p["in_b"], p["t_w"], p["t_b"],
      p["wfg"], p["bfg"], p["wrs"], p["brs"], p["out_w"], p["out_b"])


# ----------------------------------------------------------------------------
# Kernel 3: fused DiffUNetBlock1d, down variant
#   conv1(k=3,p=1)+ReLU -> +relu(time) -> conv2(k=3,p=1)+ReLU -> conv(k=4,s=2,p=1)
# ----------------------------------------------------------------------------
def _down_block_kernel(x_ref, temb_ref, w1_ref, b1_ref, tw_ref, tb_ref,
                       w2_ref, b2_ref, wd_ref, bd_ref, o_ref,
                       pad1_ref, pad2_ref, *, halo):
    L = x_ref.shape[1]
    Lo = o_ref.shape[1]
    f32 = jnp.float32

    pad1_ref[...] = jnp.zeros_like(pad1_ref)
    pad2_ref[...] = jnp.zeros_like(pad2_ref)
    pad1_ref[pl.ds(halo, L), :] = x_ref[0]

    tproj = jnp.maximum(
        jnp.dot(temb_ref[0], tw_ref[...],
                preferred_element_type=f32) + tb_ref[...], 0.0)          # (1, C)

    # conv1 (3-tap) + ReLU — one lane-concatenated dot
    c1 = jnp.concatenate(
        [pad1_ref[pl.ds(halo - 1 + k, L), :] for k in range(3)],
        axis=-1).astype(MXU_DTYPE)
    h1 = jnp.maximum(jnp.dot(c1, w1_ref[...].astype(MXU_DTYPE),
                             preferred_element_type=f32) + b1_ref[...], 0.0)

    # + time, conv2 (3-tap) + ReLU
    pad2_ref[pl.ds(halo, L), :] = h1 + tproj
    c2 = jnp.concatenate(
        [pad2_ref[pl.ds(halo - 1 + k, L), :] for k in range(3)],
        axis=-1).astype(MXU_DTYPE)
    h2 = jnp.maximum(jnp.dot(c2, w2_ref[...].astype(MXU_DTYPE),
                             preferred_element_type=f32) + b2_ref[...], 0.0)

    # downsample conv (k=4, s=2, p=1); reuse pad2 (halo rows stay zero)
    pad2_ref[pl.ds(halo, L), :] = h2
    cd = jnp.concatenate(
        [pad2_ref[pl.ds(halo - 1 + j, Lo, stride=2), :] for j in range(4)],
        axis=-1).astype(MXU_DTYPE)                                        # (Lo, 4C)
    y = jnp.dot(cd, wd_ref[...].astype(MXU_DTYPE),
                preferred_element_type=f32) + bd_ref[...]
    o_ref[0] = y.astype(o_ref.dtype)


def run_down_block(p, x, temb3):
    B, L, Cin = x.shape
    Cout = p["b1"].shape[1]
    Lo = L // 2
    halo = UNET_HALO
    Lp = L + 2 * halo
    t_dim = temb3.shape[2]
    kernel = functools.partial(_down_block_kernel, halo=halo)
    return pl.pallas_call(
        kernel,
        out_shape=jax.ShapeDtypeStruct((B, Lo, Cout), jnp.float32),
        grid_spec=pltpu.PrefetchScalarGridSpec(
            num_scalar_prefetch=0,
            grid=(B,),
            in_specs=[
                pl.BlockSpec((1, L, Cin), lambda b: (b, 0, 0)),
                pl.BlockSpec((1, 1, t_dim), lambda b: (b, 0, 0)),
                pl.BlockSpec(p["w1"].shape, lambda b: (0, 0)),
                pl.BlockSpec(p["b1"].shape, lambda b: (0, 0)),
                pl.BlockSpec(p["tw"].shape, lambda b: (0, 0)),
                pl.BlockSpec(p["tb"].shape, lambda b: (0, 0)),
                pl.BlockSpec(p["w2"].shape, lambda b: (0, 0)),
                pl.BlockSpec(p["b2"].shape, lambda b: (0, 0)),
                pl.BlockSpec(p["wd"].shape, lambda b: (0, 0)),
                pl.BlockSpec(p["bd"].shape, lambda b: (0, 0)),
            ],
            out_specs=pl.BlockSpec((1, Lo, Cout), lambda b: (b, 0, 0)),
            scratch_shapes=[pltpu.VMEM((Lp, Cin), jnp.float32),
                            pltpu.VMEM((Lp, Cout), jnp.float32)],
        ),
        compiler_params=pltpu.CompilerParams(
            dimension_semantics=("parallel",),
            vmem_limit_bytes=VMEM_LIMIT),
    )(x, temb3, p["w1"], p["b1"], p["tw"], p["tb"],
      p["w2"], p["b2"], p["wd"], p["bd"])


# ----------------------------------------------------------------------------
# Kernel 4: fused DiffUNetBlock1d, up variant
#   [x|res] channel concat -> conv1+ReLU -> +time -> conv2+ReLU ->
#   ConvTranspose1d(k=4,s=2,p=1) as two 2-tap dots (even|odd phases on lanes)
# ----------------------------------------------------------------------------
def _up_block_kernel(x_ref, res_ref, temb_ref, w1_ref, b1_ref, tw_ref, tb_ref,
                     w2_ref, b2_ref, we_ref, wo_ref, bu_ref, o_ref,
                     pad1_ref, pad2_ref, *, halo):
    L = x_ref.shape[1]
    f32 = jnp.float32

    pad1_ref[...] = jnp.zeros_like(pad1_ref)
    pad2_ref[...] = jnp.zeros_like(pad2_ref)
    # channel concat [x | residual] done in VMEM (no XLA concat pass)
    pad1_ref[pl.ds(halo, L), :] = jnp.concatenate(
        [x_ref[0], res_ref[0]], axis=-1)

    tproj = jnp.maximum(
        jnp.dot(temb_ref[0], tw_ref[...],
                preferred_element_type=f32) + tb_ref[...], 0.0)

    c1 = jnp.concatenate(
        [pad1_ref[pl.ds(halo - 1 + k, L), :] for k in range(3)],
        axis=-1).astype(MXU_DTYPE)
    h1 = jnp.maximum(jnp.dot(c1, w1_ref[...].astype(MXU_DTYPE),
                             preferred_element_type=f32) + b1_ref[...], 0.0)

    pad2_ref[pl.ds(halo, L), :] = h1 + tproj
    c2 = jnp.concatenate(
        [pad2_ref[pl.ds(halo - 1 + k, L), :] for k in range(3)],
        axis=-1).astype(MXU_DTYPE)
    h2 = jnp.maximum(jnp.dot(c2, w2_ref[...].astype(MXU_DTYPE),
                             preferred_element_type=f32) + b2_ref[...], 0.0)

    # ConvTranspose1d(k=4, s=2, p=1):
    #   y[2m]   = h2[m] @ W1 + h2[m-1] @ W3     (we = [W3; W1])
    #   y[2m+1] = h2[m+1] @ W0 + h2[m] @ W2     (wo = [W2; W0])
    pad2_ref[pl.ds(halo, L), :] = h2
    even_in = jnp.concatenate([pad2_ref[pl.ds(halo - 1, L), :],
                               pad2_ref[pl.ds(halo, L), :]],
                              axis=-1).astype(MXU_DTYPE)
    odd_in = jnp.concatenate([pad2_ref[pl.ds(halo, L), :],
                              pad2_ref[pl.ds(halo + 1, L), :]],
                             axis=-1).astype(MXU_DTYPE)
    ye = jnp.dot(even_in, we_ref[...].astype(MXU_DTYPE),
                 preferred_element_type=f32) + bu_ref[...]
    yo = jnp.dot(odd_in, wo_ref[...].astype(MXU_DTYPE),
                 preferred_element_type=f32) + bu_ref[...]
    # lane-packed [even | odd]; interleaved by a free reshape outside
    o_ref[0] = jnp.concatenate([ye, yo], axis=-1).astype(o_ref.dtype)


def run_up_block(p, x, res, temb3):
    B, L, Cin = x.shape
    Cout = p["b1"].shape[1]
    halo = UNET_HALO
    Lp = L + 2 * halo
    t_dim = temb3.shape[2]
    kernel = functools.partial(_up_block_kernel, halo=halo)
    y = pl.pallas_call(
        kernel,
        out_shape=jax.ShapeDtypeStruct((B, L, 2 * Cout), jnp.float32),
        grid_spec=pltpu.PrefetchScalarGridSpec(
            num_scalar_prefetch=0,
            grid=(B,),
            in_specs=[
                pl.BlockSpec((1, L, Cin), lambda b: (b, 0, 0)),
                pl.BlockSpec((1, L, Cin), lambda b: (b, 0, 0)),
                pl.BlockSpec((1, 1, t_dim), lambda b: (b, 0, 0)),
                pl.BlockSpec(p["w1"].shape, lambda b: (0, 0)),
                pl.BlockSpec(p["b1"].shape, lambda b: (0, 0)),
                pl.BlockSpec(p["tw"].shape, lambda b: (0, 0)),
                pl.BlockSpec(p["tb"].shape, lambda b: (0, 0)),
                pl.BlockSpec(p["w2"].shape, lambda b: (0, 0)),
                pl.BlockSpec(p["b2"].shape, lambda b: (0, 0)),
                pl.BlockSpec(p["we"].shape, lambda b: (0, 0)),
                pl.BlockSpec(p["wo"].shape, lambda b: (0, 0)),
                pl.BlockSpec(p["bu"].shape, lambda b: (0, 0)),
            ],
            out_specs=pl.BlockSpec((1, L, 2 * Cout), lambda b: (b, 0, 0)),
            scratch_shapes=[pltpu.VMEM((Lp, 2 * Cin), jnp.float32),
                            pltpu.VMEM((Lp, Cout), jnp.float32)],
        ),
        compiler_params=pltpu.CompilerParams(
            dimension_semantics=("parallel",),
            vmem_limit_bytes=VMEM_LIMIT),
    )(x, res, temb3, p["w1"], p["b1"], p["tw"], p["tb"],
      p["w2"], p["b2"], p["we"], p["wo"], p["bu"])
    # interleave even/odd output phases: contiguous (free) reshape
    return y.reshape(B, L, 2, Cout).reshape(B, 2 * L, Cout)


# ----------------------------------------------------------------------------
# Forward pass (XLA glue: transposes, sinusoid embedding, free reshapes only)
# ----------------------------------------------------------------------------
def diff_pos_encoding(t, dim):
    half = dim // 2
    freqs = jnp.exp(-math.log(10000.0) *
                    jnp.arange(half, dtype=jnp.float32) / half)
    args = t.astype(jnp.float32)[:, None] * freqs[None, :]
    return jnp.concatenate([jnp.sin(args), jnp.cos(args)], axis=-1)


def uwunet_forward(params, time_emb_dim, x_ncl, timestep):
    x = jnp.transpose(x_ncl, (0, 2, 1))                       # NCL -> NLC
    emb = diff_pos_encoding(timestep, time_emb_dim)
    t = time_mlp(emb, params["time_w"], params["time_b"])     # (B, t_dim)
    t3 = t[:, None, :]                                         # (B, 1, t_dim)

    h = run_wavenet(params["init_wn"], x, t3)
    residuals = []
    for dp in params["downs"]:
        h = run_down_block(dp, h, t3)
        residuals.append(h)
    for up_p in params["ups"]:
        res = residuals.pop()
        h = run_up_block(up_p, h, res, t3)
    out = run_wavenet(params["final_wn"], h, t3)
    return jnp.transpose(out, (0, 2, 1))                       # NLC -> NCL


# ----------------------------------------------------------------------------
# Deterministic parameter init (fused / lane-dense weight layouts built here)
# ----------------------------------------------------------------------------
class KeyGen:
    def __init__(self, seed):
        self._key = jax.random.PRNGKey(seed)

    def __call__(self):
        self._key, sub = jax.random.split(self._key)
        return sub


def _init_w(key, shape, fan_in=None):
    if fan_in is None:
        fan_in = int(math.prod(shape[:-1]))
    return (jax.random.normal(key, shape, jnp.float32) /
            jnp.sqrt(jnp.float32(max(fan_in, 1))))


def init_wavenet(kg, in_ch, res_ch, out_ch, depth, repeats, t_dim):
    C = res_ch
    dil = tuple(2 ** d for _ in range(repeats) for d in range(depth))
    nl = len(dil)
    return {
        "dilations": dil,
        "halo": _rup(max(dil), 8),
        "in_w": _init_w(kg(), (in_ch, C)),
        "in_b": jnp.zeros((1, C), jnp.float32),
        "t_w": _init_w(kg(), (t_dim, C)),
        "t_b": jnp.zeros((1, C), jnp.float32),
        # per-layer fused weights: rows = 3 stacked taps, cols = filter|gate
        "wfg": _init_w(kg(), (nl, 3 * C, 2 * C), fan_in=3 * C),
        "bfg": jnp.zeros((nl, 1, 2 * C), jnp.float32),
        # 1x1 res|skip fused on the lane axis
        "wrs": _init_w(kg(), (nl, C, 2 * C), fan_in=C),
        "brs": jnp.zeros((nl, 1, 2 * C), jnp.float32),
        "out_w": _init_w(kg(), (C, out_ch)),
        "out_b": jnp.zeros((1, out_ch), jnp.float32),
    }


def init_unet_block(kg, in_ch, out_ch, t_dim, up):
    cin = 2 * in_ch if up else in_ch          # up blocks see [h | residual]
    p = {
        "up": up,
        "w1": _init_w(kg(), (3 * cin, out_ch), fan_in=3 * cin),
        "b1": jnp.zeros((1, out_ch), jnp.float32),
        "tw": _init_w(kg(), (t_dim, out_ch)),
        "tb": jnp.zeros((1, out_ch), jnp.float32),
        "w2": _init_w(kg(), (3 * out_ch, out_ch), fan_in=3 * out_ch),
        "b2": jnp.zeros((1, out_ch), jnp.float32),
    }
    if up:
        # ConvTranspose1d(k=4,s=2,p=1): even phase uses taps [W3; W1],
        # odd phase uses [W2; W0] — no zero blocks, no wasted MXU work.
        p["we"] = _init_w(kg(), (2 * out_ch, out_ch), fan_in=4 * out_ch)
        p["wo"] = _init_w(kg(), (2 * out_ch, out_ch), fan_in=4 * out_ch)
        p["bu"] = jnp.zeros((1, out_ch), jnp.float32)
    else:
        # Conv1d(k=4,s=2,p=1): 4 stacked taps
        p["wd"] = _init_w(kg(), (4 * out_ch, out_ch), fan_in=4 * out_ch)
        p["bd"] = jnp.zeros((1, out_ch), jnp.float32)
    return p


def init_uwunet(cfg, seed=0):
    kg = KeyGen(seed)
    wav = cfg["wav_channels"]
    dc = cfg["down_channels"]
    uc = cfg["up_channels"]
    t_dim = cfg["time_emb_dim"]
    depth = cfg["wn_dilation_depth"]
    reps = cfg["wn_repeats"]
    return {
        "time_w": _init_w(kg(), (t_dim, t_dim)),
        "time_b": jnp.zeros((1, t_dim), jnp.float32),
        "init_wn": init_wavenet(kg, wav, dc[0], dc[1], depth, reps, t_dim),
        "downs": [init_unet_block(kg, dc[i], dc[i + 1], t_dim, False)
                  for i in range(1, len(dc) - 1)],
        "ups": [init_unet_block(kg, uc[i], uc[i + 1], t_dim, True)
                for i in range(len(uc) - 2)],
        "final_wn": init_wavenet(kg, uc[-2], uc[-1], wav, depth, reps, t_dim),
    }


# ----------------------------------------------------------------------------
if __name__ == "__main__":
    cfg = dict(
        wav_channels=4,
        down_channels=[16, 16, 32, 64],
        up_channels=[64, 32, 16, 16],
        time_emb_dim=32,
        wn_dilation_depth=2,
        wn_repeats=1,
    )
    params = init_uwunet(cfg, seed=0)

    key = jax.random.PRNGKey(0)
    kx, kt = jax.random.split(key)
    B, C, L = 2, cfg["wav_channels"], 16
    x = jax.random.normal(kx, (B, C, L), jnp.float32)     # PyTorch NCL layout
    timestep = jax.random.randint(kt, (B,), 0, 1000).astype(jnp.float32)

    fwd = jax.jit(lambda xx, tt: uwunet_forward(params, cfg["time_emb_dim"], xx, tt))
    out = jax.block_until_ready(fwd(x, timestep))

    assert out.shape == (B, C, L), out.shape
    assert bool(jnp.all(jnp.isfinite(out)))
    print("KERNEL_OK")
</pallas_src>

<mosaic_0001>
module attributes {stable_mosaic.version = 11 : i64} {
  func.func @_down_block_kernel(%arg0: i32, %arg1: memref<1x16x16xf32, #tpu.memory_space<vmem>>, %arg2: memref<1x1x32xf32, #tpu.memory_space<vmem>>, %arg3: memref<48x32xf32, #tpu.memory_space<vmem>>, %arg4: memref<1x32xf32, #tpu.memory_space<vmem>>, %arg5: memref<32x32xf32, #tpu.memory_space<vmem>>, %arg6: memref<1x32xf32, #tpu.memory_space<vmem>>, %arg7: memref<96x32xf32, #tpu.memory_space<vmem>>, %arg8: memref<1x32xf32, #tpu.memory_space<vmem>>, %arg9: memref<128x32xf32, #tpu.memory_space<vmem>>, %arg10: memref<1x32xf32, #tpu.memory_space<vmem>>, %arg11: memref<1x8x32xf32, #tpu.memory_space<vmem>>, %arg12: memref<32x16xf32, #tpu.memory_space<vmem>>, %arg13: memref<32x32xf32, #tpu.memory_space<vmem>>) attributes {dimension_semantics = [#tpu.dimension_semantics<parallel>], iteration_bounds = array<i64: 2>, scalar_prefetch = 0 : i64, scratch_operands = 2 : i64, tpu.core_type = #tpu.core_type<tc>, window_params = [{transform_indices = @transform_0, window_bounds = array<i64: 1, 16, 16>}, {transform_indices = @transform_1, window_bounds = array<i64: 1, 1, 32>}, {pipeline_mode = #tpu.pipeline_mode<synchronous>, transform_indices = @transform_2, window_bounds = array<i64: 48, 32>}, {pipeline_mode = #tpu.pipeline_mode<synchronous>, transform_indices = @transform_3, window_bounds = array<i64: 1, 32>}, {pipeline_mode = #tpu.pipeline_mode<synchronous>, transform_indices = @transform_4, window_bounds = array<i64: 32, 32>}, {pipeline_mode = #tpu.pipeline_mode<synchronous>, transform_indices = @transform_5, window_bounds = array<i64: 1, 32>}, {pipeline_mode = #tpu.pipeline_mode<synchronous>, transform_indices = @transform_6, window_bounds = array<i64: 96, 32>}, {pipeline_mode = #tpu.pipeline_mode<synchronous>, transform_indices = @transform_7, window_bounds = array<i64: 1, 32>}, {pipeline_mode = #tpu.pipeline_mode<synchronous>, transform_indices = @transform_8, window_bounds = array<i64: 128, 32>}, {pipeline_mode = #tpu.pipeline_mode<synchronous>, transform_indices = @transform_9, window_bounds = array<i64: 1, 32>}, {transform_indices = @transform_10, window_bounds = array<i64: 1, 8, 32>}]} {
    %cst = arith.constant 0.000000e+00 : f32
    %0 = vector.broadcast %cst : f32 to vector<32x16xf32>
    %c0 = arith.constant 0 : index
    %c0_0 = arith.constant 0 : index
    %1 = vector.load %arg12[%c0, %c0_0] : memref<32x16xf32, #tpu.memory_space<vmem>>, vector<32x16xf32>
    tpu.vector_store %arg12[%c0, %c0_0], %0 {strides = array<i32>} : memref<32x16xf32, #tpu.memory_space<vmem>>, vector<32x16xf32>,
    %cst_1 = arith.constant 0.000000e+00 : f32
    %2 = vector.broadcast %cst_1 : f32 to vector<32x32xf32>
    %c0_2 = arith.constant 0 : index
    %c0_3 = arith.constant 0 : index
    %3 = vector.load %arg13[%c0_2, %c0_3] : memref<32x32xf32, #tpu.memory_space<vmem>>, vector<32x32xf32>
    tpu.vector_store %arg13[%c0_2, %c0_3], %2 {strides = array<i32>} : memref<32x32xf32, #tpu.memory_space<vmem>>, vector<32x32xf32>,
    %c0_4 = arith.constant 0 : index
    %c0_5 = arith.constant 0 : index
    %c0_6 = arith.constant 0 : index
    %4 = vector.load %arg1[%c0_4, %c0_5, %c0_6] : memref<1x16x16xf32, #tpu.memory_space<vmem>>, vector<1x16x16xf32>
    %5 = vector.shape_cast %4 : vector<1x16x16xf32> to vector<16x16xf32>
    %c8 = arith.constant 8 : index
    %c0_7 = arith.constant 0 : index
    %6 = vector.load %arg12[%c8, %c0_7] : memref<32x16xf32, #tpu.memory_space<vmem>>, vector<16x16xf32>
    tpu.vector_store %arg12[%c8, %c0_7], %5 {strides = array<i32>} : memref<32x16xf32, #tpu.memory_space<vmem>>, vector<16x16xf32>,
    %c0_8 = arith.constant 0 : index
    %c0_9 = arith.constant 0 : index
    %c0_10 = arith.constant 0 : index
    %7 = vector.load %arg2[%c0_8, %c0_9, %c0_10] : memref<1x1x32xf32, #tpu.memory_space<vmem>>, vector<1x1x32xf32>
    %8 = vector.shape_cast %7 : vector<1x1x32xf32> to vector<1x32xf32>
    %c0_11 = arith.constant 0 : index
    %c0_12 = arith.constant 0 : index
    %9 = vector.load %arg5[%c0_11, %c0_12] : memref<32x32xf32, #tpu.memory_space<vmem>>, vector<32x32xf32>
    %cst_13 = arith.constant dense<0.000000e+00> : vector<1x32xf32>
    %10 = tpu.matmul %8, %9, %cst_13 {dimension_numbers = #tpu.dot_dimension_numbers<[1], [0], [0], [1], [0, 0, 1, 1], [], []>} : vector<1x32xf32>, vector<32x32xf32>, vector<1x32xf32> -> vector<1x32xf32>
    %c0_14 = arith.constant 0 : index
    %c0_15 = arith.constant 0 : index
    %11 = vector.load %arg6[%c0_14, %c0_15] : memref<1x32xf32, #tpu.memory_space<vmem>>, vector<1x32xf32>
    %12 = arith.addf %10, %11 : vector<1x32xf32>
    %cst_16 = arith.constant 0.000000e+00 : f32
    %13 = vector.broadcast %cst_16 : f32 to vector<1x32xf32>
    %14 = arith.maximumf %12, %13 : vector<1x32xf32>
    %c7 = arith.constant 7 : index
    %c0_17 = arith.constant 0 : index
    %15 = vector.load %arg12[%c7, %c0_17] : memref<32x16xf32, #tpu.memory_space<vmem>>, vector<16x16xf32>
    %c8_18 = arith.constant 8 : index
    %c0_19 = arith.constant 0 : index
    %16 = vector.load %arg12[%c8_18, %c0_19] : memref<32x16xf32, #tpu.memory_space<vmem>>, vector<16x16xf32>
    %c9 = arith.constant 9 : index
    %c0_20 = arith.constant 0 : index
    %17 = vector.load %arg12[%c9, %c0_20] : memref<32x16xf32, #tpu.memory_space<vmem>>, vector<16x16xf32>
    %18 = tpu.concatenate %15, %16, %17 in 1 : vector<16x16xf32>, vector<16x16xf32>, vector<16x16xf32> -> vector<16x48xf32>
    %19 = arith.truncf %18 : vector<16x48xf32> to vector<16x48xbf16>
    %c0_21 = arith.constant 0 : index
    %c0_22 = arith.constant 0 : index
    %20 = vector.load %arg3[%c0_21, %c0_22] : memref<48x32xf32, #tpu.memory_space<vmem>>, vector<48x32xf32>
    %21 = arith.truncf %20 : vector<48x32xf32> to vector<48x32xbf16>
    %cst_23 = arith.constant dense<0.000000e+00> : vector<16x32xf32>
    %22 = tpu.matmul %19, %21, %cst_23 {dimension_numbers = #tpu.dot_dimension_numbers<[1], [0], [0], [1], [0, 0, 1, 1], [], []>} : vector<16x48xbf16>, vector<48x32xbf16>, vector<16x32xf32> -> vector<16x32xf32>
    %c0_24 = arith.constant 0 : index
    %c0_25 = arith.constant 0 : index
    %23 = vector.load %arg4[%c0_24, %c0_25] : memref<1x32xf32, #tpu.memory_space<vmem>>, vector<1x32xf32>
    %24 = vector.broadcast %23 : vector<1x32xf32> to vector<16x32xf32>
    %25 = arith.addf %22, %24 : vector<16x32xf32>
    %cst_26 = arith.constant 0.000000e+00 : f32
    %26 = vector.broadcast %cst_26 : f32 to vector<16x32xf32>
    %27 = arith.maximumf %25, %26 : vector<16x32xf32>
    %28 = vector.broadcast %14 : vector<1x32xf32> to vector<16x32xf32>
    %29 = arith.addf %27, %28 : vector<16x32xf32>
    %c8_27 = arith.constant 8 : index
    %c0_28 = arith.constant 0 : index
    %30 = vector.load %arg13[%c8_27, %c0_28] : memref<32x32xf32, #tpu.memory_space<vmem>>, vector<16x32xf32>
    tpu.vector_store %arg13[%c8_27, %c0_28], %29 {strides = array<i32>} : memref<32x32xf32, #tpu.memory_space<vmem>>, vector<16x32xf32>,
    %c7_29 = arith.constant 7 : index
    %c0_30 = arith.constant 0 : index
    %31 = vector.load %arg13[%c7_29, %c0_30] : memref<32x32xf32, #tpu.memory_space<vmem>>, vector<16x32xf32>
    %c8_31 = arith.constant 8 : index
    %c0_32 = arith.constant 0 : index
    %32 = vector.load %arg13[%c8_31, %c0_32] : memref<32x32xf32, #tpu.memory_space<vmem>>, vector<16x32xf32>
    %c9_33 = arith.constant 9 : index
    %c0_34 = arith.constant 0 : index
    %33 = vector.load %arg13[%c9_33, %c0_34] : memref<32x32xf32, #tpu.memory_space<vmem>>, vector<16x32xf32>
    %34 = tpu.concatenate %31, %32, %33 in 1 : vector<16x32xf32>, vector<16x32xf32>, vector<16x32xf32> -> vector<16x96xf32>
    %35 = arith.truncf %34 : vector<16x96xf32> to vector<16x96xbf16>
    %c0_35 = arith.constant 0 : index
    %c0_36 = arith.constant 0 : index
    %36 = vector.load %arg7[%c0_35, %c0_36] : memref<96x32xf32, #tpu.memory_space<vmem>>, vector<96x32xf32>
    %37 = arith.truncf %36 : vector<96x32xf32> to vector<96x32xbf16>
    %cst_37 = arith.constant dense<0.000000e+00> : vector<16x32xf32>
    %38 = tpu.matmul %35, %37, %cst_37 {dimension_numbers = #tpu.dot_dimension_numbers<[1], [0], [0], [1], [0, 0, 1, 1], [], []>} : vector<16x96xbf16>, vector<96x32xbf16>, vector<16x32xf32> -> vector<16x32xf32>
    %c0_38 = arith.constant 0 : index
    %c0_39 = arith.constant 0 : index
    %39 = vector.load %arg8[%c0_38, %c0_39] : memref<1x32xf32, #tpu.memory_space<vmem>>, vector<1x32xf32>
    %40 = vector.broadcast %39 : vector<1x32xf32> to vector<16x32xf32>
    %41 = arith.addf %38, %40 : vector<16x32xf32>
    %cst_40 = arith.constant 0.000000e+00 : f32
    %42 = vector.broadcast %cst_40 : f32 to vector<16x32xf32>
    %43 = arith.maximumf %41, %42 : vector<16x32xf32>
    %c8_41 = arith.constant 8 : index
    %c0_42 = arith.constant 0 : index
    %44 = vector.load %arg13[%c8_41, %c0_42] : memref<32x32xf32, #tpu.memory_space<vmem>>, vector<16x32xf32>
    tpu.vector_store %arg13[%c8_41, %c0_42], %43 {strides = array<i32>} : memref<32x32xf32, #tpu.memory_space<vmem>>, vector<16x32xf32>,
    %c7_43 = arith.constant 7 : index
    %c0_44 = arith.constant 0 : index
    %45 = tpu.strided_load %arg13[%c7_43, %c0_44] {strides = array<i32: 2, 1>} : memref<32x32xf32, #tpu.memory_space<vmem>>, vector<8x32xf32>
    %c8_45 = arith.constant 8 : index
    %c0_46 = arith.constant 0 : index
    %46 = tpu.strided_load %arg13[%c8_45, %c0_46] {strides = array<i32: 2, 1>} : memref<32x32xf32, #tpu.memory_space<vmem>>, vector<8x32xf32>
    %c9_47 = arith.constant 9 : index
    %c0_48 = arith.constant 0 : index
    %47 = tpu.strided_load %arg13[%c9_47, %c0_48] {strides = array<i32: 2, 1>} : memref<32x32xf32, #tpu.memory_space<vmem>>, vector<8x32xf32>
    %c10 = arith.constant 10 : index
    %c0_49 = arith.constant 0 : index
    %48 = tpu.strided_load %arg13[%c10, %c0_49] {strides = array<i32: 2, 1>} : memref<32x32xf32, #tpu.memory_space<vmem>>, vector<8x32xf32>
    %49 = tpu.concatenate %45, %46, %47, %48 in 1 : vector<8x32xf32>, vector<8x32xf32>, vector<8x32xf32>, vector<8x32xf32> -> vector<8x128xf32>
    %50 = arith.truncf %49 : vector<8x128xf32> to vector<8x128xbf16>
    %c0_50 = arith.constant 0 : index
    %c0_51 = arith.constant 0 : index
    %51 = vector.load %arg9[%c0_50, %c0_51] : memref<128x32xf32, #tpu.memory_space<vmem>>, vector<128x32xf32>
    %52 = arith.truncf %51 : vector<128x32xf32> to vector<128x32xbf16>
    %cst_52 = arith.constant dense<0.000000e+00> : vector<8x32xf32>
    %53 = tpu.matmul %50, %52, %cst_52 {dimension_numbers = #tpu.dot_dimension_numbers<[1], [0], [0], [1], [0, 0, 1, 1], [], []>} : vector<8x128xbf16>, vector<128x32xbf16>, vector<8x32xf32> -> vector<8x32xf32>
    %c0_53 = arith.constant 0 : index
    %c0_54 = arith.constant 0 : index
    %54 = vector.load %arg10[%c0_53, %c0_54] : memref<1x32xf32, #tpu.memory_space<vmem>>, vector<1x32xf32>
    %55 = vector.broadcast %54 : vector<1x32xf32> to vector<8x32xf32>
    %56 = arith.addf %53, %55 : vector<8x32xf32>
    %c0_55 = arith.constant 0 : index
    %c0_56 = arith.constant 0 : index
    %c0_57 = arith.constant 0 : index
    %57 = vector.load %arg11[%c0_55, %c0_56, %c0_57] : memref<1x8x32xf32, #tpu.memory_space<vmem>>, vector<1x8x32xf32>
    %58 = vector.shape_cast %57 : vector<1x8x32xf32> to vector<8x32xf32>
    %59 = vector.shape_cast %56 : vector<8x32xf32> to vector<1x8x32xf32>
    tpu.vector_store %arg11[%c0_55, %c0_56, %c0_57], %59 {strides = array<i32>} : memref<1x8x32xf32, #tpu.memory_space<vmem>>, vector<1x8x32xf32>,
    return
  }
  func.func @transform_0(%arg0: i32) -> (i32, i32, i32) {
    %c0_i32 = arith.constant 0 : i32
    %c0_i32_0 = arith.constant 0 : i32
    %c0_i32_1 = arith.constant 0 : i32
    return %arg0, %c0_i32, %c0_i32_0 : i32, i32, i32
  }
  func.func @transform_1(%arg0: i32) -> (i32, i32, i32) {
    %c0_i32 = arith.constant 0 : i32
    %c0_i32_0 = arith.constant 0 : i32
    %c0_i32_1 = arith.constant 0 : i32
    return %arg0, %c0_i32, %c0_i32_0 : i32, i32, i32
  }
  func.func @transform_2(%arg0: i32) -> (i32, i32) {
    %c0_i32 = arith.constant 0 : i32
    %c0_i32_0 = arith.constant 0 : i32
    %c0_i32_1 = arith.constant 0 : i32
    return %c0_i32, %c0_i32_0 : i32, i32
  }
  func.func @transform_3(%arg0: i32) -> (i32, i32) {
    %c0_i32 = arith.constant 0 : i32
    %c0_i32_0 = arith.constant 0 : i32
    %c0_i32_1 = arith.constant 0 : i32
    return %c0_i32, %c0_i32_0 : i32, i32
  }
  func.func @transform_4(%arg0: i32) -> (i32, i32) {
    %c0_i32 = arith.constant 0 : i32
    %c0_i32_0 = arith.constant 0 : i32
    %c0_i32_1 = arith.constant 0 : i32
    return %c0_i32, %c0_i32_0 : i32, i32
  }
  func.func @transform_5(%arg0: i32) -> (i32, i32) {
    %c0_i32 = arith.constant 0 : i32
    %c0_i32_0 = arith.constant 0 : i32
    %c0_i32_1 = arith.constant 0 : i32
    return %c0_i32, %c0_i32_0 : i32, i32
  }
  func.func @transform_6(%arg0: i32) -> (i32, i32) {
    %c0_i32 = arith.constant 0 : i32
    %c0_i32_0 = arith.constant 0 : i32
    %c0_i32_1 = arith.constant 0 : i32
    return %c0_i32, %c0_i32_0 : i32, i32
  }
  func.func @transform_7(%arg0: i32) -> (i32, i32) {
    %c0_i32 = arith.constant 0 : i32
    %c0_i32_0 = arith.constant 0 : i32
    %c0_i32_1 = arith.constant 0 : i32
    return %c0_i32, %c0_i32_0 : i32, i32
  }
  func.func @transform_8(%arg0: i32) -> (i32, i32) {
    %c0_i32 = arith.constant 0 : i32
    %c0_i32_0 = arith.constant 0 : i32
    %c0_i32_1 = arith.constant 0 : i32
    return %c0_i32, %c0_i32_0 : i32, i32
  }
  func.func @transform_9(%arg0: i32) -> (i32, i32) {
    %c0_i32 = arith.constant 0 : i32
    %c0_i32_0 = arith.constant 0 : i32
    %c0_i32_1 = arith.constant 0 : i32
    return %c0_i32, %c0_i32_0 : i32, i32
  }
  func.func @transform_10(%arg0: i32) -> (i32, i32, i32) {
    %c0_i32 = arith.constant 0 : i32
    %c0_i32_0 = arith.constant 0 : i32
    %c0_i32_1 = arith.constant 0 : i32
    return %arg0, %c0_i32, %c0_i32_0 : i32, i32, i32
  }
}

module attributes {stable_mosaic.version = 11 : i64} {
  func.func @_time_mlp_kernel(%arg0: memref<2x32xf32, #tpu.memory_space<vmem>>, %arg1: memref<32x32xf32, #tpu.memory_space<vmem>>, %arg2: memref<1x32xf32, #tpu.memory_space<vmem>>, %arg3: memref<2x32xf32, #tpu.memory_space<vmem>>) attributes {dimension_semantics = [], scalar_prefetch = 0 : i64, scratch_operands = 0 : i64, tpu.core_type = #tpu.core_type<tc>} {
    %c0 = arith.constant 0 : index
    %c0_0 = arith.constant 0 : index
    %0 = vector.load %arg0[%c0, %c0_0] : memref<2x32xf32, #tpu.memory_space<vmem>>, vector<2x32xf32>
    %c0_1 = arith.constant 0 : index
    %c0_2 = arith.constant 0 : index
    %1 = vector.load %arg1[%c0_1, %c0_2] : memref<32x32xf32, #tpu.memory_space<vmem>>, vector<32x32xf32>
    %cst = arith.constant dense<0.000000e+00> : vector<2x32xf32>
    %2 = tpu.matmul %0, %1, %cst {dimension_numbers = #tpu.dot_dimension_numbers<[1], [0], [0], [1], [0, 0, 1, 1], [], []>} : vector<2x32xf32>, vector<32x32xf32>, vector<2x32xf32> -> vector<2x32xf32>
    %c0_3 = arith.constant 0 : index
    %c0_4 = arith.constant 0 : index
    %3 = vector.load %arg2[%c0_3, %c0_4] : memref<1x32xf32, #tpu.memory_space<vmem>>, vector<1x32xf32>
    %4 = vector.broadcast %3 : vector<1x32xf32> to vector<2x32xf32>
    %5 = arith.addf %2, %4 : vector<2x32xf32>
    %cst_5 = arith.constant 0.000000e+00 : f32
    %6 = vector.broadcast %cst_5 : f32 to vector<2x32xf32>
    %7 = arith.maximumf %5, %6 : vector<2x32xf32>
    %c0_6 = arith.constant 0 : index
    %c0_7 = arith.constant 0 : index
    %8 = vector.load %arg3[%c0_6, %c0_7] : memref<2x32xf32, #tpu.memory_space<vmem>>, vector<2x32xf32>
    tpu.vector_store %arg3[%c0_6, %c0_7], %7 {strides = array<i32>} : memref<2x32xf32, #tpu.memory_space<vmem>>, vector<2x32xf32>,
    return
  }
}

module attributes {stable_mosaic.version = 11 : i64} {
  func.func @_wavenet_kernel(%arg0: i32, %arg1: memref<1x16x4xf32, #tpu.memory_space<vmem>>, %arg2: memref<1x1x32xf32, #tpu.memory_space<vmem>>, %arg3: memref<4x16xf32, #tpu.memory_space<vmem>>, %arg4: memref<1x16xf32, #tpu.memory_space<vmem>>, %arg5: memref<32x16xf32, #tpu.memory_space<vmem>>, %arg6: memref<1x16xf32, #tpu.memory_space<vmem>>, %arg7: memref<2x48x32xf32, #tpu.memory_space<vmem>>, %arg8: memref<2x1x32xf32, #tpu.memory_space<vmem>>, %arg9: memref<2x16x32xf32, #tpu.memory_space<vmem>>, %arg10: memref<2x1x32xf32, #tpu.memory_space<vmem>>, %arg11: memref<16x16xf32, #tpu.memory_space<vmem>>, %arg12: memref<1x16xf32, #tpu.memory_space<vmem>>, %arg13: memref<1x16x16xf32, #tpu.memory_space<vmem>>, %arg14: memref<32x16xf32, #tpu.memory_space<vmem>>) attributes {dimension_semantics = [#tpu.dimension_semantics<parallel>], iteration_bounds = array<i64: 2>, scalar_prefetch = 0 : i64, scratch_operands = 1 : i64, tpu.core_type = #tpu.core_type<tc>, window_params = [{transform_indices = @transform_0, window_bounds = array<i64: 1, 16, 4>}, {transform_indices = @transform_1, window_bounds = array<i64: 1, 1, 32>}, {pipeline_mode = #tpu.pipeline_mode<synchronous>, transform_indices = @transform_2, window_bounds = array<i64: 4, 16>}, {pipeline_mode = #tpu.pipeline_mode<synchronous>, transform_indices = @transform_3, window_bounds = array<i64: 1, 16>}, {pipeline_mode = #tpu.pipeline_mode<synchronous>, transform_indices = @transform_4, window_bounds = array<i64: 32, 16>}, {pipeline_mode = #tpu.pipeline_mode<synchronous>, transform_indices = @transform_5, window_bounds = array<i64: 1, 16>}, {pipeline_mode = #tpu.pipeline_mode<synchronous>, transform_indices = @transform_6, window_bounds = array<i64: 2, 48, 32>}, {pipeline_mode = #tpu.pipeline_mode<synchronous>, transform_indices = @transform_7, window_bounds = array<i64: 2, 1, 32>}, {pipeline_mode = #tpu.pipeline_mode<synchronous>, transform_indices = @transform_8, window_bounds = array<i64: 2, 16, 32>}, {pipeline_mode = #tpu.pipeline_mode<synchronous>, transform_indices = @transform_9, window_bounds = array<i64: 2, 1, 32>}, {pipeline_mode = #tpu.pipeline_mode<synchronous>, transform_indices = @transform_10, window_bounds = array<i64: 16, 16>}, {pipeline_mode = #tpu.pipeline_mode<synchronous>, transform_indices = @transform_11, window_bounds = array<i64: 1, 16>}, {transform_indices = @transform_12, window_bounds = array<i64: 1, 16, 16>}]} {
    %c0 = arith.constant 0 : index
    %c0_0 = arith.constant 0 : index
    %c0_1 = arith.constant 0 : index
    %0 = vector.load %arg1[%c0, %c0_0, %c0_1] : memref<1x16x4xf32, #tpu.memory_space<vmem>>, vector<1x16x4xf32>
    %1 = vector.shape_cast %0 : vector<1x16x4xf32> to vector<16x4xf32>
    %c0_2 = arith.constant 0 : index
    %c0_3 = arith.constant 0 : index
    %2 = vector.load %arg3[%c0_2, %c0_3] : memref<4x16xf32, #tpu.memory_space<vmem>>, vector<4x16xf32>
    %cst = arith.constant dense<0.000000e+00> : vector<16x16xf32>
    %3 = tpu.matmul %1, %2, %cst {dimension_numbers = #tpu.dot_dimension_numbers<[1], [0], [0], [1], [0, 0, 1, 1], [], []>} : vector<16x4xf32>, vector<4x16xf32>, vector<16x16xf32> -> vector<16x16xf32>
    %c0_4 = arith.constant 0 : index
    %c0_5 = arith.constant 0 : index
    %4 = vector.load %arg4[%c0_4, %c0_5] : memref<1x16xf32, #tpu.memory_space<vmem>>, vector<1x16xf32>
    %5 = vector.broadcast %4 : vector<1x16xf32> to vector<16x16xf32>
    %6 = arith.addf %3, %5 : vector<16x16xf32>
    %c0_6 = arith.constant 0 : index
    %c0_7 = arith.constant 0 : index
    %c0_8 = arith.constant 0 : index
    %7 = vector.load %arg2[%c0_6, %c0_7, %c0_8] : memref<1x1x32xf32, #tpu.memory_space<vmem>>, vector<1x1x32xf32>
    %8 = vector.shape_cast %7 : vector<1x1x32xf32> to vector<1x32xf32>
    %c0_9 = arith.constant 0 : index
    %c0_10 = arith.constant 0 : index
    %9 = vector.load %arg5[%c0_9, %c0_10] : memref<32x16xf32, #tpu.memory_space<vmem>>, vector<32x16xf32>
    %cst_11 = arith.constant dense<0.000000e+00> : vector<1x16xf32>
    %10 = tpu.matmul %8, %9, %cst_11 {dimension_numbers = #tpu.dot_dimension_numbers<[1], [0], [0], [1], [0, 0, 1, 1], [], []>} : vector<1x32xf32>, vector<32x16xf32>, vector<1x16xf32> -> vector<1x16xf32>
    %c0_12 = arith.constant 0 : index
    %c0_13 = arith.constant 0 : index
    %11 = vector.load %arg6[%c0_12, %c0_13] : memref<1x16xf32, #tpu.memory_space<vmem>>, vector<1x16xf32>
    %12 = arith.addf %10, %11 : vector<1x16xf32>
    %cst_14 = arith.constant 0.000000e+00 : f32
    %13 = vector.broadcast %cst_14 : f32 to vector<32x16xf32>
    %c0_15 = arith.constant 0 : index
    %c0_16 = arith.constant 0 : index
    %14 = vector.load %arg14[%c0_15, %c0_16] : memref<32x16xf32, #tpu.memory_space<vmem>>, vector<32x16xf32>
    tpu.vector_store %arg14[%c0_15, %c0_16], %13 {strides = array<i32>} : memref<32x16xf32, #tpu.memory_space<vmem>>, vector<32x16xf32>,
    %cst_17 = arith.constant 0.000000e+00 : f32
    %15 = vector.broadcast %cst_17 : f32 to vector<16x16xf32>
    %16 = vector.broadcast %12 : vector<1x16xf32> to vector<16x16xf32>
    %17 = arith.addf %6, %16 : vector<16x16xf32>
    %c8 = arith.constant 8 : index
    %c0_18 = arith.constant 0 : index
    %18 = vector.load %arg14[%c8, %c0_18] : memref<32x16xf32, #tpu.memory_space<vmem>>, vector<16x16xf32>
    tpu.vector_store %arg14[%c8, %c0_18], %17 {strides = array<i32>} : memref<32x16xf32, #tpu.memory_space<vmem>>, vector<16x16xf32>,
    %c7 = arith.constant 7 : index
    %c0_19 = arith.constant 0 : index
    %19 = vector.load %arg14[%c7, %c0_19] : memref<32x16xf32, #tpu.memory_space<vmem>>, vector<16x16xf32>
    %c8_20 = arith.constant 8 : index
    %c0_21 = arith.constant 0 : index
    %20 = vector.load %arg14[%c8_20, %c0_21] : memref<32x16xf32, #tpu.memory_space<vmem>>, vector<16x16xf32>
    %c9 = arith.constant 9 : index
    %c0_22 = arith.constant 0 : index
    %21 = vector.load %arg14[%c9, %c0_22] : memref<32x16xf32, #tpu.memory_space<vmem>>, vector<16x16xf32>
    %22 = tpu.concatenate %19, %20, %21 in 1 : vector<16x16xf32>, vector<16x16xf32>, vector<16x16xf32> -> vector<16x48xf32>
    %23 = arith.truncf %22 : vector<16x48xf32> to vector<16x48xbf16>
    %c0_23 = arith.constant 0 : index
    %c0_24 = arith.constant 0 : index
    %c0_25 = arith.constant 0 : index
    %24 = vector.load %arg7[%c0_23, %c0_24, %c0_25] : memref<2x48x32xf32, #tpu.memory_space<vmem>>, vector<1x48x32xf32>
    %25 = vector.shape_cast %24 : vector<1x48x32xf32> to vector<48x32xf32>
    %26 = arith.truncf %25 : vector<48x32xf32> to vector<48x32xbf16>
    %cst_26 = arith.constant dense<0.000000e+00> : vector<16x32xf32>
    %27 = tpu.matmul %23, %26, %cst_26 {dimension_numbers = #tpu.dot_dimension_numbers<[1], [0], [0], [1], [0, 0, 1, 1], [], []>} : vector<16x48xbf16>, vector<48x32xbf16>, vector<16x32xf32> -> vector<16x32xf32>
    %c0_27 = arith.constant 0 : index
    %c0_28 = arith.constant 0 : index
    %c0_29 = arith.constant 0 : index
    %28 = vector.load %arg8[%c0_27, %c0_28, %c0_29] : memref<2x1x32xf32, #tpu.memory_space<vmem>>, vector<1x1x32xf32>
    %29 = vector.shape_cast %28 : vector<1x1x32xf32> to vector<1x32xf32>
    %30 = vector.broadcast %29 : vector<1x32xf32> to vector<16x32xf32>
    %31 = arith.addf %27, %30 : vector<16x32xf32>
    %32 = vector.extract_strided_slice %31 {offsets = [0, 0], sizes = [16, 16], strides = [1, 1]} : vector<16x32xf32> to vector<16x16xf32>
    %33 = math.tanh %32 : vector<16x16xf32>
    %34 = vector.extract_strided_slice %31 {offsets = [0, 16], sizes = [16, 16], strides = [1, 1]} : vector<16x32xf32> to vector<16x16xf32>
    %35 = arith.negf %34 : vector<16x16xf32>
    %36 = math.exp %35 : vector<16x16xf32>
    %cst_30 = arith.constant 1.000000e+00 : f32
    %37 = vector.broadcast %cst_30 : f32 to vector<16x16xf32>
    %38 = arith.addf %37, %36 : vector<16x16xf32>
    %39 = arith.divf %37, %38 : vector<16x16xf32>
    %40 = arith.mulf %33, %39 : vector<16x16xf32>
    %41 = arith.truncf %40 : vector<16x16xf32> to vector<16x16xbf16>
    %c0_31 = arith.constant 0 : index
    %c0_32 = arith.constant 0 : index
    %c0_33 = arith.constant 0 : index
    %42 = vector.load %arg9[%c0_31, %c0_32, %c0_33] : memref<2x16x32xf32, #tpu.memory_space<vmem>>, vector<1x16x32xf32>
    %43 = vector.shape_cast %42 : vector<1x16x32xf32> to vector<16x32xf32>
    %44 = arith.truncf %43 : vector<16x32xf32> to vector<16x32xbf16>
    %cst_34 = arith.constant dense<0.000000e+00> : vector<16x32xf32>
    %45 = tpu.matmul %41, %44, %cst_34 {dimension_numbers = #tpu.dot_dimension_numbers<[1], [0], [0], [1], [0, 0, 1, 1], [], []>} : vector<16x16xbf16>, vector<16x32xbf16>, vector<16x32xf32> -> vector<16x32xf32>
    %c0_35 = arith.constant 0 : index
    %c0_36 = arith.constant 0 : index
    %c0_37 = arith.constant 0 : index
    %46 = vector.load %arg10[%c0_35, %c0_36, %c0_37] : memref<2x1x32xf32, #tpu.memory_space<vmem>>, vector<1x1x32xf32>
    %47 = vector.shape_cast %46 : vector<1x1x32xf32> to vector<1x32xf32>
    %48 = vector.broadcast %47 : vector<1x32xf32> to vector<16x32xf32>
    %49 = arith.addf %45, %48 : vector<16x32xf32>
    %50 = vector.extract_strided_slice %49 {offsets = [0, 0], sizes = [16, 16], strides = [1, 1]} : vector<16x32xf32> to vector<16x16xf32>
    %51 = arith.addf %6, %50 : vector<16x16xf32>
    %52 = vector.extract_strided_slice %49 {offsets = [0, 16], sizes = [16, 16], strides = [1, 1]} : vector<16x32xf32> to vector<16x16xf32>
    %53 = arith.addf %15, %52 : vector<16x16xf32>
    %54 = vector.broadcast %12 : vector<1x16xf32> to vector<16x16xf32>
    %55 = arith.addf %51, %54 : vector<16x16xf32>
    %c8_38 = arith.constant 8 : index
    %c0_39 = arith.constant 0 : index
    %56 = vector.load %arg14[%c8_38, %c0_39] : memref<32x16xf32, #tpu.memory_space<vmem>>, vector<16x16xf32>
    tpu.vector_store %arg14[%c8_38, %c0_39], %55 {strides = array<i32>} : memref<32x16xf32, #tpu.memory_space<vmem>>, vector<16x16xf32>,
    %c6 = arith.constant 6 : index
    %c0_40 = arith.constant 0 : index
    %57 = vector.load %arg14[%c6, %c0_40] : memref<32x16xf32, #tpu.memory_space<vmem>>, vector<16x16xf32>
    %c8_41 = arith.constant 8 : index
    %c0_42 = arith.constant 0 : index
    %58 = vector.load %arg14[%c8_41, %c0_42] : memref<32x16xf32, #tpu.memory_space<vmem>>, vector<16x16xf32>
    %c10 = arith.constant 10 : index
    %c0_43 = arith.constant 0 : index
    %59 = vector.load %arg14[%c10, %c0_43] : memref<32x16xf32, #tpu.memory_space<vmem>>, vector<16x16xf32>
    %60 = tpu.concatenate %57, %58, %59 in 1 : vector<16x16xf32>, vector<16x16xf32>, vector<16x16xf32> -> vector<16x48xf32>
    %61 = arith.truncf %60 : vector<16x48xf32> to vector<16x48xbf16>
    %c1 = arith.constant 1 : index
    %c0_44 = arith.constant 0 : index
    %c0_45 = arith.constant 0 : index
    %62 = vector.load %arg7[%c1, %c0_44, %c0_45] : memref<2x48x32xf32, #tpu.memory_space<vmem>>, vector<1x48x32xf32>
    %63 = vector.shape_cast %62 : vector<1x48x32xf32> to vector<48x32xf32>
    %64 = arith.truncf %63 : vector<48x32xf32> to vector<48x32xbf16>
    %cst_46 = arith.constant dense<0.000000e+00> : vector<16x32xf32>
    %65 = tpu.matmul %61, %64, %cst_46 {dimension_numbers = #tpu.dot_dimension_numbers<[1], [0], [0], [1], [0, 0, 1, 1], [], []>} : vector<16x48xbf16>, vector<48x32xbf16>, vector<16x32xf32> -> vector<16x32xf32>
    %c1_47 = arith.constant 1 : index
    %c0_48 = arith.constant 0 : index
    %c0_49 = arith.constant 0 : index
    %66 = vector.load %arg8[%c1_47, %c0_48, %c0_49] : memref<2x1x32xf32, #tpu.memory_space<vmem>>, vector<1x1x32xf32>
    %67 = vector.shape_cast %66 : vector<1x1x32xf32> to vector<1x32xf32>
    %68 = vector.broadcast %67 : vector<1x32xf32> to vector<16x32xf32>
    %69 = arith.addf %65, %68 : vector<16x32xf32>
    %70 = vector.extract_strided_slice %69 {offsets = [0, 0], sizes = [16, 16], strides = [1, 1]} : vector<16x32xf32> to vector<16x16xf32>
    %71 = math.tanh %70 : vector<16x16xf32>
    %72 = vector.extract_strided_slice %69 {offsets = [0, 16], sizes = [16, 16], strides = [1, 1]} : vector<16x32xf32> to vector<16x16xf32>
    %73 = arith.negf %72 : vector<16x16xf32>
    %74 = math.exp %73 : vector<16x16xf32>
    %cst_50 = arith.constant 1.000000e+00 : f32
    %75 = vector.broadcast %cst_50 : f32 to vector<16x16xf32>
    %76 = arith.addf %75, %74 : vector<16x16xf32>
    %77 = arith.divf %75, %76 : vector<16x16xf32>
    %78 = arith.mulf %71, %77 : vector<16x16xf32>
    %79 = arith.truncf %78 : vector<16x16xf32> to vector<16x16xbf16>
    %c1_51 = arith.constant 1 : index
    %c0_52 = arith.constant 0 : index
    %c0_53 = arith.constant 0 : index
    %80 = vector.load %arg9[%c1_51, %c0_52, %c0_53] : memref<2x16x32xf32, #tpu.memory_space<vmem>>, vector<1x16x32xf32>
    %81 = vector.shape_cast %80 : vector<1x16x32xf32> to vector<16x32xf32>
    %82 = arith.truncf %81 : vector<16x32xf32> to vector<16x32xbf16>
    %cst_54 = arith.constant dense<0.000000e+00> : vector<16x32xf32>
    %83 = tpu.matmul %79, %82, %cst_54 {dimension_numbers = #tpu.dot_dimension_numbers<[1], [0], [0], [1], [0, 0, 1, 1], [], []>} : vector<16x16xbf16>, vector<16x32xbf16>, vector<16x32xf32> -> vector<16x32xf32>
    %c1_55 = arith.constant 1 : index
    %c0_56 = arith.constant 0 : index
    %c0_57 = arith.constant 0 : index
    %84 = vector.load %arg10[%c1_55, %c0_56, %c0_57] : memref<2x1x32xf32, #tpu.memory_space<vmem>>, vector<1x1x32xf32>
    %85 = vector.shape_cast %84 : vector<1x1x32xf32> to vector<1x32xf32>
    %86 = vector.broadcast %85 : vector<1x32xf32> to vector<16x32xf32>
    %87 = arith.addf %83, %86 : vector<16x32xf32>
    %88 = vector.extract_strided_slice %87 {offsets = [0, 16], sizes = [16, 16], strides = [1, 1]} : vector<16x32xf32> to vector<16x16xf32>
    %89 = arith.addf %53, %88 : vector<16x16xf32>
    %cst_58 = arith.constant 0.000000e+00 : f32
    %90 = vector.broadcast %cst_58 : f32 to vector<16x16xf32>
    %91 = arith.maximumf %89, %90 : vector<16x16xf32>
    %c0_59 = arith.constant 0 : index
    %c0_60 = arith.constant 0 : index
    %92 = vector.load %arg11[%c0_59, %c0_60] : memref<16x16xf32, #tpu.memory_space<vmem>>, vector<16x16xf32>
    %cst_61 = arith.constant dense<0.000000e+00> : vector<16x16xf32>
    %93 = tpu.matmul %91, %92, %cst_61 {dimension_numbers = #tpu.dot_dimension_numbers<[1], [0], [0], [1], [0, 0, 1, 1], [], []>} : vector<16x16xf32>, vector<16x16xf32>, vector<16x16xf32> -> vector<16x16xf32>
    %c0_62 = arith.constant 0 : index
    %c0_63 = arith.constant 0 : index
    %94 = vector.load %arg12[%c0_62, %c0_63] : memref<1x16xf32, #tpu.memory_space<vmem>>, vector<1x16xf32>
    %95 = vector.broadcast %94 : vector<1x16xf32> to vector<16x16xf32>
    %96 = arith.addf %93, %95 : vector<16x16xf32>
    %c0_64 = arith.constant 0 : index
    %c0_65 = arith.constant 0 : index
    %c0_66 = arith.constant 0 : index
    %97 = vector.load %arg13[%c0_64, %c0_65, %c0_66] : memref<1x16x16xf32, #tpu.memory_space<vmem>>, vector<1x16x16xf32>
    %98 = vector.shape_cast %97 : vector<1x16x16xf32> to vector<16x16xf32>
    %99 = vector.shape_cast %96 : vector<16x16xf32> to vector<1x16x16xf32>
    tpu.vector_store %arg13[%c0_64, %c0_65, %c0_66], %99 {strides = array<i32>} : memref<1x16x16xf32, #tpu.memory_space<vmem>>, vector<1x16x16xf32>,
    return
  }
  func.func @transform_0(%arg0: i32) -> (i32, i32, i32) {
    %c0_i32 = arith.constant 0 : i32
    %c0_i32_0 = arith.constant 0 : i32
    %c0_i32_1 = arith.constant 0 : i32
    return %arg0, %c0_i32, %c0_i32_0 : i32, i32, i32
  }
  func.func @transform_1(%arg0: i32) -> (i32, i32, i32) {
    %c0_i32 = arith.constant 0 : i32
    %c0_i32_0 = arith.constant 0 : i32
    %c0_i32_1 = arith.constant 0 : i32
    return %arg0, %c0_i32, %c0_i32_0 : i32, i32, i32
  }
  func.func @transform_2(%arg0: i32) -> (i32, i32) {
    %c0_i32 = arith.constant 0 : i32
    %c0_i32_0 = arith.constant 0 : i32
    %c0_i32_1 = arith.constant 0 : i32
    return %c0_i32, %c0_i32_0 : i32, i32
  }
  func.func @transform_3(%arg0: i32) -> (i32, i32) {
    %c0_i32 = arith.constant 0 : i32
    %c0_i32_0 = arith.constant 0 : i32
    %c0_i32_1 = arith.constant 0 : i32
    return %c0_i32, %c0_i32_0 : i32, i32
  }
  func.func @transform_4(%arg0: i32) -> (i32, i32) {
    %c0_i32 = arith.constant 0 : i32
    %c0_i32_0 = arith.constant 0 : i32
    %c0_i32_1 = arith.constant 0 : i32
    return %c0_i32, %c0_i32_0 : i32, i32
  }
  func.func @transform_5(%arg0: i32) -> (i32, i32) {
    %c0_i32 = arith.constant 0 : i32
    %c0_i32_0 = arith.constant 0 : i32
    %c0_i32_1 = arith.constant 0 : i32
    return %c0_i32, %c0_i32_0 : i32, i32
  }
  func.func @transform_6(%arg0: i32) -> (i32, i32, i32) {
    %c0_i32 = arith.constant 0 : i32
    %c0_i32_0 = arith.constant 0 : i32
    %c0_i32_1 = arith.constant 0 : i32
    %c0_i32_2 = arith.constant 0 : i32
    return %c0_i32, %c0_i32_0, %c0_i32_1 : i32, i32, i32
  }
  func.func @transform_7(%arg0: i32) -> (i32, i32, i32) {
    %c0_i32 = arith.constant 0 : i32
    %c0_i32_0 = arith.constant 0 : i32
    %c0_i32_1 = arith.constant 0 : i32
    %c0_i32_2 = arith.constant 0 : i32
    return %c0_i32, %c0_i32_0, %c0_i32_1 : i32, i32, i32
  }
  func.func @transform_8(%arg0: i32) -> (i32, i32, i32) {
    %c0_i32 = arith.constant 0 : i32
    %c0_i32_0 = arith.constant 0 : i32
    %c0_i32_1 = arith.constant 0 : i32
    %c0_i32_2 = arith.constant 0 : i32
    return %c0_i32, %c0_i32_0, %c0_i32_1 : i32, i32, i32
  }
  func.func @transform_9(%arg0: i32) -> (i32, i32, i32) {
    %c0_i32 = arith.constant 0 : i32
    %c0_i32_0 = arith.constant 0 : i32
    %c0_i32_1 = arith.constant 0 : i32
    %c0_i32_2 = arith.constant 0 : i32
    return %c0_i32, %c0_i32_0, %c0_i32_1 : i32, i32, i32
  }
  func.func @transform_10(%arg0: i32) -> (i32, i32) {
    %c0_i32 = arith.constant 0 : i32
    %c0_i32_0 = arith.constant 0 : i32
    %c0_i32_1 = arith.constant 0 : i32
    return %c0_i32, %c0_i32_0 : i32, i32
  }
  func.func @transform_11(%arg0: i32) -> (i32, i32) {
    %c0_i32 = arith.constant 0 : i32
    %c0_i32_0 = arith.constant 0 : i32
    %c0_i32_1 = arith.constant 0 : i32
    return %c0_i32, %c0_i32_0 : i32, i32
  }
  func.func @transform_12(%arg0: i32) -> (i32, i32, i32) {
    %c0_i32 = arith.constant 0 : i32
    %c0_i32_0 = arith.constant 0 : i32
    %c0_i32_1 = arith.constant 0 : i32
    return %arg0, %c0_i32, %c0_i32_0 : i32, i32, i32
  }
}

module attributes {stable_mosaic.version = 11 : i64} {
  func.func @_down_block_kernel(%arg0: i32, %arg1: memref<1x8x32xf32, #tpu.memory_space<vmem>>, %arg2: memref<1x1x32xf32, #tpu.memory_space<vmem>>, %arg3: memref<96x64xf32, #tpu.memory_space<vmem>>, %arg4: memref<1x64xf32, #tpu.memory_space<vmem>>, %arg5: memref<32x64xf32, #tpu.memory_space<vmem>>, %arg6: memref<1x64xf32, #tpu.memory_space<vmem>>, %arg7: memref<192x64xf32, #tpu.memory_space<vmem>>, %arg8: memref<1x64xf32, #tpu.memory_space<vmem>>, %arg9: memref<256x64xf32, #tpu.memory_space<vmem>>, %arg10: memref<1x64xf32, #tpu.memory_space<vmem>>, %arg11: memref<1x4x64xf32, #tpu.memory_space<vmem>>, %arg12: memref<24x32xf32, #tpu.memory_space<vmem>>, %arg13: memref<24x64xf32, #tpu.memory_space<vmem>>) attributes {dimension_semantics = [#tpu.dimension_semantics<parallel>], iteration_bounds = array<i64: 2>, scalar_prefetch = 0 : i64, scratch_operands = 2 : i64, tpu.core_type = #tpu.core_type<tc>, window_params = [{transform_indices = @transform_0, window_bounds = array<i64: 1, 8, 32>}, {transform_indices = @transform_1, window_bounds = array<i64: 1, 1, 32>}, {pipeline_mode = #tpu.pipeline_mode<synchronous>, transform_indices = @transform_2, window_bounds = array<i64: 96, 64>}, {pipeline_mode = #tpu.pipeline_mode<synchronous>, transform_indices = @transform_3, window_bounds = array<i64: 1, 64>}, {pipeline_mode = #tpu.pipeline_mode<synchronous>, transform_indices = @transform_4, window_bounds = array<i64: 32, 64>}, {pipeline_mode = #tpu.pipeline_mode<synchronous>, transform_indices = @transform_5, window_bounds = array<i64: 1, 64>}, {pipeline_mode = #tpu.pipeline_mode<synchronous>, transform_indices = @transform_6, window_bounds = array<i64: 192, 64>}, {pipeline_mode = #tpu.pipeline_mode<synchronous>, transform_indices = @transform_7, window_bounds = array<i64: 1, 64>}, {pipeline_mode = #tpu.pipeline_mode<synchronous>, transform_indices = @transform_8, window_bounds = array<i64: 256, 64>}, {pipeline_mode = #tpu.pipeline_mode<synchronous>, transform_indices = @transform_9, window_bounds = array<i64: 1, 64>}, {transform_indices = @transform_10, window_bounds = array<i64: 1, 4, 64>}]} {
    %cst = arith.constant 0.000000e+00 : f32
    %0 = vector.broadcast %cst : f32 to vector<24x32xf32>
    %c0 = arith.constant 0 : index
    %c0_0 = arith.constant 0 : index
    %1 = vector.load %arg12[%c0, %c0_0] : memref<24x32xf32, #tpu.memory_space<vmem>>, vector<24x32xf32>
    tpu.vector_store %arg12[%c0, %c0_0], %0 {strides = array<i32>} : memref<24x32xf32, #tpu.memory_space<vmem>>, vector<24x32xf32>,
    %cst_1 = arith.constant 0.000000e+00 : f32
    %2 = vector.broadcast %cst_1 : f32 to vector<24x64xf32>
    %c0_2 = arith.constant 0 : index
    %c0_3 = arith.constant 0 : index
    %3 = vector.load %arg13[%c0_2, %c0_3] : memref<24x64xf32, #tpu.memory_space<vmem>>, vector<24x64xf32>
    tpu.vector_store %arg13[%c0_2, %c0_3], %2 {strides = array<i32>} : memref<24x64xf32, #tpu.memory_space<vmem>>, vector<24x64xf32>,
    %c0_4 = arith.constant 0 : index
    %c0_5 = arith.constant 0 : index
    %c0_6 = arith.constant 0 : index
    %4 = vector.load %arg1[%c0_4, %c0_5, %c0_6] : memref<1x8x32xf32, #tpu.memory_space<vmem>>, vector<1x8x32xf32>
    %5 = vector.shape_cast %4 : vector<1x8x32xf32> to vector<8x32xf32>
    %c8 = arith.constant 8 : index
    %c0_7 = arith.constant 0 : index
    %6 = vector.load %arg12[%c8, %c0_7] : memref<24x32xf32, #tpu.memory_space<vmem>>, vector<8x32xf32>
    tpu.vector_store %arg12[%c8, %c0_7], %5 {strides = array<i32>} : memref<24x32xf32, #tpu.memory_space<vmem>>, vector<8x32xf32>,
    %c0_8 = arith.constant 0 : index
    %c0_9 = arith.constant 0 : index
    %c0_10 = arith.constant 0 : index
    %7 = vector.load %arg2[%c0_8, %c0_9, %c0_10] : memref<1x1x32xf32, #tpu.memory_space<vmem>>, vector<1x1x32xf32>
    %8 = vector.shape_cast %7 : vector<1x1x32xf32> to vector<1x32xf32>
    %c0_11 = arith.constant 0 : index
    %c0_12 = arith.constant 0 : index
    %9 = vector.load %arg5[%c0_11, %c0_12] : memref<32x64xf32, #tpu.memory_space<vmem>>, vector<32x64xf32>
    %cst_13 = arith.constant dense<0.000000e+00> : vector<1x64xf32>
    %10 = tpu.matmul %8, %9, %cst_13 {dimension_numbers = #tpu.dot_dimension_numbers<[1], [0], [0], [1], [0, 0, 1, 1], [], []>} : vector<1x32xf32>, vector<32x64xf32>, vector<1x64xf32> -> vector<1x64xf32>
    %c0_14 = arith.constant 0 : index
    %c0_15 = arith.constant 0 : index
    %11 = vector.load %arg6[%c0_14, %c0_15] : memref<1x64xf32, #tpu.memory_space<vmem>>, vector<1x64xf32>
    %12 = arith.addf %10, %11 : vector<1x64xf32>
    %cst_16 = arith.constant 0.000000e+00 : f32
    %13 = vector.broadcast %cst_16 : f32 to vector<1x64xf32>
    %14 = arith.maximumf %12, %13 : vector<1x64xf32>
    %c7 = arith.constant 7 : index
    %c0_17 = arith.constant 0 : index
    %15 = vector.load %arg12[%c7, %c0_17] : memref<24x32xf32, #tpu.memory_space<vmem>>, vector<8x32xf32>
    %c8_18 = arith.constant 8 : index
    %c0_19 = arith.constant 0 : index
    %16 = vector.load %arg12[%c8_18, %c0_19] : memref<24x32xf32, #tpu.memory_space<vmem>>, vector<8x32xf32>
    %c9 = arith.constant 9 : index
    %c0_20 = arith.constant 0 : index
    %17 = vector.load %arg12[%c9, %c0_20] : memref<24x32xf32, #tpu.memory_space<vmem>>, vector<8x32xf32>
    %18 = tpu.concatenate %15, %16, %17 in 1 : vector<8x32xf32>, vector<8x32xf32>, vector<8x32xf32> -> vector<8x96xf32>
    %19 = arith.truncf %18 : vector<8x96xf32> to vector<8x96xbf16>
    %c0_21 = arith.constant 0 : index
    %c0_22 = arith.constant 0 : index
    %20 = vector.load %arg3[%c0_21, %c0_22] : memref<96x64xf32, #tpu.memory_space<vmem>>, vector<96x64xf32>
    %21 = arith.truncf %20 : vector<96x64xf32> to vector<96x64xbf16>
    %cst_23 = arith.constant dense<0.000000e+00> : vector<8x64xf32>
    %22 = tpu.matmul %19, %21, %cst_23 {dimension_numbers = #tpu.dot_dimension_numbers<[1], [0], [0], [1], [0, 0, 1, 1], [], []>} : vector<8x96xbf16>, vector<96x64xbf16>, vector<8x64xf32> -> vector<8x64xf32>
    %c0_24 = arith.constant 0 : index
    %c0_25 = arith.constant 0 : index
    %23 = vector.load %arg4[%c0_24, %c0_25] : memref<1x64xf32, #tpu.memory_space<vmem>>, vector<1x64xf32>
    %24 = vector.broadcast %23 : vector<1x64xf32> to vector<8x64xf32>
    %25 = arith.addf %22, %24 : vector<8x64xf32>
    %cst_26 = arith.constant 0.000000e+00 : f32
    %26 = vector.broadcast %cst_26 : f32 to vector<8x64xf32>
    %27 = arith.maximumf %25, %26 : vector<8x64xf32>
    %28 = vector.broadcast %14 : vector<1x64xf32> to vector<8x64xf32>
    %29 = arith.addf %27, %28 : vector<8x64xf32>
    %c8_27 = arith.constant 8 : index
    %c0_28 = arith.constant 0 : index
    %30 = vector.load %arg13[%c8_27, %c0_28] : memref<24x64xf32, #tpu.memory_space<vmem>>, vector<8x64xf32>
    tpu.vector_store %arg13[%c8_27, %c0_28], %29 {strides = array<i32>} : memref<24x64xf32, #tpu.memory_space<vmem>>, vector<8x64xf32>,
    %c7_29 = arith.constant 7 : index
    %c0_30 = arith.constant 0 : index
    %31 = vector.load %arg13[%c7_29, %c0_30] : memref<24x64xf32, #tpu.memory_space<vmem>>, vector<8x64xf32>
    %c8_31 = arith.constant 8 : index
    %c0_32 = arith.constant 0 : index
    %32 = vector.load %arg13[%c8_31, %c0_32] : memref<24x64xf32, #tpu.memory_space<vmem>>, vector<8x64xf32>
    %c9_33 = arith.constant 9 : index
    %c0_34 = arith.constant 0 : index
    %33 = vector.load %arg13[%c9_33, %c0_34] : memref<24x64xf32, #tpu.memory_space<vmem>>, vector<8x64xf32>
    %34 = tpu.concatenate %31, %32, %33 in 1 : vector<8x64xf32>, vector<8x64xf32>, vector<8x64xf32> -> vector<8x192xf32>
    %35 = arith.truncf %34 : vector<8x192xf32> to vector<8x192xbf16>
    %c0_35 = arith.constant 0 : index
    %c0_36 = arith.constant 0 : index
    %36 = vector.load %arg7[%c0_35, %c0_36] : memref<192x64xf32, #tpu.memory_space<vmem>>, vector<192x64xf32>
    %37 = arith.truncf %36 : vector<192x64xf32> to vector<192x64xbf16>
    %cst_37 = arith.constant dense<0.000000e+00> : vector<8x64xf32>
    %38 = tpu.matmul %35, %37, %cst_37 {dimension_numbers = #tpu.dot_dimension_numbers<[1], [0], [0], [1], [0, 0, 1, 1], [], []>} : vector<8x192xbf16>, vector<192x64xbf16>, vector<8x64xf32> -> vector<8x64xf32>
    %c0_38 = arith.constant 0 : index
    %c0_39 = arith.constant 0 : index
    %39 = vector.load %arg8[%c0_38, %c0_39] : memref<1x64xf32, #tpu.memory_space<vmem>>, vector<1x64xf32>
    %40 = vector.broadcast %39 : vector<1x64xf32> to vector<8x64xf32>
    %41 = arith.addf %38, %40 : vector<8x64xf32>
    %cst_40 = arith.constant 0.000000e+00 : f32
    %42 = vector.broadcast %cst_40 : f32 to vector<8x64xf32>
    %43 = arith.maximumf %41, %42 : vector<8x64xf32>
    %c8_41 = arith.constant 8 : index
    %c0_42 = arith.constant 0 : index
    %44 = vector.load %arg13[%c8_41, %c0_42] : memref<24x64xf32, #tpu.memory_space<vmem>>, vector<8x64xf32>
    tpu.vector_store %arg13[%c8_41, %c0_42], %43 {strides = array<i32>} : memref<24x64xf32, #tpu.memory_space<vmem>>, vector<8x64xf32>,
    %c7_43 = arith.constant 7 : index
    %c0_44 = arith.constant 0 : index
    %45 = tpu.strided_load %arg13[%c7_43, %c0_44] {strides = array<i32: 2, 1>} : memref<24x64xf32, #tpu.memory_space<vmem>>, vector<4x64xf32>
    %c8_45 = arith.constant 8 : index
    %c0_46 = arith.constant 0 : index
    %46 = tpu.strided_load %arg13[%c8_45, %c0_46] {strides = array<i32: 2, 1>} : memref<24x64xf32, #tpu.memory_space<vmem>>, vector<4x64xf32>
    %c9_47 = arith.constant 9 : index
    %c0_48 = arith.constant 0 : index
    %47 = tpu.strided_load %arg13[%c9_47, %c0_48] {strides = array<i32: 2, 1>} : memref<24x64xf32, #tpu.memory_space<vmem>>, vector<4x64xf32>
    %c10 = arith.constant 10 : index
    %c0_49 = arith.constant 0 : index
    %48 = tpu.strided_load %arg13[%c10, %c0_49] {strides = array<i32: 2, 1>} : memref<24x64xf32, #tpu.memory_space<vmem>>, vector<4x64xf32>
    %49 = tpu.concatenate %45, %46, %47, %48 in 1 : vector<4x64xf32>, vector<4x64xf32>, vector<4x64xf32>, vector<4x64xf32> -> vector<4x256xf32>
    %50 = arith.truncf %49 : vector<4x256xf32> to vector<4x256xbf16>
    %c0_50 = arith.constant 0 : index
    %c0_51 = arith.constant 0 : index
    %51 = vector.load %arg9[%c0_50, %c0_51] : memref<256x64xf32, #tpu.memory_space<vmem>>, vector<256x64xf32>
    %52 = arith.truncf %51 : vector<256x64xf32> to vector<256x64xbf16>
    %cst_52 = arith.constant dense<0.000000e+00> : vector<4x64xf32>
    %53 = tpu.matmul %50, %52, %cst_52 {dimension_numbers = #tpu.dot_dimension_numbers<[1], [0], [0], [1], [0, 0, 1, 1], [], []>} : vector<4x256xbf16>, vector<256x64xbf16>, vector<4x64xf32> -> vector<4x64xf32>
    %c0_53 = arith.constant 0 : index
    %c0_54 = arith.constant 0 : index
    %54 = vector.load %arg10[%c0_53, %c0_54] : memref<1x64xf32, #tpu.memory_space<vmem>>, vector<1x64xf32>
    %55 = vector.broadcast %54 : vector<1x64xf32> to vector<4x64xf32>
    %56 = arith.addf %53, %55 : vector<4x64xf32>
    %c0_55 = arith.constant 0 : index
    %c0_56 = arith.constant 0 : index
    %c0_57 = arith.constant 0 : index
    %57 = vector.load %arg11[%c0_55, %c0_56, %c0_57] : memref<1x4x64xf32, #tpu.memory_space<vmem>>, vector<1x4x64xf32>
    %58 = vector.shape_cast %57 : vector<1x4x64xf32> to vector<4x64xf32>
    %59 = vector.shape_cast %56 : vector<4x64xf32> to vector<1x4x64xf32>
    tpu.vector_store %arg11[%c0_55, %c0_56, %c0_57], %59 {strides = array<i32>} : memref<1x4x64xf32, #tpu.memory_space<vmem>>, vector<1x4x64xf32>,
    return
  }
  func.func @transform_0(%arg0: i32) -> (i32, i32, i32) {
    %c0_i32 = arith.constant 0 : i32
    %c0_i32_0 = arith.constant 0 : i32
    %c0_i32_1 = arith.constant 0 : i32
    return %arg0, %c0_i32, %c0_i32_0 : i32, i32, i32
  }
  func.func @transform_1(%arg0: i32) -> (i32, i32, i32) {
    %c0_i32 = arith.constant 0 : i32
    %c0_i32_0 = arith.constant 0 : i32
    %c0_i32_1 = arith.constant 0 : i32
    return %arg0, %c0_i32, %c0_i32_0 : i32, i32, i32
  }
  func.func @transform_2(%arg0: i32) -> (i32, i32) {
    %c0_i32 = arith.constant 0 : i32
    %c0_i32_0 = arith.constant 0 : i32
    %c0_i32_1 = arith.constant 0 : i32
    return %c0_i32, %c0_i32_0 : i32, i32
  }
  func.func @transform_3(%arg0: i32) -> (i32, i32) {
    %c0_i32 = arith.constant 0 : i32
    %c0_i32_0 = arith.constant 0 : i32
    %c0_i32_1 = arith.constant 0 : i32
    return %c0_i32, %c0_i32_0 : i32, i32
  }
  func.func @transform_4(%arg0: i32) -> (i32, i32) {
    %c0_i32 = arith.constant 0 : i32
    %c0_i32_0 = arith.constant 0 : i32
    %c0_i32_1 = arith.constant 0 : i32
    return %c0_i32, %c0_i32_0 : i32, i32
  }
  func.func @transform_5(%arg0: i32) -> (i32, i32) {
    %c0_i32 = arith.constant 0 : i32
    %c0_i32_0 = arith.constant 0 : i32
    %c0_i32_1 = arith.constant 0 : i32
    return %c0_i32, %c0_i32_0 : i32, i32
  }
  func.func @transform_6(%arg0: i32) -> (i32, i32) {
    %c0_i32 = arith.constant 0 : i32
    %c0_i32_0 = arith.constant 0 : i32
    %c0_i32_1 = arith.constant 0 : i32
    return %c0_i32, %c0_i32_0 : i32, i32
  }
  func.func @transform_7(%arg0: i32) -> (i32, i32) {
    %c0_i32 = arith.constant 0 : i32
    %c0_i32_0 = arith.constant 0 : i32
    %c0_i32_1 = arith.constant 0 : i32
    return %c0_i32, %c0_i32_0 : i32, i32
  }
  func.func @transform_8(%arg0: i32) -> (i32, i32) {
    %c0_i32 = arith.constant 0 : i32
    %c0_i32_0 = arith.constant 0 : i32
    %c0_i32_1 = arith.constant 0 : i32
    return %c0_i32, %c0_i32_0 : i32, i32
  }
  func.func @transform_9(%arg0: i32) -> (i32, i32) {
    %c0_i32 = arith.constant 0 : i32
    %c0_i32_0 = arith.constant 0 : i32
    %c0_i32_1 = arith.constant 0 : i32
    return %c0_i32, %c0_i32_0 : i32, i32
  }
  func.func @transform_10(%arg0: i32) -> (i32, i32, i32) {
    %c0_i32 = arith.constant 0 : i32
    %c0_i32_0 = arith.constant 0 : i32
    %c0_i32_1 = arith.constant 0 : i32
    return %arg0, %c0_i32, %c0_i32_0 : i32, i32, i32
  }
}

module attributes {stable_mosaic.version = 11 : i64} {
  func.func @_up_block_kernel(%arg0: i32, %arg1: memref<1x4x64xf32, #tpu.memory_space<vmem>>, %arg2: memref<1x4x64xf32, #tpu.memory_space<vmem>>, %arg3: memref<1x1x32xf32, #tpu.memory_space<vmem>>, %arg4: memref<384x32xf32, #tpu.memory_space<vmem>>, %arg5: memref<1x32xf32, #tpu.memory_space<vmem>>, %arg6: memref<32x32xf32, #tpu.memory_space<vmem>>, %arg7: memref<1x32xf32, #tpu.memory_space<vmem>>, %arg8: memref<96x32xf32, #tpu.memory_space<vmem>>, %arg9: memref<1x32xf32, #tpu.memory_space<vmem>>, %arg10: memref<64x32xf32, #tpu.memory_space<vmem>>, %arg11: memref<64x32xf32, #tpu.memory_space<vmem>>, %arg12: memref<1x32xf32, #tpu.memory_space<vmem>>, %arg13: memref<1x4x64xf32, #tpu.memory_space<vmem>>, %arg14: memref<20x128xf32, #tpu.memory_space<vmem>>, %arg15: memref<20x32xf32, #tpu.memory_space<vmem>>) attributes {dimension_semantics = [#tpu.dimension_semantics<parallel>], iteration_bounds = array<i64: 2>, scalar_prefetch = 0 : i64, scratch_operands = 2 : i64, tpu.core_type = #tpu.core_type<tc>, window_params = [{transform_indices = @transform_0, window_bounds = array<i64: 1, 4, 64>}, {transform_indices = @transform_1, window_bounds = array<i64: 1, 4, 64>}, {transform_indices = @transform_2, window_bounds = array<i64: 1, 1, 32>}, {pipeline_mode = #tpu.pipeline_mode<synchronous>, transform_indices = @transform_3, window_bounds = array<i64: 384, 32>}, {pipeline_mode = #tpu.pipeline_mode<synchronous>, transform_indices = @transform_4, window_bounds = array<i64: 1, 32>}, {pipeline_mode = #tpu.pipeline_mode<synchronous>, transform_indices = @transform_5, window_bounds = array<i64: 32, 32>}, {pipeline_mode = #tpu.pipeline_mode<synchronous>, transform_indices = @transform_6, window_bounds = array<i64: 1, 32>}, {pipeline_mode = #tpu.pipeline_mode<synchronous>, transform_indices = @transform_7, window_bounds = array<i64: 96, 32>}, {pipeline_mode = #tpu.pipeline_mode<synchronous>, transform_indices = @transform_8, window_bounds = array<i64: 1, 32>}, {pipeline_mode = #tpu.pipeline_mode<synchronous>, transform_indices = @transform_9, window_bounds = array<i64: 64, 32>}, {pipeline_mode = #tpu.pipeline_mode<synchronous>, transform_indices = @transform_10, window_bounds = array<i64: 64, 32>}, {pipeline_mode = #tpu.pipeline_mode<synchronous>, transform_indices = @transform_11, window_bounds = array<i64: 1, 32>}, {transform_indices = @transform_12, window_bounds = array<i64: 1, 4, 64>}]} {
    %cst = arith.constant 0.000000e+00 : f32
    %0 = vector.broadcast %cst : f32 to vector<20x128xf32>
    %c0 = arith.constant 0 : index
    %c0_0 = arith.constant 0 : index
    %1 = vector.load %arg14[%c0, %c0_0] : memref<20x128xf32, #tpu.memory_space<vmem>>, vector<20x128xf32>
    tpu.vector_store %arg14[%c0, %c0_0], %0 {strides = array<i32>} : memref<20x128xf32, #tpu.memory_space<vmem>>, vector<20x128xf32>,
    %cst_1 = arith.constant 0.000000e+00 : f32
    %2 = vector.broadcast %cst_1 : f32 to vector<20x32xf32>
    %c0_2 = arith.constant 0 : index
    %c0_3 = arith.constant 0 : index
    %3 = vector.load %arg15[%c0_2, %c0_3] : memref<20x32xf32, #tpu.memory_space<vmem>>, vector<20x32xf32>
    tpu.vector_store %arg15[%c0_2, %c0_3], %2 {strides = array<i32>} : memref<20x32xf32, #tpu.memory_space<vmem>>, vector<20x32xf32>,
    %c0_4 = arith.constant 0 : index
    %c0_5 = arith.constant 0 : index
    %c0_6 = arith.constant 0 : index
    %4 = vector.load %arg1[%c0_4, %c0_5, %c0_6] : memref<1x4x64xf32, #tpu.memory_space<vmem>>, vector<1x4x64xf32>
    %5 = vector.shape_cast %4 : vector<1x4x64xf32> to vector<4x64xf32>
    %c0_7 = arith.constant 0 : index
    %c0_8 = arith.constant 0 : index
    %c0_9 = arith.constant 0 : index
    %6 = vector.load %arg2[%c0_7, %c0_8, %c0_9] : memref<1x4x64xf32, #tpu.memory_space<vmem>>, vector<1x4x64xf32>
    %7 = vector.shape_cast %6 : vector<1x4x64xf32> to vector<4x64xf32>
    %8 = tpu.concatenate %5, %7 in 1 : vector<4x64xf32>, vector<4x64xf32> -> vector<4x128xf32>
    %c8 = arith.constant 8 : index
    %c0_10 = arith.constant 0 : index
    %9 = vector.load %arg14[%c8, %c0_10] : memref<20x128xf32, #tpu.memory_space<vmem>>, vector<4x128xf32>
    tpu.vector_store %arg14[%c8, %c0_10], %8 {strides = array<i32>} : memref<20x128xf32, #tpu.memory_space<vmem>>, vector<4x128xf32>,
    %c0_11 = arith.constant 0 : index
    %c0_12 = arith.constant 0 : index
    %c0_13 = arith.constant 0 : index
    %10 = vector.load %arg3[%c0_11, %c0_12, %c0_13] : memref<1x1x32xf32, #tpu.memory_space<vmem>>, vector<1x1x32xf32>
    %11 = vector.shape_cast %10 : vector<1x1x32xf32> to vector<1x32xf32>
    %c0_14 = arith.constant 0 : index
    %c0_15 = arith.constant 0 : index
    %12 = vector.load %arg6[%c0_14, %c0_15] : memref<32x32xf32, #tpu.memory_space<vmem>>, vector<32x32xf32>
    %cst_16 = arith.constant dense<0.000000e+00> : vector<1x32xf32>
    %13 = tpu.matmul %11, %12, %cst_16 {dimension_numbers = #tpu.dot_dimension_numbers<[1], [0], [0], [1], [0, 0, 1, 1], [], []>} : vector<1x32xf32>, vector<32x32xf32>, vector<1x32xf32> -> vector<1x32xf32>
    %c0_17 = arith.constant 0 : index
    %c0_18 = arith.constant 0 : index
    %14 = vector.load %arg7[%c0_17, %c0_18] : memref<1x32xf32, #tpu.memory_space<vmem>>, vector<1x32xf32>
    %15 = arith.addf %13, %14 : vector<1x32xf32>
    %cst_19 = arith.constant 0.000000e+00 : f32
    %16 = vector.broadcast %cst_19 : f32 to vector<1x32xf32>
    %17 = arith.maximumf %15, %16 : vector<1x32xf32>
    %c7 = arith.constant 7 : index
    %c0_20 = arith.constant 0 : index
    %18 = vector.load %arg14[%c7, %c0_20] : memref<20x128xf32, #tpu.memory_space<vmem>>, vector<4x128xf32>
    %c8_21 = arith.constant 8 : index
    %c0_22 = arith.constant 0 : index
    %19 = vector.load %arg14[%c8_21, %c0_22] : memref<20x128xf32, #tpu.memory_space<vmem>>, vector<4x128xf32>
    %c9 = arith.constant 9 : index
    %c0_23 = arith.constant 0 : index
    %20 = vector.load %arg14[%c9, %c0_23] : memref<20x128xf32, #tpu.memory_space<vmem>>, vector<4x128xf32>
    %21 = tpu.concatenate %18, %19, %20 in 1 : vector<4x128xf32>, vector<4x128xf32>, vector<4x128xf32> -> vector<4x384xf32>
    %22 = arith.truncf %21 : vector<4x384xf32> to vector<4x384xbf16>
    %c0_24 = arith.constant 0 : index
    %c0_25 = arith.constant 0 : index
    %23 = vector.load %arg4[%c0_24, %c0_25] : memref<384x32xf32, #tpu.memory_space<vmem>>, vector<384x32xf32>
    %24 = arith.truncf %23 : vector<384x32xf32> to vector<384x32xbf16>
    %cst_26 = arith.constant dense<0.000000e+00> : vector<4x32xf32>
    %25 = tpu.matmul %22, %24, %cst_26 {dimension_numbers = #tpu.dot_dimension_numbers<[1], [0], [0], [1], [0, 0, 1, 1], [], []>} : vector<4x384xbf16>, vector<384x32xbf16>, vector<4x32xf32> -> vector<4x32xf32>
    %c0_27 = arith.constant 0 : index
    %c0_28 = arith.constant 0 : index
    %26 = vector.load %arg5[%c0_27, %c0_28] : memref<1x32xf32, #tpu.memory_space<vmem>>, vector<1x32xf32>
    %27 = vector.broadcast %26 : vector<1x32xf32> to vector<4x32xf32>
    %28 = arith.addf %25, %27 : vector<4x32xf32>
    %cst_29 = arith.constant 0.000000e+00 : f32
    %29 = vector.broadcast %cst_29 : f32 to vector<4x32xf32>
    %30 = arith.maximumf %28, %29 : vector<4x32xf32>
    %31 = vector.broadcast %17 : vector<1x32xf32> to vector<4x32xf32>
    %32 = arith.addf %30, %31 : vector<4x32xf32>
    %c8_30 = arith.constant 8 : index
    %c0_31 = arith.constant 0 : index
    %33 = vector.load %arg15[%c8_30, %c0_31] : memref<20x32xf32, #tpu.memory_space<vmem>>, vector<4x32xf32>
    tpu.vector_store %arg15[%c8_30, %c0_31], %32 {strides = array<i32>} : memref<20x32xf32, #tpu.memory_space<vmem>>, vector<4x32xf32>,
    %c7_32 = arith.constant 7 : index
    %c0_33 = arith.constant 0 : index
    %34 = vector.load %arg15[%c7_32, %c0_33] : memref<20x32xf32, #tpu.memory_space<vmem>>, vector<4x32xf32>
    %c8_34 = arith.constant 8 : index
    %c0_35 = arith.constant 0 : index
    %35 = vector.load %arg15[%c8_34, %c0_35] : memref<20x32xf32, #tpu.memory_space<vmem>>, vector<4x32xf32>
    %c9_36 = arith.constant 9 : index
    %c0_37 = arith.constant 0 : index
    %36 = vector.load %arg15[%c9_36, %c0_37] : memref<20x32xf32, #tpu.memory_space<vmem>>, vector<4x32xf32>
    %37 = tpu.concatenate %34, %35, %36 in 1 : vector<4x32xf32>, vector<4x32xf32>, vector<4x32xf32> -> vector<4x96xf32>
    %38 = arith.truncf %37 : vector<4x96xf32> to vector<4x96xbf16>
    %c0_38 = arith.constant 0 : index
    %c0_39 = arith.constant 0 : index
    %39 = vector.load %arg8[%c0_38, %c0_39] : memref<96x32xf32, #tpu.memory_space<vmem>>, vector<96x32xf32>
    %40 = arith.truncf %39 : vector<96x32xf32> to vector<96x32xbf16>
    %cst_40 = arith.constant dense<0.000000e+00> : vector<4x32xf32>
    %41 = tpu.matmul %38, %40, %cst_40 {dimension_numbers = #tpu.dot_dimension_numbers<[1], [0], [0], [1], [0, 0, 1, 1], [], []>} : vector<4x96xbf16>, vector<96x32xbf16>, vector<4x32xf32> -> vector<4x32xf32>
    %c0_41 = arith.constant 0 : index
    %c0_42 = arith.constant 0 : index
    %42 = vector.load %arg9[%c0_41, %c0_42] : memref<1x32xf32, #tpu.memory_space<vmem>>, vector<1x32xf32>
    %43 = vector.broadcast %42 : vector<1x32xf32> to vector<4x32xf32>
    %44 = arith.addf %41, %43 : vector<4x32xf32>
    %cst_43 = arith.constant 0.000000e+00 : f32
    %45 = vector.broadcast %cst_43 : f32 to vector<4x32xf32>
    %46 = arith.maximumf %44, %45 : vector<4x32xf32>
    %c8_44 = arith.constant 8 : index
    %c0_45 = arith.constant 0 : index
    %47 = vector.load %arg15[%c8_44, %c0_45] : memref<20x32xf32, #tpu.memory_space<vmem>>, vector<4x32xf32>
    tpu.vector_store %arg15[%c8_44, %c0_45], %46 {strides = array<i32>} : memref<20x32xf32, #tpu.memory_space<vmem>>, vector<4x32xf32>,
    %c7_46 = arith.constant 7 : index
    %c0_47 = arith.constant 0 : index
    %48 = vector.load %arg15[%c7_46, %c0_47] : memref<20x32xf32, #tpu.memory_space<vmem>>, vector<4x32xf32>
    %c8_48 = arith.constant 8 : index
    %c0_49 = arith.constant 0 : index
    %49 = vector.load %arg15[%c8_48, %c0_49] : memref<20x32xf32, #tpu.memory_space<vmem>>, vector<4x32xf32>
    %50 = tpu.concatenate %48, %49 in 1 : vector<4x32xf32>, vector<4x32xf32> -> vector<4x64xf32>
    %51 = arith.truncf %50 : vector<4x64xf32> to vector<4x64xbf16>
    %c8_50 = arith.constant 8 : index
    %c0_51 = arith.constant 0 : index
    %52 = vector.load %arg15[%c8_50, %c0_51] : memref<20x32xf32, #tpu.memory_space<vmem>>, vector<4x32xf32>
    %c9_52 = arith.constant 9 : index
    %c0_53 = arith.constant 0 : index
    %53 = vector.load %arg15[%c9_52, %c0_53] : memref<20x32xf32, #tpu.memory_space<vmem>>, vector<4x32xf32>
    %54 = tpu.concatenate %52, %53 in 1 : vector<4x32xf32>, vector<4x32xf32> -> vector<4x64xf32>
    %55 = arith.truncf %54 : vector<4x64xf32> to vector<4x64xbf16>
    %c0_54 = arith.constant 0 : index
    %c0_55 = arith.constant 0 : index
    %56 = vector.load %arg10[%c0_54, %c0_55] : memref<64x32xf32, #tpu.memory_space<vmem>>, vector<64x32xf32>
    %57 = arith.truncf %56 : vector<64x32xf32> to vector<64x32xbf16>
    %cst_56 = arith.constant dense<0.000000e+00> : vector<4x32xf32>
    %58 = tpu.matmul %51, %57, %cst_56 {dimension_numbers = #tpu.dot_dimension_numbers<[1], [0], [0], [1], [0, 0, 1, 1], [], []>} : vector<4x64xbf16>, vector<64x32xbf16>, vector<4x32xf32> -> vector<4x32xf32>
    %c0_57 = arith.constant 0 : index
    %c0_58 = arith.constant 0 : index
    %59 = vector.load %arg12[%c0_57, %c0_58] : memref<1x32xf32, #tpu.memory_space<vmem>>, vector<1x32xf32>
    %60 = vector.broadcast %59 : vector<1x32xf32> to vector<4x32xf32>
    %61 = arith.addf %58, %60 : vector<4x32xf32>
    %c0_59 = arith.constant 0 : index
    %c0_60 = arith.constant 0 : index
    %62 = vector.load %arg11[%c0_59, %c0_60] : memref<64x32xf32, #tpu.memory_space<vmem>>, vector<64x32xf32>
    %63 = arith.truncf %62 : vector<64x32xf32> to vector<64x32xbf16>
    %cst_61 = arith.constant dense<0.000000e+00> : vector<4x32xf32>
    %64 = tpu.matmul %55, %63, %cst_61 {dimension_numbers = #tpu.dot_dimension_numbers<[1], [0], [0], [1], [0, 0, 1, 1], [], []>} : vector<4x64xbf16>, vector<64x32xbf16>, vector<4x32xf32> -> vector<4x32xf32>
    %c0_62 = arith.constant 0 : index
    %c0_63 = arith.constant 0 : index
    %65 = vector.load %arg12[%c0_62, %c0_63] : memref<1x32xf32, #tpu.memory_space<vmem>>, vector<1x32xf32>
    %66 = vector.broadcast %65 : vector<1x32xf32> to vector<4x32xf32>
    %67 = arith.addf %64, %66 : vector<4x32xf32>
    %68 = tpu.concatenate %61, %67 in 1 : vector<4x32xf32>, vector<4x32xf32> -> vector<4x64xf32>
    %c0_64 = arith.constant 0 : index
    %c0_65 = arith.constant 0 : index
    %c0_66 = arith.constant 0 : index
    %69 = vector.load %arg13[%c0_64, %c0_65, %c0_66] : memref<1x4x64xf32, #tpu.memory_space<vmem>>, vector<1x4x64xf32>
    %70 = vector.shape_cast %69 : vector<1x4x64xf32> to vector<4x64xf32>
    %71 = vector.shape_cast %68 : vector<4x64xf32> to vector<1x4x64xf32>
    tpu.vector_store %arg13[%c0_64, %c0_65, %c0_66], %71 {strides = array<i32>} : memref<1x4x64xf32, #tpu.memory_space<vmem>>, vector<1x4x64xf32>,
    return
  }
  func.func @transform_0(%arg0: i32) -> (i32, i32, i32) {
    %c0_i32 = arith.constant 0 : i32
    %c0_i32_0 = arith.constant 0 : i32
    %c0_i32_1 = arith.constant 0 : i32
    return %arg0, %c0_i32, %c0_i32_0 : i32, i32, i32
  }
  func.func @transform_1(%arg0: i32) -> (i32, i32, i32) {
    %c0_i32 = arith.constant 0 : i32
    %c0_i32_0 = arith.constant 0 : i32
    %c0_i32_1 = arith.constant 0 : i32
    return %arg0, %c0_i32, %c0_i32_0 : i32, i32, i32
  }
  func.func @transform_2(%arg0: i32) -> (i32, i32, i32) {
    %c0_i32 = arith.constant 0 : i32
    %c0_i32_0 = arith.constant 0 : i32
    %c0_i32_1 = arith.constant 0 : i32
    return %arg0, %c0_i32, %c0_i32_0 : i32, i32, i32
  }
  func.func @transform_3(%arg0: i32) -> (i32, i32) {
    %c0_i32 = arith.constant 0 : i32
    %c0_i32_0 = arith.constant 0 : i32
    %c0_i32_1 = arith.constant 0 : i32
    return %c0_i32, %c0_i32_0 : i32, i32
  }
  func.func @transform_4(%arg0: i32) -> (i32, i32) {
    %c0_i32 = arith.constant 0 : i32
    %c0_i32_0 = arith.constant 0 : i32
    %c0_i32_1 = arith.constant 0 : i32
    return %c0_i32, %c0_i32_0 : i32, i32
  }
  func.func @transform_5(%arg0: i32) -> (i32, i32) {
    %c0_i32 = arith.constant 0 : i32
    %c0_i32_0 = arith.constant 0 : i32
    %c0_i32_1 = arith.constant 0 : i32
    return %c0_i32, %c0_i32_0 : i32, i32
  }
  func.func @transform_6(%arg0: i32) -> (i32, i32) {
    %c0_i32 = arith.constant 0 : i32
    %c0_i32_0 = arith.constant 0 : i32
    %c0_i32_1 = arith.constant 0 : i32
    return %c0_i32, %c0_i32_0 : i32, i32
  }
  func.func @transform_7(%arg0: i32) -> (i32, i32) {
    %c0_i32 = arith.constant 0 : i32
    %c0_i32_0 = arith.constant 0 : i32
    %c0_i32_1 = arith.constant 0 : i32
    return %c0_i32, %c0_i32_0 : i32, i32
  }
  func.func @transform_8(%arg0: i32) -> (i32, i32) {
    %c0_i32 = arith.constant 0 : i32
    %c0_i32_0 = arith.constant 0 : i32
    %c0_i32_1 = arith.constant 0 : i32
    return %c0_i32, %c0_i32_0 : i32, i32
  }
  func.func @transform_9(%arg0: i32) -> (i32, i32) {
    %c0_i32 = arith.constant 0 : i32
    %c0_i32_0 = arith.constant 0 : i32
    %c0_i32_1 = arith.constant 0 : i32
    return %c0_i32, %c0_i32_0 : i32, i32
  }
  func.func @transform_10(%arg0: i32) -> (i32, i32) {
    %c0_i32 = arith.constant 0 : i32
    %c0_i32_0 = arith.constant 0 : i32
    %c0_i32_1 = arith.constant 0 : i32
    return %c0_i32, %c0_i32_0 : i32, i32
  }
  func.func @transform_11(%arg0: i32) -> (i32, i32) {
    %c0_i32 = arith.constant 0 : i32
    %c0_i32_0 = arith.constant 0 : i32
    %c0_i32_1 = arith.constant 0 : i32
    return %c0_i32, %c0_i32_0 : i32, i32
  }
  func.func @transform_12(%arg0: i32) -> (i32, i32, i32) {
    %c0_i32 = arith.constant 0 : i32
    %c0_i32_0 = arith.constant 0 : i32
    %c0_i32_1 = arith.constant 0 : i32
    return %arg0, %c0_i32, %c0_i32_0 : i32, i32, i32
  }
}

module attributes {stable_mosaic.version = 11 : i64} {
  func.func @_up_block_kernel(%arg0: i32, %arg1: memref<1x8x32xf32, #tpu.memory_space<vmem>>, %arg2: memref<1x8x32xf32, #tpu.memory_space<vmem>>, %arg3: memref<1x1x32xf32, #tpu.memory_space<vmem>>, %arg4: memref<192x16xf32, #tpu.memory_space<vmem>>, %arg5: memref<1x16xf32, #tpu.memory_space<vmem>>, %arg6: memref<32x16xf32, #tpu.memory_space<vmem>>, %arg7: memref<1x16xf32, #tpu.memory_space<vmem>>, %arg8: memref<48x16xf32, #tpu.memory_space<vmem>>, %arg9: memref<1x16xf32, #tpu.memory_space<vmem>>, %arg10: memref<32x16xf32, #tpu.memory_space<vmem>>, %arg11: memref<32x16xf32, #tpu.memory_space<vmem>>, %arg12: memref<1x16xf32, #tpu.memory_space<vmem>>, %arg13: memref<1x8x32xf32, #tpu.memory_space<vmem>>, %arg14: memref<24x64xf32, #tpu.memory_space<vmem>>, %arg15: memref<24x16xf32, #tpu.memory_space<vmem>>) attributes {dimension_semantics = [#tpu.dimension_semantics<parallel>], iteration_bounds = array<i64: 2>, scalar_prefetch = 0 : i64, scratch_operands = 2 : i64, tpu.core_type = #tpu.core_type<tc>, window_params = [{transform_indices = @transform_0, window_bounds = array<i64: 1, 8, 32>}, {transform_indices = @transform_1, window_bounds = array<i64: 1, 8, 32>}, {transform_indices = @transform_2, window_bounds = array<i64: 1, 1, 32>}, {pipeline_mode = #tpu.pipeline_mode<synchronous>, transform_indices = @transform_3, window_bounds = array<i64: 192, 16>}, {pipeline_mode = #tpu.pipeline_mode<synchronous>, transform_indices = @transform_4, window_bounds = array<i64: 1, 16>}, {pipeline_mode = #tpu.pipeline_mode<synchronous>, transform_indices = @transform_5, window_bounds = array<i64: 32, 16>}, {pipeline_mode = #tpu.pipeline_mode<synchronous>, transform_indices = @transform_6, window_bounds = array<i64: 1, 16>}, {pipeline_mode = #tpu.pipeline_mode<synchronous>, transform_indices = @transform_7, window_bounds = array<i64: 48, 16>}, {pipeline_mode = #tpu.pipeline_mode<synchronous>, transform_indices = @transform_8, window_bounds = array<i64: 1, 16>}, {pipeline_mode = #tpu.pipeline_mode<synchronous>, transform_indices = @transform_9, window_bounds = array<i64: 32, 16>}, {pipeline_mode = #tpu.pipeline_mode<synchronous>, transform_indices = @transform_10, window_bounds = array<i64: 32, 16>}, {pipeline_mode = #tpu.pipeline_mode<synchronous>, transform_indices = @transform_11, window_bounds = array<i64: 1, 16>}, {transform_indices = @transform_12, window_bounds = array<i64: 1, 8, 32>}]} {
    %cst = arith.constant 0.000000e+00 : f32
    %0 = vector.broadcast %cst : f32 to vector<24x64xf32>
    %c0 = arith.constant 0 : index
    %c0_0 = arith.constant 0 : index
    %1 = vector.load %arg14[%c0, %c0_0] : memref<24x64xf32, #tpu.memory_space<vmem>>, vector<24x64xf32>
    tpu.vector_store %arg14[%c0, %c0_0], %0 {strides = array<i32>} : memref<24x64xf32, #tpu.memory_space<vmem>>, vector<24x64xf32>,
    %cst_1 = arith.constant 0.000000e+00 : f32
    %2 = vector.broadcast %cst_1 : f32 to vector<24x16xf32>
    %c0_2 = arith.constant 0 : index
    %c0_3 = arith.constant 0 : index
    %3 = vector.load %arg15[%c0_2, %c0_3] : memref<24x16xf32, #tpu.memory_space<vmem>>, vector<24x16xf32>
    tpu.vector_store %arg15[%c0_2, %c0_3], %2 {strides = array<i32>} : memref<24x16xf32, #tpu.memory_space<vmem>>, vector<24x16xf32>,
    %c0_4 = arith.constant 0 : index
    %c0_5 = arith.constant 0 : index
    %c0_6 = arith.constant 0 : index
    %4 = vector.load %arg1[%c0_4, %c0_5, %c0_6] : memref<1x8x32xf32, #tpu.memory_space<vmem>>, vector<1x8x32xf32>
    %5 = vector.shape_cast %4 : vector<1x8x32xf32> to vector<8x32xf32>
    %c0_7 = arith.constant 0 : index
    %c0_8 = arith.constant 0 : index
    %c0_9 = arith.constant 0 : index
    %6 = vector.load %arg2[%c0_7, %c0_8, %c0_9] : memref<1x8x32xf32, #tpu.memory_space<vmem>>, vector<1x8x32xf32>
    %7 = vector.shape_cast %6 : vector<1x8x32xf32> to vector<8x32xf32>
    %8 = tpu.concatenate %5, %7 in 1 : vector<8x32xf32>, vector<8x32xf32> -> vector<8x64xf32>
    %c8 = arith.constant 8 : index
    %c0_10 = arith.constant 0 : index
    %9 = vector.load %arg14[%c8, %c0_10] : memref<24x64xf32, #tpu.memory_space<vmem>>, vector<8x64xf32>
    tpu.vector_store %arg14[%c8, %c0_10], %8 {strides = array<i32>} : memref<24x64xf32, #tpu.memory_space<vmem>>, vector<8x64xf32>,
    %c0_11 = arith.constant 0 : index
    %c0_12 = arith.constant 0 : index
    %c0_13 = arith.constant 0 : index
    %10 = vector.load %arg3[%c0_11, %c0_12, %c0_13] : memref<1x1x32xf32, #tpu.memory_space<vmem>>, vector<1x1x32xf32>
    %11 = vector.shape_cast %10 : vector<1x1x32xf32> to vector<1x32xf32>
    %c0_14 = arith.constant 0 : index
    %c0_15 = arith.constant 0 : index
    %12 = vector.load %arg6[%c0_14, %c0_15] : memref<32x16xf32, #tpu.memory_space<vmem>>, vector<32x16xf32>
    %cst_16 = arith.constant dense<0.000000e+00> : vector<1x16xf32>
    %13 = tpu.matmul %11, %12, %cst_16 {dimension_numbers = #tpu.dot_dimension_numbers<[1], [0], [0], [1], [0, 0, 1, 1], [], []>} : vector<1x32xf32>, vector<32x16xf32>, vector<1x16xf32> -> vector<1x16xf32>
    %c0_17 = arith.constant 0 : index
    %c0_18 = arith.constant 0 : index
    %14 = vector.load %arg7[%c0_17, %c0_18] : memref<1x16xf32, #tpu.memory_space<vmem>>, vector<1x16xf32>
    %15 = arith.addf %13, %14 : vector<1x16xf32>
    %cst_19 = arith.constant 0.000000e+00 : f32
    %16 = vector.broadcast %cst_19 : f32 to vector<1x16xf32>
    %17 = arith.maximumf %15, %16 : vector<1x16xf32>
    %c7 = arith.constant 7 : index
    %c0_20 = arith.constant 0 : index
    %18 = vector.load %arg14[%c7, %c0_20] : memref<24x64xf32, #tpu.memory_space<vmem>>, vector<8x64xf32>
    %c8_21 = arith.constant 8 : index
    %c0_22 = arith.constant 0 : index
    %19 = vector.load %arg14[%c8_21, %c0_22] : memref<24x64xf32, #tpu.memory_space<vmem>>, vector<8x64xf32>
    %c9 = arith.constant 9 : index
    %c0_23 = arith.constant 0 : index
    %20 = vector.load %arg14[%c9, %c0_23] : memref<24x64xf32, #tpu.memory_space<vmem>>, vector<8x64xf32>
    %21 = tpu.concatenate %18, %19, %20 in 1 : vector<8x64xf32>, vector<8x64xf32>, vector<8x64xf32> -> vector<8x192xf32>
    %22 = arith.truncf %21 : vector<8x192xf32> to vector<8x192xbf16>
    %c0_24 = arith.constant 0 : index
    %c0_25 = arith.constant 0 : index
    %23 = vector.load %arg4[%c0_24, %c0_25] : memref<192x16xf32, #tpu.memory_space<vmem>>, vector<192x16xf32>
    %24 = arith.truncf %23 : vector<192x16xf32> to vector<192x16xbf16>
    %cst_26 = arith.constant dense<0.000000e+00> : vector<8x16xf32>
    %25 = tpu.matmul %22, %24, %cst_26 {dimension_numbers = #tpu.dot_dimension_numbers<[1], [0], [0], [1], [0, 0, 1, 1], [], []>} : vector<8x192xbf16>, vector<192x16xbf16>, vector<8x16xf32> -> vector<8x16xf32>
    %c0_27 = arith.constant 0 : index
    %c0_28 = arith.constant 0 : index
    %26 = vector.load %arg5[%c0_27, %c0_28] : memref<1x16xf32, #tpu.memory_space<vmem>>, vector<1x16xf32>
    %27 = vector.broadcast %26 : vector<1x16xf32> to vector<8x16xf32>
    %28 = arith.addf %25, %27 : vector<8x16xf32>
    %cst_29 = arith.constant 0.000000e+00 : f32
    %29 = vector.broadcast %cst_29 : f32 to vector<8x16xf32>
    %30 = arith.maximumf %28, %29 : vector<8x16xf32>
    %31 = vector.broadcast %17 : vector<1x16xf32> to vector<8x16xf32>
    %32 = arith.addf %30, %31 : vector<8x16xf32>
    %c8_30 = arith.constant 8 : index
    %c0_31 = arith.constant 0 : index
    %33 = vector.load %arg15[%c8_30, %c0_31] : memref<24x16xf32, #tpu.memory_space<vmem>>, vector<8x16xf32>
    tpu.vector_store %arg15[%c8_30, %c0_31], %32 {strides = array<i32>} : memref<24x16xf32, #tpu.memory_space<vmem>>, vector<8x16xf32>,
    %c7_32 = arith.constant 7 : index
    %c0_33 = arith.constant 0 : index
    %34 = vector.load %arg15[%c7_32, %c0_33] : memref<24x16xf32, #tpu.memory_space<vmem>>, vector<8x16xf32>
    %c8_34 = arith.constant 8 : index
    %c0_35 = arith.constant 0 : index
    %35 = vector.load %arg15[%c8_34, %c0_35] : memref<24x16xf32, #tpu.memory_space<vmem>>, vector<8x16xf32>
    %c9_36 = arith.constant 9 : index
    %c0_37 = arith.constant 0 : index
    %36 = vector.load %arg15[%c9_36, %c0_37] : memref<24x16xf32, #tpu.memory_space<vmem>>, vector<8x16xf32>
    %37 = tpu.concatenate %34, %35, %36 in 1 : vector<8x16xf32>, vector<8x16xf32>, vector<8x16xf32> -> vector<8x48xf32>
    %38 = arith.truncf %37 : vector<8x48xf32> to vector<8x48xbf16>
    %c0_38 = arith.constant 0 : index
    %c0_39 = arith.constant 0 : index
    %39 = vector.load %arg8[%c0_38, %c0_39] : memref<48x16xf32, #tpu.memory_space<vmem>>, vector<48x16xf32>
    %40 = arith.truncf %39 : vector<48x16xf32> to vector<48x16xbf16>
    %cst_40 = arith.constant dense<0.000000e+00> : vector<8x16xf32>
    %41 = tpu.matmul %38, %40, %cst_40 {dimension_numbers = #tpu.dot_dimension_numbers<[1], [0], [0], [1], [0, 0, 1, 1], [], []>} : vector<8x48xbf16>, vector<48x16xbf16>, vector<8x16xf32> -> vector<8x16xf32>
    %c0_41 = arith.constant 0 : index
    %c0_42 = arith.constant 0 : index
    %42 = vector.load %arg9[%c0_41, %c0_42] : memref<1x16xf32, #tpu.memory_space<vmem>>, vector<1x16xf32>
    %43 = vector.broadcast %42 : vector<1x16xf32> to vector<8x16xf32>
    %44 = arith.addf %41, %43 : vector<8x16xf32>
    %cst_43 = arith.constant 0.000000e+00 : f32
    %45 = vector.broadcast %cst_43 : f32 to vector<8x16xf32>
    %46 = arith.maximumf %44, %45 : vector<8x16xf32>
    %c8_44 = arith.constant 8 : index
    %c0_45 = arith.constant 0 : index
    %47 = vector.load %arg15[%c8_44, %c0_45] : memref<24x16xf32, #tpu.memory_space<vmem>>, vector<8x16xf32>
    tpu.vector_store %arg15[%c8_44, %c0_45], %46 {strides = array<i32>} : memref<24x16xf32, #tpu.memory_space<vmem>>, vector<8x16xf32>,
    %c7_46 = arith.constant 7 : index
    %c0_47 = arith.constant 0 : index
    %48 = vector.load %arg15[%c7_46, %c0_47] : memref<24x16xf32, #tpu.memory_space<vmem>>, vector<8x16xf32>
    %c8_48 = arith.constant 8 : index
    %c0_49 = arith.constant 0 : index
    %49 = vector.load %arg15[%c8_48, %c0_49] : memref<24x16xf32, #tpu.memory_space<vmem>>, vector<8x16xf32>
    %50 = tpu.concatenate %48, %49 in 1 : vector<8x16xf32>, vector<8x16xf32> -> vector<8x32xf32>
    %51 = arith.truncf %50 : vector<8x32xf32> to vector<8x32xbf16>
    %c8_50 = arith.constant 8 : index
    %c0_51 = arith.constant 0 : index
    %52 = vector.load %arg15[%c8_50, %c0_51] : memref<24x16xf32, #tpu.memory_space<vmem>>, vector<8x16xf32>
    %c9_52 = arith.constant 9 : index
    %c0_53 = arith.constant 0 : index
    %53 = vector.load %arg15[%c9_52, %c0_53] : memref<24x16xf32, #tpu.memory_space<vmem>>, vector<8x16xf32>
    %54 = tpu.concatenate %52, %53 in 1 : vector<8x16xf32>, vector<8x16xf32> -> vector<8x32xf32>
    %55 = arith.truncf %54 : vector<8x32xf32> to vector<8x32xbf16>
    %c0_54 = arith.constant 0 : index
    %c0_55 = arith.constant 0 : index
    %56 = vector.load %arg10[%c0_54, %c0_55] : memref<32x16xf32, #tpu.memory_space<vmem>>, vector<32x16xf32>
    %57 = arith.truncf %56 : vector<32x16xf32> to vector<32x16xbf16>
    %cst_56 = arith.constant dense<0.000000e+00> : vector<8x16xf32>
    %58 = tpu.matmul %51, %57, %cst_56 {dimension_numbers = #tpu.dot_dimension_numbers<[1], [0], [0], [1], [0, 0, 1, 1], [], []>} : vector<8x32xbf16>, vector<32x16xbf16>, vector<8x16xf32> -> vector<8x16xf32>
    %c0_57 = arith.constant 0 : index
    %c0_58 = arith.constant 0 : index
    %59 = vector.load %arg12[%c0_57, %c0_58] : memref<1x16xf32, #tpu.memory_space<vmem>>, vector<1x16xf32>
    %60 = vector.broadcast %59 : vector<1x16xf32> to vector<8x16xf32>
    %61 = arith.addf %58, %60 : vector<8x16xf32>
    %c0_59 = arith.constant 0 : index
    %c0_60 = arith.constant 0 : index
    %62 = vector.load %arg11[%c0_59, %c0_60] : memref<32x16xf32, #tpu.memory_space<vmem>>, vector<32x16xf32>
    %63 = arith.truncf %62 : vector<32x16xf32> to vector<32x16xbf16>
    %cst_61 = arith.constant dense<0.000000e+00> : vector<8x16xf32>
    %64 = tpu.matmul %55, %63, %cst_61 {dimension_numbers = #tpu.dot_dimension_numbers<[1], [0], [0], [1], [0, 0, 1, 1], [], []>} : vector<8x32xbf16>, vector<32x16xbf16>, vector<8x16xf32> -> vector<8x16xf32>
    %c0_62 = arith.constant 0 : index
    %c0_63 = arith.constant 0 : index
    %65 = vector.load %arg12[%c0_62, %c0_63] : memref<1x16xf32, #tpu.memory_space<vmem>>, vector<1x16xf32>
    %66 = vector.broadcast %65 : vector<1x16xf32> to vector<8x16xf32>
    %67 = arith.addf %64, %66 : vector<8x16xf32>
    %68 = tpu.concatenate %61, %67 in 1 : vector<8x16xf32>, vector<8x16xf32> -> vector<8x32xf32>
    %c0_64 = arith.constant 0 : index
    %c0_65 = arith.constant 0 : index
    %c0_66 = arith.constant 0 : index
    %69 = vector.load %arg13[%c0_64, %c0_65, %c0_66] : memref<1x8x32xf32, #tpu.memory_space<vmem>>, vector<1x8x32xf32>
    %70 = vector.shape_cast %69 : vector<1x8x32xf32> to vector<8x32xf32>
    %71 = vector.shape_cast %68 : vector<8x32xf32> to vector<1x8x32xf32>
    tpu.vector_store %arg13[%c0_64, %c0_65, %c0_66], %71 {strides = array<i32>} : memref<1x8x32xf32, #tpu.memory_space<vmem>>, vector<1x8x32xf32>,
    return
  }
  func.func @transform_0(%arg0: i32) -> (i32, i32, i32) {
    %c0_i32 = arith.constant 0 : i32
    %c0_i32_0 = arith.constant 0 : i32
    %c0_i32_1 = arith.constant 0 : i32
    return %arg0, %c0_i32, %c0_i32_0 : i32, i32, i32
  }
  func.func @transform_1(%arg0: i32) -> (i32, i32, i32) {
    %c0_i32 = arith.constant 0 : i32
    %c0_i32_0 = arith.constant 0 : i32
    %c0_i32_1 = arith.constant 0 : i32
    return %arg0, %c0_i32, %c0_i32_0 : i32, i32, i32
  }
  func.func @transform_2(%arg0: i32) -> (i32, i32, i32) {
    %c0_i32 = arith.constant 0 : i32
    %c0_i32_0 = arith.constant 0 : i32
    %c0_i32_1 = arith.constant 0 : i32
    return %arg0, %c0_i32, %c0_i32_0 : i32, i32, i32
  }
  func.func @transform_3(%arg0: i32) -> (i32, i32) {
    %c0_i32 = arith.constant 0 : i32
    %c0_i32_0 = arith.constant 0 : i32
    %c0_i32_1 = arith.constant 0 : i32
    return %c0_i32, %c0_i32_0 : i32, i32
  }
  func.func @transform_4(%arg0: i32) -> (i32, i32) {
    %c0_i32 = arith.constant 0 : i32
    %c0_i32_0 = arith.constant 0 : i32
    %c0_i32_1 = arith.constant 0 : i32
    return %c0_i32, %c0_i32_0 : i32, i32
  }
  func.func @transform_5(%arg0: i32) -> (i32, i32) {
    %c0_i32 = arith.constant 0 : i32
    %c0_i32_0 = arith.constant 0 : i32
    %c0_i32_1 = arith.constant 0 : i32
    return %c0_i32, %c0_i32_0 : i32, i32
  }
  func.func @transform_6(%arg0: i32) -> (i32, i32) {
    %c0_i32 = arith.constant 0 : i32
    %c0_i32_0 = arith.constant 0 : i32
    %c0_i32_1 = arith.constant 0 : i32
    return %c0_i32, %c0_i32_0 : i32, i32
  }
  func.func @transform_7(%arg0: i32) -> (i32, i32) {
    %c0_i32 = arith.constant 0 : i32
    %c0_i32_0 = arith.constant 0 : i32
    %c0_i32_1 = arith.constant 0 : i32
    return %c0_i32, %c0_i32_0 : i32, i32
  }
  func.func @transform_8(%arg0: i32) -> (i32, i32) {
    %c0_i32 = arith.constant 0 : i32
    %c0_i32_0 = arith.constant 0 : i32
    %c0_i32_1 = arith.constant 0 : i32
    return %c0_i32, %c0_i32_0 : i32, i32
  }
  func.func @transform_9(%arg0: i32) -> (i32, i32) {
    %c0_i32 = arith.constant 0 : i32
    %c0_i32_0 = arith.constant 0 : i32
    %c0_i32_1 = arith.constant 0 : i32
    return %c0_i32, %c0_i32_0 : i32, i32
  }
  func.func @transform_10(%arg0: i32) -> (i32, i32) {
    %c0_i32 = arith.constant 0 : i32
    %c0_i32_0 = arith.constant 0 : i32
    %c0_i32_1 = arith.constant 0 : i32
    return %c0_i32, %c0_i32_0 : i32, i32
  }
  func.func @transform_11(%arg0: i32) -> (i32, i32) {
    %c0_i32 = arith.constant 0 : i32
    %c0_i32_0 = arith.constant 0 : i32
    %c0_i32_1 = arith.constant 0 : i32
    return %c0_i32, %c0_i32_0 : i32, i32
  }
  func.func @transform_12(%arg0: i32) -> (i32, i32, i32) {
    %c0_i32 = arith.constant 0 : i32
    %c0_i32_0 = arith.constant 0 : i32
    %c0_i32_1 = arith.constant 0 : i32
    return %arg0, %c0_i32, %c0_i32_0 : i32, i32, i32
  }
}

module attributes {stable_mosaic.version = 11 : i64} {
  func.func @_wavenet_kernel(%arg0: i32, %arg1: memref<1x16x16xf32, #tpu.memory_space<vmem>>, %arg2: memref<1x1x32xf32, #tpu.memory_space<vmem>>, %arg3: memref<16x16xf32, #tpu.memory_space<vmem>>, %arg4: memref<1x16xf32, #tpu.memory_space<vmem>>, %arg5: memref<32x16xf32, #tpu.memory_space<vmem>>, %arg6: memref<1x16xf32, #tpu.memory_space<vmem>>, %arg7: memref<2x48x32xf32, #tpu.memory_space<vmem>>, %arg8: memref<2x1x32xf32, #tpu.memory_space<vmem>>, %arg9: memref<2x16x32xf32, #tpu.memory_space<vmem>>, %arg10: memref<2x1x32xf32, #tpu.memory_space<vmem>>, %arg11: memref<16x4xf32, #tpu.memory_space<vmem>>, %arg12: memref<1x4xf32, #tpu.memory_space<vmem>>, %arg13: memref<1x16x4xf32, #tpu.memory_space<vmem>>, %arg14: memref<32x16xf32, #tpu.memory_space<vmem>>) attributes {dimension_semantics = [#tpu.dimension_semantics<parallel>], iteration_bounds = array<i64: 2>, scalar_prefetch = 0 : i64, scratch_operands = 1 : i64, tpu.core_type = #tpu.core_type<tc>, window_params = [{transform_indices = @transform_0, window_bounds = array<i64: 1, 16, 16>}, {transform_indices = @transform_1, window_bounds = array<i64: 1, 1, 32>}, {pipeline_mode = #tpu.pipeline_mode<synchronous>, transform_indices = @transform_2, window_bounds = array<i64: 16, 16>}, {pipeline_mode = #tpu.pipeline_mode<synchronous>, transform_indices = @transform_3, window_bounds = array<i64: 1, 16>}, {pipeline_mode = #tpu.pipeline_mode<synchronous>, transform_indices = @transform_4, window_bounds = array<i64: 32, 16>}, {pipeline_mode = #tpu.pipeline_mode<synchronous>, transform_indices = @transform_5, window_bounds = array<i64: 1, 16>}, {pipeline_mode = #tpu.pipeline_mode<synchronous>, transform_indices = @transform_6, window_bounds = array<i64: 2, 48, 32>}, {pipeline_mode = #tpu.pipeline_mode<synchronous>, transform_indices = @transform_7, window_bounds = array<i64: 2, 1, 32>}, {pipeline_mode = #tpu.pipeline_mode<synchronous>, transform_indices = @transform_8, window_bounds = array<i64: 2, 16, 32>}, {pipeline_mode = #tpu.pipeline_mode<synchronous>, transform_indices = @transform_9, window_bounds = array<i64: 2, 1, 32>}, {pipeline_mode = #tpu.pipeline_mode<synchronous>, transform_indices = @transform_10, window_bounds = array<i64: 16, 4>}, {pipeline_mode = #tpu.pipeline_mode<synchronous>, transform_indices = @transform_11, window_bounds = array<i64: 1, 4>}, {transform_indices = @transform_12, window_bounds = array<i64: 1, 16, 4>}]} {
    %c0 = arith.constant 0 : index
    %c0_0 = arith.constant 0 : index
    %c0_1 = arith.constant 0 : index
    %0 = vector.load %arg1[%c0, %c0_0, %c0_1] : memref<1x16x16xf32, #tpu.memory_space<vmem>>, vector<1x16x16xf32>
    %1 = vector.shape_cast %0 : vector<1x16x16xf32> to vector<16x16xf32>
    %c0_2 = arith.constant 0 : index
    %c0_3 = arith.constant 0 : index
    %2 = vector.load %arg3[%c0_2, %c0_3] : memref<16x16xf32, #tpu.memory_space<vmem>>, vector<16x16xf32>
    %cst = arith.constant dense<0.000000e+00> : vector<16x16xf32>
    %3 = tpu.matmul %1, %2, %cst {dimension_numbers = #tpu.dot_dimension_numbers<[1], [0], [0], [1], [0, 0, 1, 1], [], []>} : vector<16x16xf32>, vector<16x16xf32>, vector<16x16xf32> -> vector<16x16xf32>
    %c0_4 = arith.constant 0 : index
    %c0_5 = arith.constant 0 : index
    %4 = vector.load %arg4[%c0_4, %c0_5] : memref<1x16xf32, #tpu.memory_space<vmem>>, vector<1x16xf32>
    %5 = vector.broadcast %4 : vector<1x16xf32> to vector<16x16xf32>
    %6 = arith.addf %3, %5 : vector<16x16xf32>
    %c0_6 = arith.constant 0 : index
    %c0_7 = arith.constant 0 : index
    %c0_8 = arith.constant 0 : index
    %7 = vector.load %arg2[%c0_6, %c0_7, %c0_8] : memref<1x1x32xf32, #tpu.memory_space<vmem>>, vector<1x1x32xf32>
    %8 = vector.shape_cast %7 : vector<1x1x32xf32> to vector<1x32xf32>
    %c0_9 = arith.constant 0 : index
    %c0_10 = arith.constant 0 : index
    %9 = vector.load %arg5[%c0_9, %c0_10] : memref<32x16xf32, #tpu.memory_space<vmem>>, vector<32x16xf32>
    %cst_11 = arith.constant dense<0.000000e+00> : vector<1x16xf32>
    %10 = tpu.matmul %8, %9, %cst_11 {dimension_numbers = #tpu.dot_dimension_numbers<[1], [0], [0], [1], [0, 0, 1, 1], [], []>} : vector<1x32xf32>, vector<32x16xf32>, vector<1x16xf32> -> vector<1x16xf32>
    %c0_12 = arith.constant 0 : index
    %c0_13 = arith.constant 0 : index
    %11 = vector.load %arg6[%c0_12, %c0_13] : memref<1x16xf32, #tpu.memory_space<vmem>>, vector<1x16xf32>
    %12 = arith.addf %10, %11 : vector<1x16xf32>
    %cst_14 = arith.constant 0.000000e+00 : f32
    %13 = vector.broadcast %cst_14 : f32 to vector<32x16xf32>
    %c0_15 = arith.constant 0 : index
    %c0_16 = arith.constant 0 : index
    %14 = vector.load %arg14[%c0_15, %c0_16] : memref<32x16xf32, #tpu.memory_space<vmem>>, vector<32x16xf32>
    tpu.vector_store %arg14[%c0_15, %c0_16], %13 {strides = array<i32>} : memref<32x16xf32, #tpu.memory_space<vmem>>, vector<32x16xf32>,
    %cst_17 = arith.constant 0.000000e+00 : f32
    %15 = vector.broadcast %cst_17 : f32 to vector<16x16xf32>
    %16 = vector.broadcast %12 : vector<1x16xf32> to vector<16x16xf32>
    %17 = arith.addf %6, %16 : vector<16x16xf32>
    %c8 = arith.constant 8 : index
    %c0_18 = arith.constant 0 : index
    %18 = vector.load %arg14[%c8, %c0_18] : memref<32x16xf32, #tpu.memory_space<vmem>>, vector<16x16xf32>
    tpu.vector_store %arg14[%c8, %c0_18], %17 {strides = array<i32>} : memref<32x16xf32, #tpu.memory_space<vmem>>, vector<16x16xf32>,
    %c7 = arith.constant 7 : index
    %c0_19 = arith.constant 0 : index
    %19 = vector.load %arg14[%c7, %c0_19] : memref<32x16xf32, #tpu.memory_space<vmem>>, vector<16x16xf32>
    %c8_20 = arith.constant 8 : index
    %c0_21 = arith.constant 0 : index
    %20 = vector.load %arg14[%c8_20, %c0_21] : memref<32x16xf32, #tpu.memory_space<vmem>>, vector<16x16xf32>
    %c9 = arith.constant 9 : index
    %c0_22 = arith.constant 0 : index
    %21 = vector.load %arg14[%c9, %c0_22] : memref<32x16xf32, #tpu.memory_space<vmem>>, vector<16x16xf32>
    %22 = tpu.concatenate %19, %20, %21 in 1 : vector<16x16xf32>, vector<16x16xf32>, vector<16x16xf32> -> vector<16x48xf32>
    %23 = arith.truncf %22 : vector<16x48xf32> to vector<16x48xbf16>
    %c0_23 = arith.constant 0 : index
    %c0_24 = arith.constant 0 : index
    %c0_25 = arith.constant 0 : index
    %24 = vector.load %arg7[%c0_23, %c0_24, %c0_25] : memref<2x48x32xf32, #tpu.memory_space<vmem>>, vector<1x48x32xf32>
    %25 = vector.shape_cast %24 : vector<1x48x32xf32> to vector<48x32xf32>
    %26 = arith.truncf %25 : vector<48x32xf32> to vector<48x32xbf16>
    %cst_26 = arith.constant dense<0.000000e+00> : vector<16x32xf32>
    %27 = tpu.matmul %23, %26, %cst_26 {dimension_numbers = #tpu.dot_dimension_numbers<[1], [0], [0], [1], [0, 0, 1, 1], [], []>} : vector<16x48xbf16>, vector<48x32xbf16>, vector<16x32xf32> -> vector<16x32xf32>
    %c0_27 = arith.constant 0 : index
    %c0_28 = arith.constant 0 : index
    %c0_29 = arith.constant 0 : index
    %28 = vector.load %arg8[%c0_27, %c0_28, %c0_29] : memref<2x1x32xf32, #tpu.memory_space<vmem>>, vector<1x1x32xf32>
    %29 = vector.shape_cast %28 : vector<1x1x32xf32> to vector<1x32xf32>
    %30 = vector.broadcast %29 : vector<1x32xf32> to vector<16x32xf32>
    %31 = arith.addf %27, %30 : vector<16x32xf32>
    %32 = vector.extract_strided_slice %31 {offsets = [0, 0], sizes = [16, 16], strides = [1, 1]} : vector<16x32xf32> to vector<16x16xf32>
    %33 = math.tanh %32 : vector<16x16xf32>
    %34 = vector.extract_strided_slice %31 {offsets = [0, 16], sizes = [16, 16], strides = [1, 1]} : vector<16x32xf32> to vector<16x16xf32>
    %35 = arith.negf %34 : vector<16x16xf32>
    %36 = math.exp %35 : vector<16x16xf32>
    %cst_30 = arith.constant 1.000000e+00 : f32
    %37 = vector.broadcast %cst_30 : f32 to vector<16x16xf32>
    %38 = arith.addf %37, %36 : vector<16x16xf32>
    %39 = arith.divf %37, %38 : vector<16x16xf32>
    %40 = arith.mulf %33, %39 : vector<16x16xf32>
    %41 = arith.truncf %40 : vector<16x16xf32> to vector<16x16xbf16>
    %c0_31 = arith.constant 0 : index
    %c0_32 = arith.constant 0 : index
    %c0_33 = arith.constant 0 : index
    %42 = vector.load %arg9[%c0_31, %c0_32, %c0_33] : memref<2x16x32xf32, #tpu.memory_space<vmem>>, vector<1x16x32xf32>
    %43 = vector.shape_cast %42 : vector<1x16x32xf32> to vector<16x32xf32>
    %44 = arith.truncf %43 : vector<16x32xf32> to vector<16x32xbf16>
    %cst_34 = arith.constant dense<0.000000e+00> : vector<16x32xf32>
    %45 = tpu.matmul %41, %44, %cst_34 {dimension_numbers = #tpu.dot_dimension_numbers<[1], [0], [0], [1], [0, 0, 1, 1], [], []>} : vector<16x16xbf16>, vector<16x32xbf16>, vector<16x32xf32> -> vector<16x32xf32>
    %c0_35 = arith.constant 0 : index
    %c0_36 = arith.constant 0 : index
    %c0_37 = arith.constant 0 : index
    %46 = vector.load %arg10[%c0_35, %c0_36, %c0_37] : memref<2x1x32xf32, #tpu.memory_space<vmem>>, vector<1x1x32xf32>
    %47 = vector.shape_cast %46 : vector<1x1x32xf32> to vector<1x32xf32>
    %48 = vector.broadcast %47 : vector<1x32xf32> to vector<16x32xf32>
    %49 = arith.addf %45, %48 : vector<16x32xf32>
    %50 = vector.extract_strided_slice %49 {offsets = [0, 0], sizes = [16, 16], strides = [1, 1]} : vector<16x32xf32> to vector<16x16xf32>
    %51 = arith.addf %6, %50 : vector<16x16xf32>
    %52 = vector.extract_strided_slice %49 {offsets = [0, 16], sizes = [16, 16], strides = [1, 1]} : vector<16x32xf32> to vector<16x16xf32>
    %53 = arith.addf %15, %52 : vector<16x16xf32>
    %54 = vector.broadcast %12 : vector<1x16xf32> to vector<16x16xf32>
    %55 = arith.addf %51, %54 : vector<16x16xf32>
    %c8_38 = arith.constant 8 : index
    %c0_39 = arith.constant 0 : index
    %56 = vector.load %arg14[%c8_38, %c0_39] : memref<32x16xf32, #tpu.memory_space<vmem>>, vector<16x16xf32>
    tpu.vector_store %arg14[%c8_38, %c0_39], %55 {strides = array<i32>} : memref<32x16xf32, #tpu.memory_space<vmem>>, vector<16x16xf32>,
    %c6 = arith.constant 6 : index
    %c0_40 = arith.constant 0 : index
    %57 = vector.load %arg14[%c6, %c0_40] : memref<32x16xf32, #tpu.memory_space<vmem>>, vector<16x16xf32>
    %c8_41 = arith.constant 8 : index
    %c0_42 = arith.constant 0 : index
    %58 = vector.load %arg14[%c8_41, %c0_42] : memref<32x16xf32, #tpu.memory_space<vmem>>, vector<16x16xf32>
    %c10 = arith.constant 10 : index
    %c0_43 = arith.constant 0 : index
    %59 = vector.load %arg14[%c10, %c0_43] : memref<32x16xf32, #tpu.memory_space<vmem>>, vector<16x16xf32>
    %60 = tpu.concatenate %57, %58, %59 in 1 : vector<16x16xf32>, vector<16x16xf32>, vector<16x16xf32> -> vector<16x48xf32>
    %61 = arith.truncf %60 : vector<16x48xf32> to vector<16x48xbf16>
    %c1 = arith.constant 1 : index
    %c0_44 = arith.constant 0 : index
    %c0_45 = arith.constant 0 : index
    %62 = vector.load %arg7[%c1, %c0_44, %c0_45] : memref<2x48x32xf32, #tpu.memory_space<vmem>>, vector<1x48x32xf32>
    %63 = vector.shape_cast %62 : vector<1x48x32xf32> to vector<48x32xf32>
    %64 = arith.truncf %63 : vector<48x32xf32> to vector<48x32xbf16>
    %cst_46 = arith.constant dense<0.000000e+00> : vector<16x32xf32>
    %65 = tpu.matmul %61, %64, %cst_46 {dimension_numbers = #tpu.dot_dimension_numbers<[1], [0], [0], [1], [0, 0, 1, 1], [], []>} : vector<16x48xbf16>, vector<48x32xbf16>, vector<16x32xf32> -> vector<16x32xf32>
    %c1_47 = arith.constant 1 : index
    %c0_48 = arith.constant 0 : index
    %c0_49 = arith.constant 0 : index
    %66 = vector.load %arg8[%c1_47, %c0_48, %c0_49] : memref<2x1x32xf32, #tpu.memory_space<vmem>>, vector<1x1x32xf32>
    %67 = vector.shape_cast %66 : vector<1x1x32xf32> to vector<1x32xf32>
    %68 = vector.broadcast %67 : vector<1x32xf32> to vector<16x32xf32>
    %69 = arith.addf %65, %68 : vector<16x32xf32>
    %70 = vector.extract_strided_slice %69 {offsets = [0, 0], sizes = [16, 16], strides = [1, 1]} : vector<16x32xf32> to vector<16x16xf32>
    %71 = math.tanh %70 : vector<16x16xf32>
    %72 = vector.extract_strided_slice %69 {offsets = [0, 16], sizes = [16, 16], strides = [1, 1]} : vector<16x32xf32> to vector<16x16xf32>
    %73 = arith.negf %72 : vector<16x16xf32>
    %74 = math.exp %73 : vector<16x16xf32>
    %cst_50 = arith.constant 1.000000e+00 : f32
    %75 = vector.broadcast %cst_50 : f32 to vector<16x16xf32>
    %76 = arith.addf %75, %74 : vector<16x16xf32>
    %77 = arith.divf %75, %76 : vector<16x16xf32>
    %78 = arith.mulf %71, %77 : vector<16x16xf32>
    %79 = arith.truncf %78 : vector<16x16xf32> to vector<16x16xbf16>
    %c1_51 = arith.constant 1 : index
    %c0_52 = arith.constant 0 : index
    %c0_53 = arith.constant 0 : index
    %80 = vector.load %arg9[%c1_51, %c0_52, %c0_53] : memref<2x16x32xf32, #tpu.memory_space<vmem>>, vector<1x16x32xf32>
    %81 = vector.shape_cast %80 : vector<1x16x32xf32> to vector<16x32xf32>
    %82 = arith.truncf %81 : vector<16x32xf32> to vector<16x32xbf16>
    %cst_54 = arith.constant dense<0.000000e+00> : vector<16x32xf32>
    %83 = tpu.matmul %79, %82, %cst_54 {dimension_numbers = #tpu.dot_dimension_numbers<[1], [0], [0], [1], [0, 0, 1, 1], [], []>} : vector<16x16xbf16>, vector<16x32xbf16>, vector<16x32xf32> -> vector<16x32xf32>
    %c1_55 = arith.constant 1 : index
    %c0_56 = arith.constant 0 : index
    %c0_57 = arith.constant 0 : index
    %84 = vector.load %arg10[%c1_55, %c0_56, %c0_57] : memref<2x1x32xf32, #tpu.memory_space<vmem>>, vector<1x1x32xf32>
    %85 = vector.shape_cast %84 : vector<1x1x32xf32> to vector<1x32xf32>
    %86 = vector.broadcast %85 : vector<1x32xf32> to vector<16x32xf32>
    %87 = arith.addf %83, %86 : vector<16x32xf32>
    %88 = vector.extract_strided_slice %87 {offsets = [0, 16], sizes = [16, 16], strides = [1, 1]} : vector<16x32xf32> to vector<16x16xf32>
    %89 = arith.addf %53, %88 : vector<16x16xf32>
    %cst_58 = arith.constant 0.000000e+00 : f32
    %90 = vector.broadcast %cst_58 : f32 to vector<16x16xf32>
    %91 = arith.maximumf %89, %90 : vector<16x16xf32>
    %c0_59 = arith.constant 0 : index
    %c0_60 = arith.constant 0 : index
    %92 = vector.load %arg11[%c0_59, %c0_60] : memref<16x4xf32, #tpu.memory_space<vmem>>, vector<16x4xf32>
    %cst_61 = arith.constant dense<0.000000e+00> : vector<16x4xf32>
    %93 = tpu.matmul %91, %92, %cst_61 {dimension_numbers = #tpu.dot_dimension_numbers<[1], [0], [0], [1], [0, 0, 1, 1], [], []>} : vector<16x16xf32>, vector<16x4xf32>, vector<16x4xf32> -> vector<16x4xf32>
    %c0_62 = arith.constant 0 : index
    %c0_63 = arith.constant 0 : index
    %94 = vector.load %arg12[%c0_62, %c0_63] : memref<1x4xf32, #tpu.memory_space<vmem>>, vector<1x4xf32>
    %95 = vector.broadcast %94 : vector<1x4xf32> to vector<16x4xf32>
    %96 = arith.addf %93, %95 : vector<16x4xf32>
    %c0_64 = arith.constant 0 : index
    %c0_65 = arith.constant 0 : index
    %c0_66 = arith.constant 0 : index
    %97 = vector.load %arg13[%c0_64, %c0_65, %c0_66] : memref<1x16x4xf32, #tpu.memory_space<vmem>>, vector<1x16x4xf32>
    %98 = vector.shape_cast %97 : vector<1x16x4xf32> to vector<16x4xf32>
    %99 = vector.shape_cast %96 : vector<16x4xf32> to vector<1x16x4xf32>
    tpu.vector_store %arg13[%c0_64, %c0_65, %c0_66], %99 {strides = array<i32>} : memref<1x16x4xf32, #tpu.memory_space<vmem>>, vector<1x16x4xf32>,
    return
  }
  func.func @transform_0(%arg0: i32) -> (i32, i32, i32) {
    %c0_i32 = arith.constant 0 : i32
    %c0_i32_0 = arith.constant 0 : i32
    %c0_i32_1 = arith.constant 0 : i32
    return %arg0, %c0_i32, %c0_i32_0 : i32, i32, i32
  }
  func.func @transform_1(%arg0: i32) -> (i32, i32, i32) {
    %c0_i32 = arith.constant 0 : i32
    %c0_i32_0 = arith.constant 0 : i32
    %c0_i32_1 = arith.constant 0 : i32
    return %arg0, %c0_i32, %c0_i32_0 : i32, i32, i32
  }
  func.func @transform_2(%arg0: i32) -> (i32, i32) {
    %c0_i32 = arith.constant 0 : i32
    %c0_i32_0 = arith.constant 0 : i32
    %c0_i32_1 = arith.constant 0 : i32
    return %c0_i32, %c0_i32_0 : i32, i32
  }
  func.func @transform_3(%arg0: i32) -> (i32, i32) {
    %c0_i32 = arith.constant 0 : i32
    %c0_i32_0 = arith.constant 0 : i32
    %c0_i32_1 = arith.constant 0 : i32
    return %c0_i32, %c0_i32_0 : i32, i32
  }
  func.func @transform_4(%arg0: i32) -> (i32, i32) {
    %c0_i32 = arith.constant 0 : i32
    %c0_i32_0 = arith.constant 0 : i32
    %c0_i32_1 = arith.constant 0 : i32
    return %c0_i32, %c0_i32_0 : i32, i32
  }
  func.func @transform_5(%arg0: i32) -> (i32, i32) {
    %c0_i32 = arith.constant 0 : i32
    %c0_i32_0 = arith.constant 0 : i32
    %c0_i32_1 = arith.constant 0 : i32
    return %c0_i32, %c0_i32_0 : i32, i32
  }
  func.func @transform_6(%arg0: i32) -> (i32, i32, i32) {
    %c0_i32 = arith.constant 0 : i32
    %c0_i32_0 = arith.constant 0 : i32
    %c0_i32_1 = arith.constant 0 : i32
    %c0_i32_2 = arith.constant 0 : i32
    return %c0_i32, %c0_i32_0, %c0_i32_1 : i32, i32, i32
  }
  func.func @transform_7(%arg0: i32) -> (i32, i32, i32) {
    %c0_i32 = arith.constant 0 : i32
    %c0_i32_0 = arith.constant 0 : i32
    %c0_i32_1 = arith.constant 0 : i32
    %c0_i32_2 = arith.constant 0 : i32
    return %c0_i32, %c0_i32_0, %c0_i32_1 : i32, i32, i32
  }
  func.func @transform_8(%arg0: i32) -> (i32, i32, i32) {
    %c0_i32 = arith.constant 0 : i32
    %c0_i32_0 = arith.constant 0 : i32
    %c0_i32_1 = arith.constant 0 : i32
    %c0_i32_2 = arith.constant 0 : i32
    return %c0_i32, %c0_i32_0, %c0_i32_1 : i32, i32, i32
  }
  func.func @transform_9(%arg0: i32) -> (i32, i32, i32) {
    %c0_i32 = arith.constant 0 : i32
    %c0_i32_0 = arith.constant 0 : i32
    %c0_i32_1 = arith.constant 0 : i32
    %c0_i32_2 = arith.constant 0 : i32
    return %c0_i32, %c0_i32_0, %c0_i32_1 : i32, i32, i32
  }
  func.func @transform_10(%arg0: i32) -> (i32, i32) {
    %c0_i32 = arith.constant 0 : i32
    %c0_i32_0 = arith.constant 0 : i32
    %c0_i32_1 = arith.constant 0 : i32
    return %c0_i32, %c0_i32_0 : i32, i32
  }
  func.func @transform_11(%arg0: i32) -> (i32, i32) {
    %c0_i32 = arith.constant 0 : i32
    %c0_i32_0 = arith.constant 0 : i32
    %c0_i32_1 = arith.constant 0 : i32
    return %c0_i32, %c0_i32_0 : i32, i32
  }
  func.func @transform_12(%arg0: i32) -> (i32, i32, i32) {
    %c0_i32 = arith.constant 0 : i32
    %c0_i32_0 = arith.constant 0 : i32
    %c0_i32_1 = arith.constant 0 : i32
    return %arg0, %c0_i32, %c0_i32_0 : i32, i32, i32
  }
}

</mosaic_0001>

<bundles_post_ra>
// kernel: _lambda_.7
= control target key start
LH: loop header
LB: loop body
LE: loop exit
PB: predicated region body
PF: predicated region fallthrough
CT: control target
= control target key end

     0   :  { %8 = vsyncpa [#allocation3], 0  ;;  %s102_s15 = smov [#allocation2]   ;;  %s103_s17 = smov 128   ;;  %s137_s0 = inlined_call_operand.vmem [shape: f32[2,32], index: 0, kind: input, shape index: {}]   ;;  %s138_s1 = inlined_call_operand.hbm [shape: f32[32,32], index: 1, kind: input, shape index: {}]   ;;  %s139_s2 = inlined_call_operand.vmem [shape: f32[1,32], index: 2, kind: input, shape index: {}]   ;;  %s140_s3 = inlined_call_operand.vmem [shape: f32[2,32], index: 3, kind: output, shape index: {}]  }
   0x1   :  { %s15_s14 = sshll.u32 %s138_s1, 4  ;;  %s17_s16 = sshll.u32 %s102_s15, 4  ;;  %s16_s14 = int_to_ptr.hbm [resolvable:$true] %s15_s14  ;;  %s18_s16 = int_to_ptr.vmem [resolvable:$true] %s17_s16 }
   0x2   :  { %s104_s18 = smov 8  }
   0x3   :  { %23 = dma.hbm_to_vmem [thread:$0]  %s16_s14, 512, %s18_s16, [#allocation3], %s103_s17, %s103_s17, %s104_s18  }
   0x4   :  { %100 = dma.done.wait [#allocation3], 512  }
   0x5   :  { %101 = vsyncadd [#allocation3], 4294966784  ;;  %v34_v0 = vld [vmem:[#allocation2 + $0x18] sm:$0xff]  ;;  %v33_v1 = vld [vmem:[#allocation2 + $0x10] sm:$0xff]  ;;  %vm39_vm0 = vcmask 261120   ;;  %vm64_vm1 = vcmask 254976  }
   0x6   :  { %55 = vmatpush.msra.mxu0 %v34_v0  ;;  %v32_v2 = vld [vmem:[#allocation2 + $0x8] sm:$0xff]  ;;  %v31_v3 = vld [vmem:[#allocation2] sm:$0xff] }
   0x7   :  { %v30_v4 = vld [vmem:[%s137_s0] sm:$0x3] }
   0x8   :  { %56 = vmatpush.msra.mxu0 %v33_v1  ;;  %v75_v5 = vld [vmem:[%s139_s2] ss:$0 sm:$0xff] }
   0xa   :  { %57 = vmatpush.msra.mxu0 %v32_v2 }
   0xc   :  { %58 = vmatpush.msra.mxu0 %v31_v3 }
   0xd   :  { %71 = vmatmul.msk.f32.vlgmr.msra.gmra.mxu0 %vm39_vm0, %v30_v4 }
  0x8a   :  { %v60_v6 = vpop.f32.mrf.mxu0 }
  0x8b   :  { %v61_v7 = vadd.f32 %v75_v5, %v60_v6 }
  0x8d   :  { %v63_v8 = vmax.f32 %v61_v7, 0.0 }
  0x8f   :  { %65 = vst.msk [vmem:[%s140_s3] sm:$0x3] %vm64_vm1, %v63_v8 }
  0x90   :  { %70 = vsyncpa [#allocation3], 1 }

// kernel: _lambda_.9
= control target key start
LH: loop header
LB: loop body
LE: loop exit
PB: predicated region body
PF: predicated region fallthrough
CT: control target
= control target key end

     0   :  { %15 = vsyncpa [#allocation5], 0  ;;  %s1218_s0 = inlined_call_operand.vmem [shape: f32[2,16,16], index: 0, kind: input, shape index: {}]   ;;  %s1219_s1 = inlined_call_operand.vmem [shape: f32[2,1,32], index: 1, kind: input, shape index: {}]   ;;  %s1220_s2 = inlined_call_operand.hbm [shape: f32[48,32], index: 2, kind: input, shape index: {}]   ;;  %s1221_s3 = inlined_call_operand.vmem [shape: f32[1,32], index: 3, kind: input, shape index: {}, may-alias: {3,5,7,9}]   ;;  %s1222_s4 = inlined_call_operand.hbm [shape: f32[32,32], index: 4, kind: input, shape index: {}]   ;;  %s1223_s5 = inlined_call_operand.vmem [shape: f32[1,32], index: 5, kind: input, shape index: {}, may-alias: {3,5,7,9}]   ;;  %s1224_s6 = inlined_call_operand.hbm [shape: f32[96,32], index: 6, kind: input, shape index: {}]   ;;  %s1225_s7 = inlined_call_operand.vmem [shape: f32[1,32], index: 7, kind: input, shape index: {}, may-alias: {3,5,7,9}]   ;;  %s1226_s8 = inlined_call_operand.hbm [shape: f32[128,32], index: 8, kind: input, shape index: {}]   ;;  %s1227_s9 = inlined_call_operand.vmem [shape: f32[1,32], index: 9, kind: input, shape index: {}, may-alias: {3,5,7,9}]   ;;  %s1228_s10 = inlined_call_operand.vmem [shape: f32[2,8,32], index: 10, kind: output, shape index: {}]  }
   0x1   :  { %16 = vsyncpa [#allocation7], 0 }
   0x2   :  { %17 = vsyncpa [#allocation10], 0  ;;  %s1097_s13 = smov 0  }
   0x3 LB: > { %s1103_s14 = sadd.s32 4294967295, %s1029_s13   ;;  %p792_p0 = scmp.ge.s32.totalorder %s1029_s13, 1  ;;  %s1029_s13 = sphi %s1097_s13, %s23_s13  }
   0x4   : > { %p274_p1 = scmp.lt.s32.totalorder %s1029_s13, 3  ;;  %p841_p2 = scmp.eq.s32.totalorder %s1103_s14, 0 }
   0x5   : > { %s302_s17 = sshll.u32 %s1222_s4, 4  ;;  %s285_s21 = sshll.u32 %s1220_s2, 4  ;;  %s303_s17 = int_to_ptr.hbm [resolvable:$true] %s302_s17  ;;  %s286_s21 = int_to_ptr.hbm [resolvable:$true] %s285_s21 }
   0x6   : > { %p1111_p3 = pnand %p792_p0, %p274_p1  ;;  %s1031_s22 = smov [#allocation6]  }
   0x7   : > { %s304_s23 = sshll.u32 %s1031_s22, 4  ;;  %s1032_s25 = smov [#allocation4]   ;;  %s305_s23 = int_to_ptr.vmem [resolvable:$true] %s304_s23 }
   0x8   : > { %p828_p4 = pneg %p1111_p3  ;;  %s287_s26 = sshll.u32 %s1032_s25, 4  ;;  %s288_s26 = int_to_ptr.vmem [resolvable:$true] %s287_s26 }
   0x9   : > { %s319_s29 = sshll.u32 %s1224_s6, 4  ;;  %s1033_s30 = smov 128   ;;  %s320_s29 = int_to_ptr.hbm [resolvable:$true] %s319_s29 }
   0xa   : > { %p1122_p5 = pnand %p841_p2, %p828_p4  ;;  %s1034_s11 = smov 8  }
   0xb   : > { %s1035_s12 = smov [#allocation8]   ;;  %s336_s20 = sshll.u32 %s1226_s8, 4  ;;  %s337_s20 = int_to_ptr.hbm [resolvable:$true] %s336_s20 }
   0xc   : > { %834 = dma.hbm_to_vmem [thread:$0]  (!%p1122_p5), %s303_s17, 512, %s305_s23, [#allocation7], %s1033_s30, %s1033_s30, %s1034_s11  }
   0xd   : > { %831 = dma.hbm_to_vmem [thread:$0]  (!%p1122_p5), %s286_s21, 768, %s288_s26, [#allocation5], %s1033_s30, %s1033_s30, %s1034_s11  }
   0xe   : > { %s321_s15 = sshll.u32 %s1035_s12, 4  ;;  %s1036_s22 = smov [#allocation9]   ;;  %s322_s15 = int_to_ptr.vmem [resolvable:$true] %s321_s15 }
   0xf   : > { %837 = dma.hbm_to_vmem [thread:$0]  (!%p1122_p5), %s320_s29, 1536, %s322_s15, [#allocation7], %s1033_s30, %s1033_s30, %s1034_s11  }
  0x10   : > { %s338_s25 = sshll.u32 %s1036_s22, 4  ;;  %371 = sbr.rel (%p1111_p3) target bundleno = 859 (0x35b), region = 60  ;;  %s339_s25 = int_to_ptr.vmem [resolvable:$true] %s338_s25 }
  0x11   : > { %840 = dma.hbm_to_vmem [thread:$0]  (!%p1122_p5), %s337_s20, 2048, %s339_s25, [#allocation10], %s1033_s30, %s1033_s30, %s1034_s11  }
  0x15   : > { %1016 = dma.done.wait (%p841_p2), [#allocation5], 768  }
  0x16   : > { %1018 = vsyncadd (%p841_p2), [#allocation5], 4294966528 }
  0x17   : > { %1020 = dma.done.wait (%p841_p2), [#allocation7], 2048  }
  0x18   : > { %1022 = vsyncadd (%p841_p2), [#allocation7], 4294965248 }
  0x19   : > { %1024 = dma.done.wait (%p841_p2), [#allocation10], 2048  }
  0x1a   : > { %1026 = vsyncadd (%p841_p2), [#allocation10], 4294965248  ;;  %p427_p6 = scmp.lt.s32.totalorder %s1103_s14, 1  ;;  %vm440_vm0 = vcmask 130048   ;;  %v1037_v0 = vmov 0.0   ;;  %s1038_s24 = smov 16  }
  0x1b   : > { %442 = vst.msk [vmem:[#allocation2 + $0x8] sm:$0xff] %vm440_vm0, %v1037_v0  ;;  %s1039_s26 = smov 32   ;;  %v515_v9 = vld [vmem:[#allocation4 + $0x20] sm:$0xff]  ;;  %v516_v10 = vld [vmem:[#allocation4 + $0x28] sm:$0xff]  ;;  %v513_v14 = vld [vmem:[#allocation4 + $0x10] sm:$0xff]  ;;  %vm445_vm1 = vcmask 261120  }
  0x1c   : > { %s1232_s14 = smov (!%p427_p6, %s1103_s14), 1  ;;  %443 = vst.msk [vmem:[#allocation2 + $0x10] sm:$0xff] %vm440_vm0, %v1037_v0  ;;  %v519_v11 = vpack.c.bf16 %v516_v10, %v515_v9  ;;  %v458_v12 = vld [vmem:[#allocation6 + $0x18] sm:$0xff]  ;;  %v457_v13 = vld [vmem:[#allocation6 + $0x10] sm:$0xff]  ;;  %v514_v15 = vld [vmem:[#allocation4 + $0x18] sm:$0xff]  ;;  %vm524_vm2 = vcmask 392192  }
  0x1d   : > { %441 = vst.msk [vmem:[#allocation2] sm:$0xff] %vm440_vm0, %v1037_v0  ;;  %s811_s17 = sshll.u32 %s1232_s14, 4  ;;  %475 = vmatpush.msra.mxu0 %v458_v12  ;;  %v518_v16 = vpack.c.bf16 %v514_v15, %v513_v14  ;;  %s434_s29 = scalar_lea.vmem %s1219_s1, %s1232_s14  ;;  %v456_v17 = vld [vmem:[#allocation6 + $0x8] sm:$0xff]  ;;  %v511_v18 = vld [vmem:[#allocation4] sm:$0xff]  ;;  %v512_v19 = vld [vmem:[#allocation4 + $0x8] sm:$0xff]  ;;  %vm573_vm3 = vcmask 523264  }
  0x1e   : > { %444 = vst.msk [vmem:[#allocation2 + $0x18] sm:$0xff] %vm440_vm0, %v1037_v0  ;;  %s431_s23 = scalar_lea.vmem %s1218_s0, %s811_s17  ;;  %533 = vmatpush.bf16.msra.mxu1 %v519_v11  ;;  %v455_v20 = vld [vmem:[#allocation6] sm:$0xff]  ;;  %v517_v21 = vpack.c.bf16 %v512_v19, %v511_v18  ;;  %v454_v22 = vld [vmem:[%s434_s29] sm:$0x1]  ;;  %v588_v45 = vld [vmem:[#allocation8 + $0x58] sm:$0xff]  ;;  %s1040_s16 = smov 64  }
  0x1f   : > { %v450_v1 = vld [vmem:[%s431_s23] sm:$0xff]  ;;  %v451_v2 = vld [vmem:[%s431_s23 + $0x8] sm:$0xff]  ;;  %476 = vmatpush.msra.mxu0 %v457_v13  ;;  %446 = vst.msk [vmem:[#allocation3] sm:$0xff] %vm445_vm1, %v1037_v0  ;;  %v585_v46 = vld [vmem:[#allocation8 + $0x40] sm:$0xff]  ;;  %vm599_vm4 = vcmask 785408   ;;  %s1041_s22 = smov 96  }
  0x20   : > { %452 = vst.msk [vmem:[#allocation2 + $0x8] sm:$0xff] %vm440_vm0, %v450_v1  ;;  %v459_v36 = vld [vmem:[%s1223_s5] sm:$0x1]  ;;  %v586_v48 = vld [vmem:[#allocation8 + $0x48] sm:$0xff]  ;;  %v584_v53 = vld [vmem:[#allocation8 + $0x38] sm:$0xff]  ;;  %s805_s25 = sshll.u32 %s1232_s14, 3 }
  0x21   : > { %453 = vst.msk [vmem:[#allocation2 + $0x10] sm:$0xff] %vm440_vm0, %v451_v2  ;;  %477 = vmatpush.msra.mxu0 %v456_v17  ;;  %v888_v40 = vld [vmem:[%s1221_s3] ss:$0 sm:$0xff]  ;;  %v593_v50 = vpack.c.bf16 %v586_v48, %v585_v46  ;;  %v581_v1 = vld [vmem:[#allocation8 + $0x20] sm:$0xff]  ;;  %v582_v2 = vld [vmem:[#allocation8 + $0x28] sm:$0xff] }
  0x22   : > { %534 = vmatpush.bf16.msra.mxu1 %v518_v16  ;;  %447 = vst.msk [vmem:[#allocation3 + $0x8] sm:$0xff] %vm445_vm1, %v1037_v0  ;;  %v587_v44 = vld [vmem:[#allocation8 + $0x50] sm:$0xff]  ;;  %v652_v46 = vld [vmem:[#allocation9 + $0x38] sm:$0xff]  ;;  %v649_v48 = vld [vmem:[#allocation9 + $0x20] sm:$0xff] }
  0x23   : > { %478 = vmatpush.msra.mxu0 %v455_v20  ;;  %448 = vst.msk [vmem:[#allocation3 + $0x10] sm:$0xff] %vm445_vm1, %v1037_v0  ;;  %v594_v47 = vpack.c.bf16 %v588_v45, %v587_v44  ;;  %v583_v52 = vld [vmem:[#allocation8 + $0x30] sm:$0xff] }
  0x24   : > { %806 = vmatmul.msk.f32.vlgmr.msra.gmra.mxu0 %vm445_vm1, %v454_v22  ;;  %449 = vst.msk [vmem:[#allocation3 + $0x18] sm:$0xff] %vm445_vm1, %v1037_v0  ;;  %v592_v55 = vpack.c.bf16 %v584_v53, %v583_v52  ;;  %v651_v45 = vld [vmem:[#allocation9 + $0x30] sm:$0xff]  ;;  %v648_v52 = vld [vmem:[#allocation9 + $0x18] sm:$0xff] }
  0x25   : > { %605 = vmatpush.bf16.msra.mxu2 %v594_v47  ;;  %v664_v47 = vpack.c.bf16 %v652_v46, %v651_v45 }
  0x26   : > { %535 = vmatpush.bf16.msra.mxu1 %v517_v21 }
  0x27   : > { %v486_v3 = vld [vmem:[#allocation2 + $0x8] sm:$0xff] }
  0x28   : > { %v487_v4 = vld [vmem:[#allocation2 + $0x10] sm:$0xff]  ;;  %v484_v26 = vld [vmem:[#allocation2 + $0x7] sm:$0xff] }
  0x29   : > { %v868_v5 = vpack.i.bf16 %v487_v4, %v486_v3  ;;  %v488_v6 = vld [vmem:[#allocation2 + $0x9] sm:$0xff]  ;;  %v489_v7 = vld [vmem:[#allocation2 + $0x11] sm:$0xff]  ;;  %606 = vmatpush.bf16.msra.mxu2 %v593_v50  ;;  %v591_v3 = vpack.c.bf16 %v582_v2, %v581_v1  ;;  %v579_v4 = vld [vmem:[#allocation8 + $0x10] sm:$0xff] }
  0x2a   : > { %v873_v8 = vpack.i.bf16 %v489_v7, %v488_v6  ;;  %v485_v27 = vld [vmem:[#allocation2 + $0xf] sm:$0xff]  ;;  %v890_v1 = vld [vmem:[%s1227_s9] ss:$0 sm:$0xff] }
  0x2b   : > { %869 = vrot.lane.b32.xlu0 %v868_v5, %s1038_s24  ;;  %v580_v5 = vld [vmem:[#allocation8 + $0x18] sm:$0xff]  ;;  %v577_v7 = vld [vmem:[#allocation8] sm:$0xff]  ;;  %s438_s24 = scalar_lea.vmem %s1228_s10, %s805_s25 }
  0x2c   : > { %v590_v6 = vpack.c.bf16 %v580_v5, %v579_v4 }
  0x2d   : > { %607 = vmatpush.bf16.msra.mxu2 %v592_v55  ;;  %v646_v55 = vld [vmem:[#allocation9 + $0x8] sm:$0xff] }
  0x31   : > { %608 = vmatpush.bf16.msra.mxu2 %v591_v3 }
  0x33   : > { %874 = vrot.lane.b32.xlu0 %v873_v8, %s1039_s26  ;;  %v578_v8 = vld [vmem:[#allocation8 + $0x8] sm:$0xff] }
  0x34   : > { %v589_v9 = vpack.c.bf16 %v578_v8, %v577_v7 }
  0x35   : > { %609 = vmatpush.bf16.msra.mxu2 %v590_v6 }
  0x39   : > { %610 = vmatpush.bf16.msra.mxu2 %v589_v9 }
  0x9d   : > { %v870_v23 = vpop.permute.xlu0 %869 }
  0x9e   : > { %v872_v24 = vunpack.i.h.bf16 %v870_v23  ;;  %v871_v25 = vunpack.i.l.bf16 %v870_v23  ;;  %v889_v23 = vld [vmem:[%s1225_s7] ss:$0 sm:$0xff] }
  0xa0   : > { %v506_v31 = vsel %vm440_vm0, %v484_v26, %v871_v25  ;;  %v507_v32 = vsel %vm440_vm0, %v485_v27, %v872_v24  ;;  %v659_v24 = vld [vmem:[#allocation9 + $0x70] sm:$0xff]  ;;  %v660_v25 = vld [vmem:[#allocation9 + $0x78] sm:$0xff] }
  0xa1   : > { %v480_v37 = vpop.f32.mrf.mxu0  ;;  %v668_v26 = vpack.c.bf16 %v660_v25, %v659_v24 }
  0xa2   : > { %v481_v38 = vadd.f32 %v480_v37, %v459_v36  ;;  %v657_v36 = vld [vmem:[#allocation9 + $0x60] sm:$0xff]  ;;  %v658_v37 = vld [vmem:[#allocation9 + $0x68] sm:$0xff] }
  0xa3   : > { %673 = vmatpush.bf16.msra.mxu3 %v668_v26 }
  0xa4   : > { %v483_v39 = vmax.f32 %v481_v38, 0.0  ;;  %v667_v38 = vpack.c.bf16 %v658_v37, %v657_v36 }
  0xa5   : > { %v875_v28 = vpop.permute.xlu0 %874 }
  0xa6   : > { %v877_v29 = vunpack.i.h.bf16 %v875_v28  ;;  %v876_v30 = vunpack.i.l.bf16 %v875_v28  ;;  %v544_v42 = vperm.slane %v483_v39, 0  ;;  %v655_v39 = vld [vmem:[#allocation9 + $0x50] sm:$0xff] }
  0xa7   : > { %674 = vmatpush.bf16.msra.mxu3 %v667_v38 }
  0xa8   : > { %v508_v33 = vsel %vm445_vm1, %v506_v31, %v876_v30  ;;  %v509_v34 = vsel %vm445_vm1, %v507_v32, %v877_v29 }
  0xa9   : > { %v510_v35 = vpack.c.bf16 %v509_v34, %v508_v33 }
  0xab   : > { %807 = vmatmul.msk.bf16.vlgmr.msra.gmra.mxu1 %vm524_vm2, %v510_v35 }
 0x128   : > { %v537_v41 = vpop.f32.mrf.mxu1 }
 0x129   : > { %v538_v43 = vadd.f32 %v888_v40, %v537_v41 }
 0x12b   : > { %v542_v49 = vmax.f32 %v538_v43, 0.0  ;;  %v654_v43 = vld [vmem:[#allocation9 + $0x48] sm:$0xff] }
 0x12d   : > { %v545_v51 = vadd.f32 %v544_v42, %v542_v49  ;;  %v650_v49 = vld [vmem:[#allocation9 + $0x28] sm:$0xff] }
 0x12e   : > { %v663_v50 = vpack.c.bf16 %v650_v49, %v649_v48 }
 0x12f   : > { %547 = vst.msk [vmem:[#allocation3 + $0x8] sm:$0xff] %vm445_vm1, %v545_v51  ;;  %v647_v51 = vld [vmem:[#allocation9 + $0x10] sm:$0xff] }
 0x130   : > { %v539_v54 = vpop.f32.mrf.mxu1  ;;  %v662_v53 = vpack.c.bf16 %v648_v52, %v647_v51 }
 0x131   : > { %v540_v56 = vadd.f32 %v888_v40, %v539_v54  ;;  %v656_v40 = vld [vmem:[#allocation9 + $0x58] sm:$0xff]  ;;  %v645_v54 = vld [vmem:[#allocation9] sm:$0xff] }
 0x132   : > { %v666_v41 = vpack.c.bf16 %v656_v40, %v655_v39 }
 0x133   : > { %v543_v57 = vmax.f32 %v540_v56, 0.0  ;;  %v661_v56 = vpack.c.bf16 %v646_v55, %v645_v54 }
 0x134   : > { %675 = vmatpush.bf16.msra.mxu3 %v666_v41 }
 0x135   : > { %v546_v58 = vadd.f32 %v544_v42, %v543_v57  ;;  %v653_v42 = vld [vmem:[#allocation9 + $0x40] sm:$0xff] }
 0x136   : > { %v551_v59 = vld [vmem:[#allocation3 + $0x8] sm:$0xff]  ;;  %v665_v44 = vpack.c.bf16 %v654_v43, %v653_v42 }
 0x137   : > { %548 = vst.msk [vmem:[#allocation3 + $0x10] sm:$0xff] %vm445_vm1, %v546_v58  ;;  %v549_v14 = vld [vmem:[#allocation3 + $0x7] sm:$0xff] }
 0x138   : > { %676 = vmatpush.bf16.msra.mxu3 %v665_v44 }
 0x13c   : > { %677 = vmatpush.bf16.msra.mxu3 %v664_v47 }
 0x13e   : > { %v552_v60 = vld [vmem:[#allocation3 + $0x10] sm:$0xff] }
 0x13f   : > { %v878_v61 = vpack.i.bf16 %v552_v60, %v551_v59  ;;  %v553_v62 = vld [vmem:[#allocation3 + $0x9] sm:$0xff]  ;;  %v554_v63 = vld [vmem:[#allocation3 + $0x11] sm:$0xff] }
 0x140   : > { %v883_v0 = vpack.i.bf16 %v554_v63, %v553_v62  ;;  %v550_v15 = vld [vmem:[#allocation3 + $0xf] sm:$0xff]  ;;  %678 = vmatpush.bf16.msra.mxu3 %v663_v50 }
 0x141   : > { %879 = vrot.lane.b32.xlu1 %v878_v61, %s1039_s26 }
 0x144   : > { %679 = vmatpush.bf16.msra.mxu3 %v662_v53 }
 0x148   : > { %680 = vmatpush.bf16.msra.mxu3 %v661_v56 }
 0x149   : > { %884 = vrot.lane.b32.xlu1 %v883_v0, %s1040_s16 }
 0x1b3   : > { %v880_v10 = vpop.permute.xlu1 %879 }
 0x1b4   : > { %v882_v11 = vunpack.i.h.bf16 %v880_v10  ;;  %v881_v12 = vunpack.i.l.bf16 %v880_v10 }
 0x1b6   : > { %v571_v18 = vsel %vm445_vm1, %v549_v14, %v881_v12  ;;  %v572_v19 = vsel %vm445_vm1, %v550_v15, %v882_v11 }
 0x1bb   : > { %v885_v13 = vpop.permute.xlu1 %884 }
 0x1bc   : > { %v887_v16 = vunpack.i.h.bf16 %v885_v13  ;;  %v886_v17 = vunpack.i.l.bf16 %v885_v13 }
 0x1be   : > { %v574_v20 = vsel %vm573_vm3, %v571_v18, %v886_v17  ;;  %v575_v21 = vsel %vm573_vm3, %v572_v19, %v887_v16 }
 0x1bf   : > { %v576_v22 = vpack.c.bf16 %v575_v21, %v574_v20 }
 0x1c1   : > { %808 = vmatmul.msk.bf16.vlgmr.msra.gmra.mxu2 %vm599_vm4, %v576_v22 }
 0x244   : > { %v612_v27 = vpop.f32.mrf.mxu2 }
 0x245   : > { %v613_v28 = vadd.f32 %v889_v23, %v612_v27 }
 0x247   : > { %v617_v29 = vmax.f32 %v613_v28, 0.0 }
 0x249   : > { %619 = vst.msk [vmem:[#allocation3 + $0x8] sm:$0xff] %vm445_vm1, %v617_v29 }
 0x24c   : > { %v614_v30 = vpop.f32.mrf.mxu2 }
 0x24d   : > { %v615_v31 = vadd.f32 %v889_v23, %v614_v30 }
 0x24f   : > { %v618_v32 = vmax.f32 %v615_v31, 0.0 }
 0x251   : > { %620 = vst.msk [vmem:[#allocation3 + $0x10] sm:$0xff] %vm445_vm1, %v618_v32 }
 0x258   : > { %v628_v33 = vld [vmem:[#allocation3 + $0xa] ss:$2 sm:$0xff]  ;;  %v626_v35 = vld [vmem:[#allocation3 + $0x9] ss:$2 sm:$0xff] }
 0x259   : > { %v624_v34 = vld [vmem:[#allocation3 + $0x8] ss:$2 sm:$0xff]  ;;  %638 = vrot.lane.b32.xlu0 %v628_v33, %s1041_s22  ;;  %v622_v59 = vld [vmem:[#allocation3 + $0x7] ss:$2 sm:$0xff] }
 0x25a   : > { %630 = vrot.lane.b32.xlu2 %v624_v34, %s1039_s26 }
 0x262   : > { %634 = vrot.lane.b32.xlu2 %v626_v35, %s1040_s16 }
 0x2b4   : > { %v631_v57 = vpop.permute.xlu2 %630 }
 0x2b5   : > { %v641_v60 = vsel %vm445_vm1, %v622_v59, %v631_v57 }
 0x2bc   : > { %v635_v58 = vpop.permute.xlu2 %634 }
 0x2bd   : > { %v642_v61 = vsel %vm573_vm3, %v641_v60, %v635_v58 }
 0x2cb   : > { %v639_v62 = vpop.permute.xlu0 %638 }
 0x2cc   : > { %v643_v63 = vsel %vm599_vm4, %v642_v61, %v639_v62 }
 0x2cd   : > { %v644_v0 = vpack.c.bf16 %v643_v63, %v643_v63 }
 0x2cf   : > { %681 = vmatmul.bf16.vlgmr.msra.gmra.mxu3 %v644_v0 }
 0x352   : > { %v682_v2 = vpop.f32.mrf.mxu3 }
 0x353   : > { %v683_v3 = vadd.f32 %v890_v1, %v682_v2 }
 0x355   : > { %686 = vst.msk [vmem:[%s438_s24] sm:$0xff] %vm445_vm1, %v683_v3 }
 0x35a   : > { %v684_v4 = vpop.f32.mrf.mxu3 }
 0x35b PF: > { %s23_s13 = sadd.s32 1, %s1029_s13  }
 0x35c   : > { %p20_p7 = scmp.ge.s32.totalorder %s23_s13, 4  }
 0x35e   :  { %22 = sbr.rel (!%p20_p7) target bundleno = 3 (0x3), region = 114 }
 0x363   :  { %706 = vsyncpa [#allocation5], 1 }
 0x364   :  { %708 = vsyncpa [#allocation5 + $0x1], 1 }
 0x365   :  { %709 = vsyncpa [#allocation7], 1 }
 0x366   :  { %710 = vsyncpa [#allocation10], 1 }

// kernel: _lambda_.8
= control target key start
LH: loop header
LB: loop body
LE: loop exit
PB: predicated region body
PF: predicated region fallthrough
CT: control target
= control target key end

     0   :  { %17 = vsyncpa [#allocation4], 0  ;;  %s1436_s0 = inlined_call_operand.vmem [shape: f32[2,16,4], index: 0, kind: input, shape index: {}]   ;;  %s1437_s1 = inlined_call_operand.vmem [shape: f32[2,1,32], index: 1, kind: input, shape index: {}]   ;;  %s1438_s2 = inlined_call_operand.vmem [shape: f32[4,16], index: 2, kind: input, shape index: {}]   ;;  %s1439_s3 = inlined_call_operand.vmem [shape: f32[1,16], index: 3, kind: input, shape index: {}, may-alias: {3,5,11}]   ;;  %s1440_s4 = inlined_call_operand.hbm [shape: f32[32,16], index: 4, kind: input, shape index: {}]   ;;  %s1441_s5 = inlined_call_operand.vmem [shape: f32[1,16], index: 5, kind: input, shape index: {}, may-alias: {3,5,11}]   ;;  %s1442_s6 = inlined_call_operand.hbm [shape: f32[2,48,32], index: 6, kind: input, shape index: {}]   ;;  %s1443_s7 = inlined_call_operand.vmem [shape: f32[2,1,32], index: 7, kind: input, shape index: {}, may-alias: {7,9}]   ;;  %s1444_s8 = inlined_call_operand.hbm [shape: f32[2,16,32], index: 8, kind: input, shape index: {}]   ;;  %s1445_s9 = inlined_call_operand.vmem [shape: f32[2,1,32], index: 9, kind: input, shape index: {}, may-alias: {7,9}]   ;;  %s1446_s10 = inlined_call_operand.vmem [shape: f32[16,16], index: 10, kind: input, shape index: {}]   ;;  %s1447_s11 = inlined_call_operand.vmem [shape: f32[1,16], index: 11, kind: input, shape index: {}, may-alias: {3,5,11}]   ;;  %s1448_s12 = inlined_call_operand.vmem [shape: f32[2,16,16], index: 12, kind: output, shape index: {}]  }
   0x1   :  { %18 = vsyncpa [#allocation6], 0  ;;  %s1287_s21 = smov 0  }
   0x2 LB: > { %s1293_s22 = sadd.s32 4294967295, %s1211_s21   ;;  %p979_p0 = scmp.ge.s32.totalorder %s1211_s21, 1  ;;  %s1211_s21 = sphi %s1287_s21, %s24_s21  }
   0x3   : > { %p317_p1 = scmp.lt.s32.totalorder %s1211_s21, 3  ;;  %p1034_p2 = scmp.eq.s32.totalorder %s1293_s22, 0 }
   0x4   : > { %s351_s25 = sshll.u32 %s1442_s6, 4  ;;  %s334_s29 = sshll.u32 %s1440_s4, 4  ;;  %s352_s25 = int_to_ptr.hbm [resolvable:$true] %s351_s25  ;;  %s335_s29 = int_to_ptr.hbm [resolvable:$true] %s334_s29 }
   0x5   : > { %p1301_p3 = pnand %p979_p0, %p317_p1  ;;  %s1213_s30 = smov [#allocation5]  }
   0x6   : > { %s353_s13 = sshll.u32 %s1213_s30, 4  ;;  %s1214_s14 = smov [#allocation3]   ;;  %s354_s13 = int_to_ptr.vmem [resolvable:$true] %s353_s13 }
   0x7   : > { %p1024_p4 = pneg %p1301_p3  ;;  %s336_s15 = sshll.u32 %s1214_s14, 4  ;;  %s337_s15 = int_to_ptr.vmem [resolvable:$true] %s336_s15 }
   0x8   : > { %s368_s18 = sshll.u32 %s1444_s8, 4  ;;  %s1215_s19 = smov 128   ;;  %s369_s18 = int_to_ptr.hbm [resolvable:$true] %s368_s18 }
   0x9   : > { %p1025_p5 = pnand %p1034_p2, %p1024_p4  ;;  %s1216_s20 = smov 8  }
   0xa   : > { %s1217_s23 = smov [#allocation7]   ;;  %409 = sbr.rel (%p1301_p3) target bundleno = 1522 (0x5f2), region = 68 }
   0xb   : > { %1030 = dma.hbm_to_vmem [thread:$0]  (!%p1025_p5), %s352_s25, 1536, %s354_s13, [#allocation6], %s1215_s19, %s1215_s19, %s1216_s20  }
   0xc   : > { %1027 = dma.hbm_to_vmem [thread:$0]  (!%p1025_p5), %s335_s29, 512, %s337_s15, [#allocation4], %s1215_s19, %s1215_s19, %s1216_s20  }
   0xd   : > { %s370_s24 = sshll.u32 %s1217_s23, 4  ;;  %s371_s24 = int_to_ptr.vmem [resolvable:$true] %s370_s24 }
   0xe   : > { %1033 = dma.hbm_to_vmem [thread:$0]  (!%p1025_p5), %s369_s18, 512, %s371_s24, [#allocation6], %s1215_s19, %s1215_s19, %s1216_s20  }
   0xf   : > { %1202 = dma.done.wait (%p1034_p2), [#allocation4], 512  }
  0x10   : > { %1204 = vsyncadd (%p1034_p2), [#allocation4], 4294966784 }
  0x11   : > { %1206 = dma.done.wait (%p1034_p2), [#allocation6], 2048  }
  0x12   : > { %1208 = vsyncadd (%p1034_p2), [#allocation6], 4294965248  ;;  %p465_p6 = scmp.lt.s32.totalorder %s1293_s22, 1  ;;  %vm493_vm0 = vcmask 1043456   ;;  %vm486_vm1 = vcmask 31744   ;;  %v524_v1 = vld [vmem:[#allocation3 + $0x18] sm:$0xff] }
  0x13   : > { %v481_v0 = vld [vmem:[%s1438_s2] sm:$0xf]  ;;  %542 = vmatpush.msra.mxu1 %v524_v1  ;;  %v523_v3 = vld [vmem:[#allocation3 + $0x10] sm:$0xff]  ;;  %v522_v4 = vld [vmem:[#allocation3 + $0x8] sm:$0xff]  ;;  %vm526_vm2 = vcmask 261120   ;;  %vm550_vm3 = vcmask 130048  }
  0x14   : > { %s1451_s22 = smov (!%p465_p6, %s1293_s22), 1  ;;  %992 = vmatpush.msk.msra.mxu0 %vm493_vm0, %v481_v0  ;;  %v521_v5 = vld [vmem:[#allocation3] sm:$0xff]  ;;  %v1218_v8 = vmov 0.0   ;;  %s1219_s20 = smov 16   ;;  %v592_v27 = vld [vmem:[#allocation5 + $0x28] sm:$0xff]  ;;  %v589_v29 = vld [vmem:[#allocation5 + $0x10] sm:$0xff] }
  0x15   : > { %s1010_s25 = sshll.u32 %s1451_s22, 4  ;;  %s472_s15 = scalar_lea.vmem %s1437_s1, %s1451_s22  ;;  %543 = vmatpush.msra.mxu1 %v523_v3  ;;  %551 = vst.msk [vmem:[#allocation2] sm:$0xff] %vm550_vm3, %v1218_v8  ;;  %v525_v10 = vld [vmem:[%s1441_s5] sm:$0x1]  ;;  %v590_v30 = vld [vmem:[#allocation5 + $0x18] sm:$0xff]  ;;  %v588_v33 = vld [vmem:[#allocation5 + $0x8] sm:$0xff] }
  0x16   : > { %s469_s28 = scalar_lea.vmem %s1436_s0, %s1010_s25  ;;  %v520_v6 = vld [vmem:[%s472_s15] sm:$0x1]  ;;  %552 = vst.msk [vmem:[#allocation2 + $0x8] sm:$0xff] %vm550_vm3, %v1218_v8  ;;  %s1220_s23 = smov 32   ;;  %v594_v31 = vpack.c.bf16 %v590_v30, %v589_v29  ;;  %vm600_vm4 = vcmask 392192  }
  0x17   : > { %v479_v2 = vld [vmem:[%s469_s28] sm:$0xff]  ;;  %544 = vmatpush.msra.mxu1 %v522_v4  ;;  %v480_v7 = vld [vmem:[%s469_s28 + $0x8] sm:$0xff]  ;;  %554 = vst.msk [vmem:[#allocation2 + $0x18] sm:$0xff] %vm550_vm3, %v1218_v8  ;;  %s1221_s27 = smov 112   ;;  %s477_s28 = scalar_lea.vmem %s1448_s12, %s1010_s25 }
  0x18   : > { %993 = vmatmul.msk.f32.vlgmr.msra.gmra.mxu0 %vm486_vm1, %v479_v2  ;;  %553 = vst.msk [vmem:[#allocation2 + $0x10] sm:$0xff] %vm550_vm3, %v1218_v8  ;;  %v1077_v11 = vld [vmem:[%s1439_s3] ss:$0 sm:$0xff] }
  0x19   : > { %545 = vmatpush.msra.mxu1 %v521_v5  ;;  %v591_v26 = vld [vmem:[#allocation5 + $0x20] sm:$0xff] }
  0x1a   : > { %995 = vmatmul.msk.f32.vlgmr.msra.gmra.mxu1 %vm526_vm2, %v520_v6  ;;  %v595_v28 = vpack.c.bf16 %v592_v27, %v591_v26  ;;  %v587_v32 = vld [vmem:[#allocation5] sm:$0xff] }
  0x1b   : > { %v593_v34 = vpack.c.bf16 %v588_v33, %v587_v32  ;;  %v1078_v48 = vld [vmem:[%s1443_s7] ss:$0 sm:$0xff]  ;;  %v734_v32 = vld [vmem:[#allocation5 + $0x58] sm:$0xff] }
  0x1c   : > { %609 = vmatpush.bf16.msra.mxu2 %v595_v28  ;;  %v1079_v28 = vld [vmem:[%s1445_s9] ss:$0 sm:$0xff] }
  0x20   : > { %994 = vmatmul.msk.f32.gmra.mxu0 %vm486_vm1, %v480_v7  ;;  %610 = vmatpush.bf16.msra.mxu2 %v594_v31  ;;  %v733_v31 = vld [vmem:[#allocation5 + $0x50] sm:$0xff] }
  0x21   : > { %v737_v33 = vpack.c.bf16 %v734_v32, %v733_v31 }
  0x23   : > { %751 = vmatpush.bf16.msrb.mxu0 %v737_v33  ;;  %v812_v33 = vld [vmem:[#allocation7 + $0x10] sm:$0xff] }
  0x24   : > { %611 = vmatpush.bf16.msra.mxu2 %v593_v34 }
  0x95   : > { %v514_v9 = vpop.f32.mrf.mxu0 }
  0x96   : > { %v1355_v15 = vadd.f32 %v1077_v11, %v514_v9 }
  0x97   : > { %v547_v12 = vpop.f32.mrf.mxu1 }
  0x98   : > { %v548_v13 = vadd.f32 %v547_v12, %v525_v10 }
  0x9a   : > { %v1357_v16 = vperm.slane %v548_v13, 0 }
  0x9c   : > { %v556_v18 = vadd.f32 %v1357_v16, %v1355_v15 }
  0x9d   : > { %v517_v14 = vpop.f32.mrf.mxu0 }
  0x9e   : > { %v1359_v17 = vadd.f32 %v1077_v11, %v517_v14  ;;  %558 = vst.msk [vmem:[#allocation2 + $0x8] sm:$0xff] %vm550_vm3, %v556_v18  ;;  %v669_v18 = vld [vmem:[#allocation7] sm:$0xff] }
  0xa0   : > { %v557_v19 = vadd.f32 %v1357_v16, %v1359_v17 }
  0xa2   : > { %559 = vst.msk [vmem:[#allocation2 + $0x10] sm:$0xff] %vm550_vm3, %v557_v19  ;;  %v670_v19 = vld [vmem:[#allocation7 + $0x8] sm:$0xff] }
  0xa5   : > { %v562_v20 = vld [vmem:[#allocation2 + $0x8] sm:$0xff] }
  0xa6   : > { %v560_v39 = vld [vmem:[#allocation2 + $0x7] sm:$0xff] }
  0xa9   : > { %v563_v21 = vld [vmem:[#allocation2 + $0x10] sm:$0xff] }
  0xaa   : > { %v1057_v22 = vpack.i.bf16 %v563_v21, %v562_v20  ;;  %v564_v23 = vld [vmem:[#allocation2 + $0x9] sm:$0xff]  ;;  %v565_v24 = vld [vmem:[#allocation2 + $0x11] sm:$0xff]  ;;  %v671_v20 = vpack.c.bf16 %v670_v19, %v669_v18 }
  0xab   : > { %v1062_v25 = vpack.i.bf16 %v565_v24, %v564_v23  ;;  %v561_v40 = vld [vmem:[#allocation2 + $0xf] sm:$0xff] }
  0xac   : > { %1058 = vrot.lane.b32.xlu0 %v1057_v22, %s1219_s20  ;;  %686 = vmatpush.bf16.msra.mxu3 %v671_v20 }
  0xb4   : > { %1063 = vrot.lane.b32.xlu0 %v1062_v25, %s1220_s23 }
 0x11e   : > { %v1059_v35 = vpop.permute.xlu0 %1058 }
 0x11f   : > { %v1061_v36 = vunpack.i.h.bf16 %v1059_v35  ;;  %v1060_v37 = vunpack.i.l.bf16 %v1059_v35 }
 0x121   : > { %v582_v43 = vsel %vm550_vm3, %v560_v39, %v1060_v37  ;;  %v583_v44 = vsel %vm550_vm3, %v561_v40, %v1061_v36 }
 0x126   : > { %v1064_v38 = vpop.permute.xlu0 %1063 }
 0x127   : > { %v1066_v41 = vunpack.i.h.bf16 %v1064_v38  ;;  %v1065_v42 = vunpack.i.l.bf16 %v1064_v38 }
 0x129   : > { %v584_v45 = vsel %vm526_vm2, %v582_v43, %v1065_v42  ;;  %v585_v46 = vsel %vm526_vm2, %v583_v44, %v1066_v41 }
 0x12a   : > { %v586_v47 = vpack.c.bf16 %v585_v46, %v584_v45  ;;  %v731_v45 = vld [vmem:[#allocation5 + $0x40] sm:$0xff]  ;;  %v732_v46 = vld [vmem:[#allocation5 + $0x48] sm:$0xff] }
 0x12c   : > { %996 = vmatmul.msk.bf16.vlgmr.msra.gmra.mxu2 %vm600_vm4, %v586_v47  ;;  %v736_v47 = vpack.c.bf16 %v732_v46, %v731_v45  ;;  %v1081_v45 = vld [vmem:[%s1445_s9 + $0x1] ss:$0 sm:$0xff] }
 0x12e   : > { %752 = vmatpush.bf16.msrb.mxu0 %v736_v47 }
 0x1af   : > { %v613_v49 = vpop.f32.mrf.mxu2 }
 0x1b0   : > { %v614_v50 = vadd.f32 %v1078_v48, %v613_v49 }
 0x1b2   : > { %v997_v51 = vmul.f32 -1.442695, %v614_v50 }
 0x1b4   : > { %1083 = vpow2.f32 %v997_v51 }
 0x1b7   : > { %v615_v52 = vpop.f32.mrf.mxu2 }
 0x1b8   : > { %v616_v53 = vadd.f32 %v1078_v48, %v615_v52  ;;  %v729_v48 = vld [vmem:[#allocation5 + $0x30] sm:$0xff] }
 0x1ba   : > { %v1084_v54 = vpop.eup %1083  ;;  %v998_v55 = vmul.f32 -1.442695, %v616_v53 }
 0x1bb   : > { %v626_v56 = vadd.f32 1.0, %v1084_v54 }
 0x1bc   : > { %1085 = vpow2.f32 %v998_v55 }
 0x1bd   : > { %1087 = vrcp.f32 %v626_v56  ;;  %v639_v62 = vand.u32 2147483648, %v626_v56  ;;  %v637_v0 = vand.u32 2147483647, %v626_v56  ;;  %vm633_vm6 = vweird.f32 %v626_v56 }
 0x1bf   : > { %v640_v3 = vor.u32 1.1754944e-38, %v639_v62  ;;  %vm638_vm8 = vcmp.eq.f32.partialorder %v637_v0, 8.507059e+37  ;;  %v1080_v62 = vld [vmem:[%s1443_s7 + $0x1] ss:$0 sm:$0xff] }
 0x1c2   : > { %v1086_v57 = vpop.eup %1085 }
 0x1c3   : > { %v1088_v58 = vpop.eup %1087  ;;  %v627_v59 = vadd.f32 1.0, %v1086_v57 }
 0x1c4   : > { %v629_v60 = vmul.f32 %v1088_v58, %v626_v56  ;;  %vm634_vm5 = vweird.f32 %v1088_v58 }
 0x1c5   : > { %1089 = vrcp.f32 %v627_v59  ;;  %vm635_vm7 = vmor %vm633_vm6, %vm634_vm5  ;;  %v654_v8 = vand.u32 2147483648, %v627_v59  ;;  %v652_v10 = vand.u32 2147483647, %v627_v59  ;;  %vm648_vm10 = vweird.f32 %v627_v59 }
 0x1c6   : > { %v630_v61 = vsub.f32 1.0, %v629_v60  ;;  %1091 = vtanh.f32 %v614_v50 }
 0x1c7   : > { %v655_v12 = vor.u32 1.1754944e-38, %v654_v8  ;;  %vm653_vm12 = vcmp.eq.f32.partialorder %v652_v10, 8.507059e+37  ;;  %1093 = vtanh.f32 %v616_v53 }
 0x1c8   : > { %v631_v63 = vmul.f32 %v1088_v58, %v630_v61 }
 0x1ca   : > { %v632_v1 = vadd.f32 %v1088_v58, %v631_v63 }
 0x1cb   : > { %v1090_v2 = vpop.eup %1089 }
 0x1cc   : > { %v636_v4 = vsel %vm635_vm7, %v1088_v58, %v632_v1  ;;  %v644_v5 = vmul.f32 %v1090_v2, %v627_v59  ;;  %vm649_vm9 = vweird.f32 %v1090_v2  ;;  %v1092_v22 = vpop.eup %1091 }
 0x1cd   : > { %v641_v6 = vsel %vm638_vm8, %v640_v3, %v636_v4  ;;  %vm650_vm11 = vmor %vm648_vm10, %vm649_vm9  ;;  %v1094_v23 = vpop.eup %1093 }
 0x1ce   : > { %660 = vrot.lane.b32.xlu1 %v641_v6, %s1221_s27  ;;  %v645_v7 = vsub.f32 1.0, %v644_v5 }
 0x1d0   : > { %v646_v9 = vmul.f32 %v1090_v2, %v645_v7 }
 0x1d2   : > { %v647_v11 = vadd.f32 %v1090_v2, %v646_v9 }
 0x1d4   : > { %v651_v13 = vsel %vm650_vm11, %v1090_v2, %v647_v11 }
 0x1d5   : > { %v656_v14 = vsel %vm653_vm12, %v655_v12, %v651_v13 }
 0x1d6   : > { %662 = vrot.lane.b32.xlu1 %v656_v14, %s1221_s27 }
 0x240   : > { %v661_v21 = vpop.permute.xlu1 %660 }
 0x241   : > { %v666_v25 = vmul.f32 %v1092_v22, %v661_v21 }
 0x248   : > { %v663_v24 = vpop.permute.xlu1 %662 }
 0x249   : > { %v667_v26 = vmul.f32 %v1094_v23, %v663_v24 }
 0x24b   : > { %v668_v27 = vpack.c.bf16 %v667_v26, %v666_v25 }
 0x24d   : > { %999 = vmatmul.msk.bf16.vlgmr.msra.gmra.mxu3 %vm550_vm3, %v668_v27 }
 0x2d0   : > { %v688_v29 = vpop.f32.mrf.mxu3 }
 0x2d1   : > { %v1383_v30 = vadd.f32 %v1079_v28, %v688_v29 }
 0x2d3   : > { %v693_v34 = vadd.f32 %v1383_v30, %v1355_v15 }
 0x2d5   : > { %v697_v35 = vadd.f32 %v693_v34, %v1357_v16  ;;  %v813_v34 = vld [vmem:[#allocation7 + $0x18] sm:$0xff] }
 0x2d7   : > { %699 = vst.msk [vmem:[#allocation2 + $0x8] sm:$0xff] %vm550_vm3, %v697_v35  ;;  %v814_v35 = vpack.c.bf16 %v813_v34, %v812_v33 }
 0x2d8   : > { %v690_v36 = vpop.f32.mrf.mxu3 }
 0x2d9   : > { %v1389_v37 = vadd.f32 %v1079_v28, %v690_v36  ;;  %830 = vmatpush.bf16.msrb.mxu1 %v814_v35 }
 0x2db   : > { %v694_v38 = vadd.f32 %v1389_v37, %v1359_v17  ;;  %v730_v17 = vld [vmem:[#allocation5 + $0x38] sm:$0xff] }
 0x2dc   : > { %v735_v49 = vpack.c.bf16 %v730_v17, %v729_v48 }
 0x2dd   : > { %v698_v39 = vadd.f32 %v694_v38, %v1357_v16 }
 0x2de   : > { %v703_v40 = vld [vmem:[#allocation2 + $0x8] sm:$0xff]  ;;  %753 = vmatpush.bf16.msrb.mxu0 %v735_v49 }
 0x2df   : > { %700 = vst.msk [vmem:[#allocation2 + $0x10] sm:$0xff] %vm550_vm3, %v698_v39  ;;  %v701_v53 = vld [vmem:[#allocation2 + $0x6] sm:$0xff] }
 0x2e6   : > { %v704_v41 = vld [vmem:[#allocation2 + $0x10] sm:$0xff] }
 0x2e7   : > { %v1067_v42 = vpack.i.bf16 %v704_v41, %v703_v40  ;;  %v705_v15 = vld [vmem:[#allocation2 + $0xa] sm:$0xff]  ;;  %v706_v43 = vld [vmem:[#allocation2 + $0x12] sm:$0xff] }
 0x2e8   : > { %v1072_v44 = vpack.i.bf16 %v706_v43, %v705_v15  ;;  %v702_v54 = vld [vmem:[#allocation2 + $0xe] sm:$0xff] }
 0x2e9   : > { %1068 = vrot.lane.b32.xlu2 %v1067_v42, %s1219_s20  ;;  %v842_v43 = vld [vmem:[%s1446_s10 + $0x8] sm:$0xff] }
 0x2ea   : > { %871 = vmatpush.msrb.mxu3 %v842_v43 }
 0x2f1   : > { %1073 = vrot.lane.b32.xlu2 %v1072_v44, %s1220_s23  ;;  %v841_v44 = vld [vmem:[%s1446_s10] sm:$0xff] }
 0x2f2   : > { %872 = vmatpush.msrb.mxu3 %v841_v44 }
 0x343   : > { %v1069_v16 = vpop.permute.xlu2 %1068 }
 0x344   : > { %v1071_v50 = vunpack.i.h.bf16 %v1069_v16  ;;  %v1070_v51 = vunpack.i.l.bf16 %v1069_v16 }
 0x346   : > { %v723_v57 = vsel %vm550_vm3, %v701_v53, %v1070_v51  ;;  %v724_v58 = vsel %vm550_vm3, %v702_v54, %v1071_v50 }
 0x34b   : > { %v1074_v52 = vpop.permute.xlu2 %1073 }
 0x34c   : > { %v1076_v55 = vunpack.i.h.bf16 %v1074_v52  ;;  %v1075_v56 = vunpack.i.l.bf16 %v1074_v52 }
 0x34e   : > { %v725_v59 = vsel %vm526_vm2, %v723_v57, %v1075_v56  ;;  %v726_v60 = vsel %vm526_vm2, %v724_v58, %v1076_v55 }
 0x34f   : > { %v727_v61 = vpack.c.bf16 %v726_v60, %v725_v59 }
 0x351   : > { %1001 = vmatmul.msk.bf16.vlgmr.msrb.gmra.mxu0 %vm600_vm4, %v727_v61 }
 0x3ce   : > { %v755_v63 = vpop.f32.mrf.mxu0 }
 0x3cf   : > { %v756_v0 = vadd.f32 %v1080_v62, %v755_v63 }
 0x3d1   : > { %v1002_v1 = vmul.f32 -1.442695, %v756_v0 }
 0x3d3   : > { %1095 = vpow2.f32 %v1002_v1 }
 0x3d6   : > { %v757_v2 = vpop.f32.mrf.mxu0 }
 0x3d7   : > { %v758_v3 = vadd.f32 %v1080_v62, %v757_v2 }
 0x3d9   : > { %v1096_v4 = vpop.eup %1095  ;;  %v1003_v5 = vmul.f32 -1.442695, %v758_v3 }
 0x3da   : > { %v768_v6 = vadd.f32 1.0, %v1096_v4 }
 0x3db   : > { %1097 = vpow2.f32 %v1003_v5 }
 0x3dc   : > { %1099 = vrcp.f32 %v768_v6  ;;  %v781_v12 = vand.u32 2147483648, %v768_v6  ;;  %v779_v14 = vand.u32 2147483647, %v768_v6  ;;  %vm775_vm14 = vweird.f32 %v768_v6 }
 0x3de   : > { %v782_v20 = vor.u32 1.1754944e-38, %v781_v12  ;;  %vm780_vm0 = vcmp.eq.f32.partialorder %v779_v14, 8.507059e+37 }
 0x3e1   : > { %v1098_v7 = vpop.eup %1097 }
 0x3e2   : > { %v1100_v8 = vpop.eup %1099  ;;  %v769_v9 = vadd.f32 1.0, %v1098_v7 }
 0x3e3   : > { %v771_v10 = vmul.f32 %v1100_v8, %v768_v6  ;;  %vm776_vm13 = vweird.f32 %v1100_v8 }
 0x3e4   : > { %1101 = vrcp.f32 %v769_v9  ;;  %vm777_vm15 = vmor %vm775_vm14, %vm776_vm13  ;;  %v796_v25 = vand.u32 2147483648, %v769_v9  ;;  %v794_v27 = vand.u32 2147483647, %v769_v9  ;;  %vm790_vm2 = vweird.f32 %v769_v9 }
 0x3e5   : > { %v772_v11 = vsub.f32 1.0, %v771_v10  ;;  %1103 = vtanh.f32 %v756_v0 }
 0x3e6   : > { %v797_v29 = vor.u32 1.1754944e-38, %v796_v25  ;;  %vm795_vm5 = vcmp.eq.f32.partialorder %v794_v27, 8.507059e+37  ;;  %1105 = vtanh.f32 %v758_v3 }
 0x3e7   : > { %v773_v13 = vmul.f32 %v1100_v8, %v772_v11 }
 0x3e9   : > { %v774_v18 = vadd.f32 %v1100_v8, %v773_v13 }
 0x3ea   : > { %v1102_v19 = vpop.eup %1101 }
 0x3eb   : > { %v778_v21 = vsel %vm777_vm15, %v1100_v8, %v774_v18  ;;  %v786_v22 = vmul.f32 %v1102_v19, %v769_v9  ;;  %vm791_vm1 = vweird.f32 %v1102_v19  ;;  %v1104_v38 = vpop.eup %1103 }
 0x3ec   : > { %v783_v23 = vsel %vm780_vm0, %v782_v20, %v778_v21  ;;  %vm792_vm4 = vmor %vm790_vm2, %vm791_vm1  ;;  %v1106_v39 = vpop.eup %1105 }
 0x3ed   : > { %802 = vrot.lane.b32.xlu0 %v783_v23, %s1221_s27  ;;  %v787_v24 = vsub.f32 1.0, %v786_v22 }
 0x3ef   : > { %v788_v26 = vmul.f32 %v1102_v19, %v787_v24 }
 0x3f1   : > { %v789_v28 = vadd.f32 %v1102_v19, %v788_v26 }
 0x3f3   : > { %v793_v31 = vsel %vm792_vm4, %v1102_v19, %v789_v28 }
 0x3f4   : > { %v798_v32 = vsel %vm795_vm5, %v797_v29, %v793_v31 }
 0x3f5   : > { %804 = vrot.lane.b32.xlu1 %v798_v32, %s1221_s27 }
 0x45f   : > { %v803_v36 = vpop.permute.xlu0 %802 }
 0x460   : > { %v808_v41 = vmul.f32 %v1104_v38, %v803_v36 }
 0x467   : > { %v805_v40 = vpop.permute.xlu1 %804 }
 0x468   : > { %v809_v42 = vmul.f32 %v1106_v39, %v805_v40 }
 0x46a   : > { %v810_v15 = vpack.c.bf16 %v809_v42, %v808_v41 }
 0x46c   : > { %1005 = vmatmul.msk.bf16.vlgmr.msrb.gmra.mxu1 %vm550_vm3, %v810_v15 }
 0x4e9   : > { %v832_v46 = vpop.f32.mrf.mxu1 }
 0x4ea   : > { %v833_v47 = vadd.f32 %v1081_v45, %v832_v46 }
 0x4ec   : > { %v837_v48 = vadd.f32 %v833_v47, %v1383_v30  ;;  %v1082_v30 = vld [vmem:[%s1447_s11] ss:$0 sm:$0xff] }
 0x4ee   : > { %v839_v17 = vmax.f32 %v837_v48, 0.0 }
 0x4f0   : > { %849 = vrot.lane.b32.xlu2 %v839_v17, %s1221_s27 }
 0x4f1   : > { %v834_v49 = vpop.f32.mrf.mxu1 }
 0x4f2   : > { %v835_v16 = vadd.f32 %v1081_v45, %v834_v49 }
 0x4f4   : > { %v838_v50 = vadd.f32 %v835_v16, %v1389_v37 }
 0x4f6   : > { %v840_v51 = vmax.f32 %v838_v50, 0.0 }
 0x4f8   : > { %851 = vrot.lane.b32.xlu0 %v840_v51, %s1221_s27 }
 0x54a   : > { %v850_v52 = vpop.permute.xlu2 %849 }
 0x54b   : > { %1006 = vmatmul.msk.f32.vlgmr.msrb.gmra.mxu3 %vm550_vm3, %v850_v52 }
 0x56a   : > { %v852_v53 = vpop.permute.xlu0 %851 }
 0x56b   : > { %1007 = vmatmul.msk.f32.gmra.mxu3 %vm550_vm3, %v852_v53 }
 0x5ce   : > { %v874_v54 = vpop.f32.mrf.mxu3 }
 0x5cf   : > { %v875_v37 = vadd.f32 %v1082_v30, %v874_v54 }
 0x5d1   : > { %880 = vst.msk [vmem:[%s477_s28] sm:$0xff] %vm550_vm3, %v875_v37 }
 0x5ee   : > { %v877_v55 = vpop.f32.mrf.mxu3 }
 0x5ef   : > { %v878_v56 = vadd.f32 %v1082_v30, %v877_v55 }
 0x5f1   : > { %881 = vst.msk [vmem:[%s477_s28 + $0x8] sm:$0xff] %vm550_vm3, %v878_v56 }
 0x5f2 PF: > { %s24_s21 = sadd.s32 1, %s1211_s21  }
 0x5f3   : > { %p21_p7 = scmp.ge.s32.totalorder %s24_s21, 4  }
 0x5f5   :  { %23 = sbr.rel (!%p21_p7) target bundleno = 2 (0x2), region = 118 }
 0x5fa   :  { %903 = vsyncpa [#allocation4], 1 }
 0x5fb   :  { %905 = vsyncpa [#allocation4 + $0x1], 1 }
 0x5fc   :  { %906 = vsyncpa [#allocation6], 1 }

// kernel: _lambda_.10
= control target key start
LH: loop header
LB: loop body
LE: loop exit
PB: predicated region body
PF: predicated region fallthrough
CT: control target
= control target key end

     0   :  { %15 = vsyncpa [#allocation5], 0  ;;  %s1207_s0 = inlined_call_operand.vmem [shape: f32[2,8,32], index: 0, kind: input, shape index: {}]   ;;  %s1208_s1 = inlined_call_operand.vmem [shape: f32[2,1,32], index: 1, kind: input, shape index: {}]   ;;  %s1209_s2 = inlined_call_operand.hbm [shape: f32[96,64], index: 2, kind: input, shape index: {}]   ;;  %s1210_s3 = inlined_call_operand.vmem [shape: f32[1,64], index: 3, kind: input, shape index: {}, may-alias: {3,5,7,9}]   ;;  %s1211_s4 = inlined_call_operand.hbm [shape: f32[32,64], index: 4, kind: input, shape index: {}]   ;;  %s1212_s5 = inlined_call_operand.vmem [shape: f32[1,64], index: 5, kind: input, shape index: {}, may-alias: {3,5,7,9}]   ;;  %s1213_s6 = inlined_call_operand.hbm [shape: f32[192,64], index: 6, kind: input, shape index: {}]   ;;  %s1214_s7 = inlined_call_operand.vmem [shape: f32[1,64], index: 7, kind: input, shape index: {}, may-alias: {3,5,7,9}]   ;;  %s1215_s8 = inlined_call_operand.hbm [shape: f32[256,64], index: 8, kind: input, shape index: {}]   ;;  %s1216_s9 = inlined_call_operand.vmem [shape: f32[1,64], index: 9, kind: input, shape index: {}, may-alias: {3,5,7,9}]   ;;  %s1217_s10 = inlined_call_operand.vmem [shape: f32[2,4,64], index: 10, kind: output, shape index: {}]  }
   0x1   :  { %16 = vsyncpa [#allocation7], 0 }
   0x2   :  { %17 = vsyncpa [#allocation10], 0  ;;  %s1099_s13 = smov 0  }
   0x3 LB: > { %s1105_s14 = sadd.s32 4294967295, %s1033_s13   ;;  %p820_p0 = scmp.ge.s32.totalorder %s1033_s13, 1  ;;  %s1033_s13 = sphi %s1099_s13, %s23_s13  }
   0x4   : > { %p274_p1 = scmp.lt.s32.totalorder %s1033_s13, 3  ;;  %p867_p2 = scmp.eq.s32.totalorder %s1105_s14, 0 }
   0x5   : > { %s302_s17 = sshll.u32 %s1211_s4, 4  ;;  %s285_s21 = sshll.u32 %s1209_s2, 4  ;;  %s303_s17 = int_to_ptr.hbm [resolvable:$true] %s302_s17  ;;  %s286_s21 = int_to_ptr.hbm [resolvable:$true] %s285_s21 }
   0x6   : > { %p1113_p3 = pnand %p820_p0, %p274_p1  ;;  %s1035_s22 = smov [#allocation6]  }
   0x7   : > { %s304_s23 = sshll.u32 %s1035_s22, 4  ;;  %s1036_s25 = smov [#allocation4]   ;;  %s305_s23 = int_to_ptr.vmem [resolvable:$true] %s304_s23 }
   0x8   : > { %p854_p4 = pneg %p1113_p3  ;;  %s287_s26 = sshll.u32 %s1036_s25, 4  ;;  %s288_s26 = int_to_ptr.vmem [resolvable:$true] %s287_s26 }
   0x9   : > { %s319_s29 = sshll.u32 %s1213_s6, 4  ;;  %s1037_s30 = smov 128   ;;  %s320_s29 = int_to_ptr.hbm [resolvable:$true] %s319_s29 }
   0xa   : > { %p1124_p5 = pnand %p867_p2, %p854_p4  ;;  %s1038_s11 = smov 8  }
   0xb   : > { %s1039_s12 = smov [#allocation8]   ;;  %s336_s20 = sshll.u32 %s1215_s8, 4  ;;  %s337_s20 = int_to_ptr.hbm [resolvable:$true] %s336_s20 }
   0xc   : > { %860 = dma.hbm_to_vmem [thread:$0]  (!%p1124_p5), %s303_s17, 512, %s305_s23, [#allocation7], %s1037_s30, %s1037_s30, %s1038_s11  }
   0xd   : > { %857 = dma.hbm_to_vmem [thread:$0]  (!%p1124_p5), %s286_s21, 1536, %s288_s26, [#allocation5], %s1037_s30, %s1037_s30, %s1038_s11  }
   0xe   : > { %s321_s15 = sshll.u32 %s1039_s12, 4  ;;  %s1040_s22 = smov [#allocation9]   ;;  %s322_s15 = int_to_ptr.vmem [resolvable:$true] %s321_s15 }
   0xf   : > { %863 = dma.hbm_to_vmem [thread:$0]  (!%p1124_p5), %s320_s29, 3072, %s322_s15, [#allocation7], %s1037_s30, %s1037_s30, %s1038_s11  }
  0x10   : > { %s338_s25 = sshll.u32 %s1040_s22, 4  ;;  %370 = sbr.rel (%p1113_p3) target bundleno = 828 (0x33c), region = 60  ;;  %s339_s25 = int_to_ptr.vmem [resolvable:$true] %s338_s25 }
  0x11   : > { %866 = dma.hbm_to_vmem [thread:$0]  (!%p1124_p5), %s337_s20, 4096, %s339_s25, [#allocation10], %s1037_s30, %s1037_s30, %s1038_s11  }
  0x15   : > { %1020 = dma.done.wait (%p867_p2), [#allocation5], 1536  }
  0x16   : > { %1022 = vsyncadd (%p867_p2), [#allocation5], 4294965760 }
  0x17   : > { %1024 = dma.done.wait (%p867_p2), [#allocation7], 3584  }
  0x18   : > { %1026 = vsyncadd (%p867_p2), [#allocation7], 4294963712 }
  0x19   : > { %1028 = dma.done.wait (%p867_p2), [#allocation10], 4096  }
  0x1a   : > { %1030 = vsyncadd (%p867_p2), [#allocation10], 4294963200  ;;  %p425_p6 = scmp.lt.s32.totalorder %s1105_s14, 1  ;;  %vm437_vm0 = vcmask 261120   ;;  %v1041_v0 = vmov 0.0   ;;  %v501_v2 = vld [vmem:[#allocation4 + $0x50] sm:$0xff] }
  0x1b   : > { %439 = vst.msk [vmem:[#allocation2 + $0x8] sm:$0xff] %vm437_vm0, %v1041_v0  ;;  %v502_v3 = vld [vmem:[#allocation4 + $0x58] sm:$0xff]  ;;  %v499_v5 = vld [vmem:[#allocation4 + $0x40] sm:$0xff]  ;;  %v500_v6 = vld [vmem:[#allocation4 + $0x48] sm:$0xff]  ;;  %s1042_s24 = smov 32   ;;  %s1043_s26 = smov 64  }
  0x1c   : > { %s1221_s14 = smov (!%p425_p6, %s1105_s14), 1  ;;  %438 = vst.msk [vmem:[#allocation2] sm:$0xff] %vm437_vm0, %v1041_v0  ;;  %v508_v4 = vpack.c.bf16 %v502_v3, %v501_v2  ;;  %v507_v7 = vpack.c.bf16 %v500_v6, %v499_v5  ;;  %v497_v8 = vld [vmem:[#allocation4 + $0x30] sm:$0xff]  ;;  %v498_v9 = vld [vmem:[#allocation4 + $0x38] sm:$0xff]  ;;  %v495_v13 = vld [vmem:[#allocation4 + $0x20] sm:$0xff]  ;;  %vm441_vm1 = vcmask 523264  }
  0x1d   : > { %440 = vst.msk [vmem:[#allocation2 + $0x10] sm:$0xff] %vm437_vm0, %v1041_v0  ;;  %s831_s17 = sshll.u32 %s1221_s14, 3  ;;  %v506_v10 = vpack.c.bf16 %v498_v9, %v497_v8  ;;  %v496_v14 = vld [vmem:[#allocation4 + $0x28] sm:$0xff]  ;;  %v451_v16 = vld [vmem:[#allocation6 + $0x18] sm:$0xff]  ;;  %v450_v17 = vld [vmem:[#allocation6 + $0x10] sm:$0xff]  ;;  %s431_s29 = scalar_lea.vmem %s1208_s1, %s1221_s14  ;;  %vm513_vm2 = vcmask 785408  }
  0x1e   : > { %s428_s23 = scalar_lea.vmem %s1207_s0, %s831_s17  ;;  %519 = vmatpush.bf16.msra.mxu1 %v508_v4  ;;  %v505_v15 = vpack.c.bf16 %v496_v14, %v495_v13  ;;  %v493_v18 = vld [vmem:[#allocation4 + $0x10] sm:$0xff]  ;;  %468 = vmatpush.msra.mxu0 %v451_v16  ;;  %v494_v19 = vld [vmem:[#allocation4 + $0x18] sm:$0xff]  ;;  %442 = vst.msk [vmem:[#allocation3] sm:$0xff] %vm441_vm1, %v1041_v0  ;;  %v449_v21 = vld [vmem:[#allocation6 + $0x8] sm:$0xff]  ;;  %s832_s25 = sshll.u32 %s1221_s14, 2  ;;  %vm713_vm3 = vcmask 519168  }
  0x1f   : > { %v445_v1 = vld [vmem:[%s428_s23] sm:$0xff]  ;;  %v504_v20 = vpack.c.bf16 %v494_v19, %v493_v18  ;;  %443 = vst.msk [vmem:[#allocation3 + $0x8] sm:$0xff] %vm441_vm1, %v1041_v0  ;;  %v491_v22 = vld [vmem:[#allocation4] sm:$0xff]  ;;  %v492_v23 = vld [vmem:[#allocation4 + $0x8] sm:$0xff]  ;;  %s435_s21 = scalar_lea.vmem %s1217_s10, %s832_s25 }
  0x20   : > { %446 = vst.msk [vmem:[#allocation2 + $0x8] sm:$0xff] %vm437_vm0, %v445_v1  ;;  %469 = vmatpush.msra.mxu0 %v450_v17  ;;  %v503_v24 = vpack.c.bf16 %v492_v23, %v491_v22  ;;  %v448_v25 = vld [vmem:[#allocation6] sm:$0xff]  ;;  %v447_v26 = vld [vmem:[%s431_s29] sm:$0x1]  ;;  %v567_v34 = vld [vmem:[#allocation8 + $0xb8] sm:$0xff] }
  0x21   : > { %444 = vst.msk [vmem:[#allocation3 + $0x10] sm:$0xff] %vm441_vm1, %v1041_v0  ;;  %v566_v33 = vld [vmem:[#allocation8 + $0xb0] sm:$0xff]  ;;  %v564_v36 = vld [vmem:[#allocation8 + $0xa0] sm:$0xff]  ;;  %v565_v37 = vld [vmem:[#allocation8 + $0xa8] sm:$0xff] }
  0x22   : > { %520 = vmatpush.bf16.msra.mxu1 %v507_v7  ;;  %470 = vmatpush.msra.mxu0 %v449_v21  ;;  %v579_v35 = vpack.c.bf16 %v567_v34, %v566_v33  ;;  %v578_v38 = vpack.c.bf16 %v565_v37, %v564_v36  ;;  %v562_v39 = vld [vmem:[#allocation8 + $0x90] sm:$0xff]  ;;  %v563_v40 = vld [vmem:[#allocation8 + $0x98] sm:$0xff]  ;;  %v560_v42 = vld [vmem:[#allocation8 + $0x80] sm:$0xff] }
  0x23   : > { %v577_v41 = vpack.c.bf16 %v563_v40, %v562_v39  ;;  %v561_v43 = vld [vmem:[#allocation8 + $0x88] sm:$0xff]  ;;  %v558_v45 = vld [vmem:[#allocation8 + $0x70] sm:$0xff]  ;;  %v559_v46 = vld [vmem:[#allocation8 + $0x78] sm:$0xff] }
  0x24   : > { %471 = vmatpush.msra.mxu0 %v448_v25  ;;  %v576_v44 = vpack.c.bf16 %v561_v43, %v560_v42  ;;  %v556_v47 = vld [vmem:[#allocation8 + $0x60] sm:$0xff]  ;;  %v575_v48 = vpack.c.bf16 %v559_v46, %v558_v45  ;;  %v557_v49 = vld [vmem:[#allocation8 + $0x68] sm:$0xff]  ;;  %v554_v51 = vld [vmem:[#allocation8 + $0x50] sm:$0xff] }
  0x25   : > { %833 = vmatmul.msk.f32.vlgmr.msra.gmra.mxu0 %vm437_vm0, %v447_v26  ;;  %v574_v50 = vpack.c.bf16 %v557_v49, %v556_v47  ;;  %v555_v52 = vld [vmem:[#allocation8 + $0x58] sm:$0xff]  ;;  %v452_v53 = vld [vmem:[%s1212_s5] sm:$0x1]  ;;  %v552_v57 = vld [vmem:[#allocation8 + $0x40] sm:$0xff] }
  0x26   : > { %521 = vmatpush.bf16.msra.mxu1 %v506_v10  ;;  %587 = vmatpush.bf16.msra.mxu2 %v575_v48  ;;  %v573_v55 = vpack.c.bf16 %v555_v52, %v554_v51  ;;  %v553_v58 = vld [vmem:[#allocation8 + $0x48] sm:$0xff]  ;;  %v892_v61 = vld [vmem:[%s1210_s3] ss:$0 sm:$0xff]  ;;  %v551_v63 = vld [vmem:[#allocation8 + $0x38] sm:$0xff] }
  0x27   : > { %v478_v11 = vld [vmem:[#allocation2 + $0x8] sm:$0xff]  ;;  %v572_v59 = vpack.c.bf16 %v553_v58, %v552_v57  ;;  %v550_v62 = vld [vmem:[#allocation8 + $0x30] sm:$0xff]  ;;  %v548_v4 = vld [vmem:[#allocation8 + $0x20] sm:$0xff] }
  0x28   : > { %481 = vrot.lane.b32.xlu0 %v478_v11, %s1042_s24  ;;  %v479_v12 = vld [vmem:[#allocation2 + $0x9] sm:$0xff]  ;;  %v571_v1 = vpack.c.bf16 %v551_v63, %v550_v62  ;;  %v549_v5 = vld [vmem:[#allocation8 + $0x28] sm:$0xff]  ;;  %v546_v9 = vld [vmem:[#allocation8 + $0x10] sm:$0xff] }
  0x29   : > { %v477_v28 = vld [vmem:[#allocation2 + $0x7] sm:$0xff]  ;;  %v570_v7 = vpack.c.bf16 %v549_v5, %v548_v4  ;;  %v544_v16 = vld [vmem:[#allocation8] sm:$0xff]  ;;  %v545_v17 = vld [vmem:[#allocation8 + $0x8] sm:$0xff] }
  0x2a   : > { %522 = vmatpush.bf16.msra.mxu1 %v505_v15  ;;  %588 = vmatpush.bf16.msra.mxu2 %v574_v50  ;;  %v547_v10 = vld [vmem:[#allocation8 + $0x18] sm:$0xff]  ;;  %v568_v18 = vpack.c.bf16 %v545_v17, %v544_v16  ;;  %v649_v25 = vld [vmem:[#allocation9 + $0x70] sm:$0xff]  ;;  %v643_v37 = vld [vmem:[#allocation9 + $0x40] sm:$0xff] }
  0x2b   : > { %v650_v26 = vld [vmem:[#allocation9 + $0x78] sm:$0xff]  ;;  %v665_v33 = vld [vmem:[#allocation9 + $0xf0] sm:$0xff]  ;;  %v640_v45 = vld [vmem:[#allocation9 + $0x28] sm:$0xff] }
  0x2c   : > { %v666_v34 = vld [vmem:[#allocation9 + $0xf8] sm:$0xff]  ;;  %v641_v40 = vld [vmem:[#allocation9 + $0x30] sm:$0xff]  ;;  %v635_v57 = vld [vmem:[#allocation9] sm:$0xff] }
  0x2d   : > { %v893_v42 = vld [vmem:[%s1214_s7] ss:$0 sm:$0xff]  ;;  %v638_v51 = vld [vmem:[#allocation9 + $0x18] sm:$0xff]  ;;  %v636_v58 = vld [vmem:[#allocation9 + $0x8] sm:$0xff] }
  0x2e   : > { %523 = vmatpush.bf16.msra.mxu1 %v504_v20  ;;  %589 = vmatpush.bf16.msra.mxu2 %v573_v55  ;;  %v637_v50 = vld [vmem:[#allocation9 + $0x10] sm:$0xff] }
  0x2f   : > { %v661_v63 = vld [vmem:[#allocation9 + $0xd0] sm:$0xff] }
  0x30   : > { %485 = vrot.lane.b32.xlu0 %v479_v12, %s1043_s26  ;;  %v569_v12 = vpack.c.bf16 %v547_v10, %v546_v9  ;;  %v657_v5 = vld [vmem:[#allocation9 + $0xb0] sm:$0xff]  ;;  %v656_v9 = vld [vmem:[#allocation9 + $0xa8] sm:$0xff] }
  0x32   : > { %524 = vmatpush.bf16.msra.mxu1 %v503_v24  ;;  %590 = vmatpush.bf16.msra.mxu2 %v572_v59  ;;  %v663_v59 = vld [vmem:[#allocation9 + $0xe0] sm:$0xff] }
  0x36   : > { %604 = vmatpush.bf16.msrb.mxu1 %v579_v35  ;;  %591 = vmatpush.bf16.msra.mxu2 %v571_v1  ;;  %v682_v35 = vpack.c.bf16 %v666_v34, %v665_v33 }
  0x38   : > { %700 = vmatpush.bf16.msra.mxu3 %v682_v35 }
  0x3a   : > { %605 = vmatpush.bf16.msrb.mxu1 %v578_v38  ;;  %592 = vmatpush.bf16.msra.mxu2 %v570_v7  ;;  %v644_v38 = vld [vmem:[#allocation9 + $0x48] sm:$0xff] }
  0x3b   : > { %v671_v39 = vpack.c.bf16 %v644_v38, %v643_v37 }
  0x3e   : > { %606 = vmatpush.bf16.msrb.mxu1 %v577_v41  ;;  %593 = vmatpush.bf16.msra.mxu2 %v569_v12  ;;  %v642_v41 = vld [vmem:[#allocation9 + $0x38] sm:$0xff] }
  0x3f   : > { %v670_v43 = vpack.c.bf16 %v642_v41, %v641_v40  ;;  %v654_v12 = vld [vmem:[#allocation9 + $0x98] sm:$0xff] }
  0x42   : > { %607 = vmatpush.bf16.msrb.mxu1 %v576_v44  ;;  %594 = vmatpush.bf16.msra.mxu2 %v568_v18  ;;  %v639_v44 = vld [vmem:[#allocation9 + $0x20] sm:$0xff] }
  0x43   : > { %v669_v48 = vpack.c.bf16 %v640_v45, %v639_v44 }
  0x9a   : > { %v482_v27 = vpop.permute.xlu0 %481 }
  0x9b   : > { %v488_v29 = vsel %vm437_vm0, %v477_v28, %v482_v27  ;;  %v647_v27 = vld [vmem:[#allocation9 + $0x60] sm:$0xff]  ;;  %v674_v28 = vpack.c.bf16 %v650_v26, %v649_v25 }
  0x9d   : > { %687 = vmatpush.bf16.msrb.mxu0 %v674_v28 }
  0xa2   : > { %v486_v30 = vpop.permute.xlu0 %485  ;;  %v473_v54 = vpop.f32.mrf.mxu0 }
  0xa3   : > { %v489_v31 = vsel %vm441_vm1, %v488_v29, %v486_v30  ;;  %v474_v56 = vadd.f32 %v473_v54, %v452_v53  ;;  %v648_v29 = vld [vmem:[#allocation9 + $0x68] sm:$0xff]  ;;  %v668_v53 = vpack.c.bf16 %v638_v51, %v637_v50 }
  0xa4   : > { %v490_v32 = vpack.c.bf16 %v489_v31, %v489_v31  ;;  %v673_v30 = vpack.c.bf16 %v648_v29, %v647_v27  ;;  %v645_v31 = vld [vmem:[#allocation9 + $0x50] sm:$0xff] }
  0xa5   : > { %v476_v60 = vmax.f32 %v474_v56, 0.0  ;;  %v894_v27 = vld [vmem:[%s1216_s9] ss:$0 sm:$0xff] }
  0xa6   : > { %834 = vmatmul.msk.bf16.vlgmr.msra.gmra.mxu1 %vm513_vm2, %v490_v32  ;;  %v646_v32 = vld [vmem:[#allocation9 + $0x58] sm:$0xff]  ;;  %688 = vmatpush.bf16.msrb.mxu0 %v673_v30 }
  0xa7   : > { %v531_v2 = vperm.slane %v476_v60, 0  ;;  %v672_v36 = vpack.c.bf16 %v646_v32, %v645_v31  ;;  %v667_v60 = vpack.c.bf16 %v636_v58, %v635_v57 }
  0xaa   : > { %689 = vmatpush.bf16.msrb.mxu0 %v672_v36 }
  0xae   : > { %690 = vmatpush.bf16.msrb.mxu0 %v671_v39 }
  0xb2   : > { %691 = vmatpush.bf16.msrb.mxu0 %v670_v43 }
  0xb6   : > { %692 = vmatpush.bf16.msrb.mxu0 %v669_v48 }
  0xba   : > { %693 = vmatpush.bf16.msrb.mxu0 %v668_v53 }
  0xbe   : > { %694 = vmatpush.bf16.msrb.mxu0 %v667_v60 }
 0x123   : > { %v526_v0 = vpop.f32.mrf.mxu1 }
 0x124   : > { %v527_v3 = vadd.f32 %v892_v61, %v526_v0  ;;  %v664_v61 = vld [vmem:[#allocation9 + $0xe8] sm:$0xff]  ;;  %v662_v0 = vld [vmem:[#allocation9 + $0xd8] sm:$0xff] }
 0x125   : > { %v681_v62 = vpack.c.bf16 %v664_v61, %v663_v59  ;;  %v680_v1 = vpack.c.bf16 %v662_v0, %v661_v63 }
 0x126   : > { %v530_v6 = vmax.f32 %v527_v3, 0.0  ;;  %v660_v3 = vld [vmem:[#allocation9 + $0xc8] sm:$0xff] }
 0x127   : > { %701 = vmatpush.bf16.msra.mxu3 %v681_v62 }
 0x128   : > { %v532_v8 = vadd.f32 %v531_v2, %v530_v6  ;;  %v659_v2 = vld [vmem:[#allocation9 + $0xc0] sm:$0xff]  ;;  %v658_v6 = vld [vmem:[#allocation9 + $0xb8] sm:$0xff] }
 0x129   : > { %v679_v4 = vpack.c.bf16 %v660_v3, %v659_v2  ;;  %v678_v7 = vpack.c.bf16 %v658_v6, %v657_v5 }
 0x12a   : > { %533 = vst.msk [vmem:[#allocation3 + $0x8] sm:$0xff] %vm441_vm1, %v532_v8  ;;  %v655_v8 = vld [vmem:[#allocation9 + $0xa0] sm:$0xff] }
 0x12b   : > { %v528_v11 = vpop.f32.mrf.mxu1  ;;  %702 = vmatpush.bf16.msra.mxu3 %v680_v1  ;;  %v677_v10 = vpack.c.bf16 %v656_v9, %v655_v8 }
 0x12c   : > { %v653_v11 = vld [vmem:[#allocation9 + $0x90] sm:$0xff] }
 0x12f   : > { %703 = vmatpush.bf16.msra.mxu3 %v679_v4 }
 0x131   : > { %v535_v13 = vld [vmem:[#allocation3 + $0x8] sm:$0xff] }
 0x132   : > { %v536_v14 = vld [vmem:[#allocation3 + $0x9] sm:$0xff]  ;;  %538 = vrot.lane.b32.xlu1 %v535_v13, %s1043_s26  ;;  %v676_v13 = vpack.c.bf16 %v654_v12, %v653_v11 }
 0x133   : > { %v543_v15 = vpack.c.bf16 %v536_v14, %v536_v14  ;;  %v534_v20 = vld [vmem:[#allocation3 + $0x7] sm:$0xff]  ;;  %704 = vmatpush.bf16.msra.mxu3 %v678_v7  ;;  %v651_v14 = vld [vmem:[#allocation9 + $0x80] sm:$0xff] }
 0x135   : > { %835 = vmatmul.msk.bf16.vlgmr.msrb.gmra.mxu1 %vm441_vm1, %v543_v15  ;;  %v652_v15 = vld [vmem:[#allocation9 + $0x88] sm:$0xff] }
 0x136   : > { %v675_v16 = vpack.c.bf16 %v652_v15, %v651_v14 }
 0x137   : > { %705 = vmatpush.bf16.msra.mxu3 %v677_v10 }
 0x13b   : > { %706 = vmatpush.bf16.msra.mxu3 %v676_v13 }
 0x13f   : > { %707 = vmatpush.bf16.msra.mxu3 %v675_v16 }
 0x1a4   : > { %v539_v19 = vpop.permute.xlu1 %538 }
 0x1a5   : > { %v541_v21 = vsel %vm441_vm1, %v534_v20, %v539_v19 }
 0x1a6   : > { %v542_v22 = vpack.c.bf16 %v541_v21, %v541_v21 }
 0x1a8   : > { %595 = vmatmul.bf16.vlgmr.msra.gmra.mxu2 %v542_v22 }
 0x1b2   : > { %v609_v23 = vpop.f32.mrf.mxu1 }
 0x1ba   : > { %v611_v24 = vpop.f32.mrf.mxu1 }
 0x22b   : > { %v596_v46 = vpop.f32.mrf.mxu2 }
 0x22c   : > { %v597_v47 = vadd.f32 %v893_v42, %v596_v46 }
 0x22e   : > { %v610_v49 = vadd.f32 %v609_v23, %v597_v47 }
 0x230   : > { %v613_v52 = vmax.f32 %v610_v49, 0.0 }
 0x232   : > { %614 = vst.msk [vmem:[#allocation3 + $0x8] sm:$0xff] %vm441_vm1, %v613_v52 }
 0x233   : > { %v598_v54 = vpop.f32.mrf.mxu2 }
 0x239   : > { %v622_v55 = vld [vmem:[#allocation3 + $0xa] ss:$2 sm:$0xf]  ;;  %v616_v18 = vld [vmem:[#allocation3 + $0x7] ss:$2 sm:$0xf] }
 0x23a   : > { %v618_v56 = vld [vmem:[#allocation3 + $0x8] ss:$2 sm:$0xf]  ;;  %628 = vrot.lane.b32.xlu1 %v622_v55, %s1043_s26  ;;  %v620_v22 = vld [vmem:[#allocation3 + $0x9] ss:$2 sm:$0xf] }
 0x23b   : > { %624 = vrot.lane.b32.xlu2 %v618_v56, %s1043_s26 }
 0x295   : > { %v625_v17 = vpop.permute.xlu2 %624 }
 0x296   : > { %v631_v19 = vsel %vm441_vm1, %v616_v18, %v625_v17 }
 0x297   : > { %v633_v20 = vpack.c.bf16 %v631_v19, %v631_v19 }
 0x299   : > { %695 = vmatmul.bf16.vlgmr.msrb.gmra.mxu0 %v633_v20 }
 0x2ac   : > { %v629_v21 = vpop.permute.xlu1 %628 }
 0x2ad   : > { %v632_v23 = vsel %vm441_vm1, %v620_v22, %v629_v21 }
 0x2ae   : > { %v634_v24 = vpack.c.bf16 %v632_v23, %v632_v23 }
 0x2b0   : > { %708 = vmatmul.bf16.vlgmr.msra.gmra.mxu3 %v634_v24 }
 0x316   : > { %v696_v25 = vpop.f32.mrf.mxu0 }
 0x317   : > { %v697_v28 = vadd.f32 %v894_v27, %v696_v25 }
 0x31e   : > { %v698_v26 = vpop.f32.mrf.mxu0 }
 0x333   : > { %v709_v29 = vpop.f32.mrf.mxu3 }
 0x334   : > { %v710_v30 = vadd.f32 %v709_v29, %v697_v28 }
 0x336   : > { %714 = vst.msk [vmem:[%s435_s21] sm:$0xf] %vm713_vm3, %v710_v30 }
 0x33b   : > { %v711_v31 = vpop.f32.mrf.mxu3 }
 0x33c PF: > { %s23_s13 = sadd.s32 1, %s1033_s13  }
 0x33d   : > { %p20_p7 = scmp.ge.s32.totalorder %s23_s13, 4  }
 0x33f   :  { %22 = sbr.rel (!%p20_p7) target bundleno = 3 (0x3), region = 114 }
 0x344   :  { %734 = vsyncpa [#allocation5], 1 }
 0x345   :  { %736 = vsyncpa [#allocation5 + $0x1], 1 }
 0x346   :  { %737 = vsyncpa [#allocation7], 1 }
 0x347   :  { %738 = vsyncpa [#allocation10], 1 }

// kernel: _lambda_.11
= control target key start
LH: loop header
LB: loop body
LE: loop exit
PB: predicated region body
PF: predicated region fallthrough
CT: control target
= control target key end

     0   :  { %s1416_s0 = inlined_call_operand.vmem [shape: f32[2,4,64], index: 0, kind: input, shape index: {}, may-alias: {0,1}]   ;;  %s1417_s1 = inlined_call_operand.vmem [shape: f32[2,4,64], index: 1, kind: input, shape index: {}, may-alias: {0,1}]   ;;  %s1418_s2 = inlined_call_operand.vmem [shape: f32[2,1,32], index: 2, kind: input, shape index: {}]   ;;  %s1419_s3 = inlined_call_operand.hbm [shape: f32[384,32], index: 3, kind: input, shape index: {}]   ;;  %s1420_s4 = inlined_call_operand.vmem [shape: f32[1,32], index: 4, kind: input, shape index: {}, may-alias: {4,6,8,11}]   ;;  %s1421_s5 = inlined_call_operand.hbm [shape: f32[32,32], index: 5, kind: input, shape index: {}]   ;;  %s1422_s6 = inlined_call_operand.vmem [shape: f32[1,32], index: 6, kind: input, shape index: {}, may-alias: {4,6,8,11}]   ;;  %s1423_s7 = inlined_call_operand.hbm [shape: f32[96,32], index: 7, kind: input, shape index: {}]   ;;  %s1424_s8 = inlined_call_operand.vmem [shape: f32[1,32], index: 8, kind: input, shape index: {}, may-alias: {4,6,8,11}]   ;;  %s1425_s9 = inlined_call_operand.hbm [shape: f32[64,32], index: 9, kind: input, shape index: {}]   ;;  %s1426_s10 = inlined_call_operand.hbm [shape: f32[64,32], index: 10, kind: input, shape index: {}]   ;;  %s1427_s11 = inlined_call_operand.vmem [shape: f32[1,32], index: 11, kind: input, shape index: {}, may-alias: {4,6,8,11}]   ;;  %s1428_s12 = inlined_call_operand.vmem [shape: f32[2,4,64], index: 12, kind: output, shape index: {}]  }
   0x1   :  { %1429 = sst [smem:[#allocation15_spill]] %s1419_s3 }
   0x2   :  { %1430 = sst [smem:[#allocation16_spill]] %s1421_s5 }
   0x3   :  { %17 = vsyncpa [#allocation5], 0 }
   0x4   :  { %18 = vsyncpa [#allocation7], 0 }
   0x5   :  { %19 = vsyncpa [#allocation10], 0  ;;  %s1293_s21 = smov 0  }
   0x6 LB: > { %s1299_s22 = sadd.s32 4294967295, %s1216_s21   ;;  %p959_p0 = scmp.ge.s32.totalorder %s1216_s21, 1  ;;  %s1216_s21 = sphi %s1293_s21, %s25_s21  }
   0x7   : > { %p323_p1 = scmp.lt.s32.totalorder %s1216_s21, 3  ;;  %p1017_p2 = scmp.eq.s32.totalorder %s1299_s22, 0 }
   0x8   : > { %s1431_s5 = sld [smem:[#allocation16_spill]]  ;;  %s385_s29 = sshll.u32 %s1425_s9, 4  ;;  %s386_s29 = int_to_ptr.hbm [resolvable:$true] %s385_s29 }
   0x9   : > { %p1307_p3 = pnand %p959_p0, %p323_p1  ;;  %s1218_s30 = smov [#allocation6]  }
   0xa   : > { %s353_s13 = sshll.u32 %s1218_s30, 4  ;;  %s1219_s15 = smov [#allocation9]   ;;  %s354_s13 = int_to_ptr.vmem [resolvable:$true] %s353_s13 }
   0xb   : > { %p1001_p4 = pneg %p1307_p3  ;;  %s387_s16 = sshll.u32 %s1219_s15, 4  ;;  %s388_s16 = int_to_ptr.vmem [resolvable:$true] %s387_s16 }
   0xc   : > { %s1434_s3 = sld [smem:[#allocation15_spill]]  ;;  %s1220_s20 = smov 128  }
   0xd   : > { %p1318_p5 = pnand %p1017_p2, %p1001_p4  ;;  %s1221_s23 = smov 8  }
   0xe   : > { %s351_s25 = sshll.u32 %s1431_s5, 4  ;;  %s1222_s24 = smov [#allocation4]   ;;  %s352_s25 = int_to_ptr.hbm [resolvable:$true] %s351_s25 }
   0xf   : > { %1007 = dma.hbm_to_vmem [thread:$0]  (!%p1318_p5), %s352_s25, 512, %s354_s13, [#allocation7], %s1220_s20, %s1220_s20, %s1221_s23  }
  0x10   : > { %1013 = dma.hbm_to_vmem [thread:$0]  (!%p1318_p5), %s386_s29, 1024, %s388_s16, [#allocation10], %s1220_s20, %s1220_s20, %s1221_s23  }
  0x11   : > { %s336_s27 = sshll.u32 %s1222_s24, 4  ;;  %s368_s15 = sshll.u32 %s1423_s7, 4  ;;  %s337_s27 = int_to_ptr.vmem [resolvable:$true] %s336_s27  ;;  %s369_s15 = int_to_ptr.hbm [resolvable:$true] %s368_s15 }
  0x12   : > { %s334_s19 = sshll.u32 %s1434_s3, 4  ;;  %s399_s3 = sshll.u32 %s1426_s10, 4  ;;  %s335_s19 = int_to_ptr.hbm [resolvable:$true] %s334_s19  ;;  %s400_s3 = int_to_ptr.hbm [resolvable:$true] %s399_s3 }
  0x13   : > { %1004 = dma.hbm_to_vmem [thread:$0]  (!%p1318_p5), %s335_s19, 6144, %s337_s27, [#allocation5], %s1220_s20, %s1220_s20, %s1221_s23  }
  0x14   : > { %s1223_s5 = smov [#allocation8]   ;;  %s1224_s29 = smov [#allocation11]  }
  0x15   : > { %s370_s25 = sshll.u32 %s1223_s5, 4  ;;  %s401_s13 = sshll.u32 %s1224_s29, 4  ;;  %s371_s25 = int_to_ptr.vmem [resolvable:$true] %s370_s25  ;;  %s402_s13 = int_to_ptr.vmem [resolvable:$true] %s401_s13 }
  0x16   : > { %1010 = dma.hbm_to_vmem [thread:$0]  (!%p1318_p5), %s369_s15, 1536, %s371_s25, [#allocation7], %s1220_s20, %s1220_s20, %s1221_s23  }
  0x17   : > { %1016 = dma.hbm_to_vmem [thread:$0]  (!%p1318_p5), %s400_s3, 1024, %s402_s13, [#allocation10], %s1220_s20, %s1220_s20, %s1221_s23  }
  0x18   : > { %440 = sbr.rel (%p1307_p3) target bundleno = 912 (0x390), region = 68 }
  0x1d   : > { %1203 = dma.done.wait (%p1017_p2), [#allocation5], 6144  }
  0x1e   : > { %1205 = vsyncadd (%p1017_p2), [#allocation5], 4294961152 }
  0x1f   : > { %1207 = dma.done.wait (%p1017_p2), [#allocation7], 2048  }
  0x20   : > { %1209 = vsyncadd (%p1017_p2), [#allocation7], 4294965248 }
  0x21   : > { %1211 = dma.done.wait (%p1017_p2), [#allocation10], 2048  }
  0x22   : > { %1213 = vsyncadd (%p1017_p2), [#allocation10], 4294965248  ;;  %p508_p6 = scmp.lt.s32.totalorder %s1299_s22, 1  ;;  %v1225_v0 = vmov 0.0   ;;  %v545_v2 = vld [vmem:[#allocation6 + $0x18] sm:$0xff]  ;;  %v544_v3 = vld [vmem:[#allocation6 + $0x10] sm:$0xff] }
  0x23   : > { %524 = vst [vmem:[#allocation2] sm:$0xff] %v1225_v0  ;;  %s1226_s16 = smov 64   ;;  %562 = vmatpush.msra.mxu2 %v545_v2  ;;  %v543_v4 = vld [vmem:[#allocation6 + $0x8] sm:$0xff]  ;;  %v591_v5 = vld [vmem:[#allocation4 + $0x70] sm:$0xff]  ;;  %v592_v6 = vld [vmem:[#allocation4 + $0x78] sm:$0xff]  ;;  %vm527_vm0 = vcmask 261120  }
  0x24   : > { %s1436_s22 = smov (!%p508_p6, %s1299_s22), 1  ;;  %525 = vst [vmem:[#allocation2 + $0x8] sm:$0xff] %v1225_v0  ;;  %v607_v7 = vld [vmem:[#allocation4 + $0xf0] sm:$0xff]  ;;  %v608_v8 = vld [vmem:[#allocation4 + $0xf8] sm:$0xff]  ;;  %v632_v9 = vpack.c.bf16 %v592_v6, %v591_v5  ;;  %v589_v12 = vld [vmem:[#allocation4 + $0x60] sm:$0xff]  ;;  %vm538_vm1 = vcmask 523264  }
  0x25   : > { %s1362_s3 = sshll.u32 %s1436_s22, 2  ;;  %563 = vmatpush.msra.mxu2 %v544_v3  ;;  %v623_v10 = vld [vmem:[#allocation4 + $0x170] sm:$0xff]  ;;  %v624_v11 = vld [vmem:[#allocation4 + $0x178] sm:$0xff]  ;;  %v542_v13 = vld [vmem:[#allocation6] sm:$0xff]  ;;  %v640_v14 = vpack.c.bf16 %v608_v8, %v607_v7  ;;  %s518_s23 = scalar_lea.vmem %s1418_s2, %s1436_s22  ;;  %528 = vst.msk [vmem:[#allocation3] sm:$0xff] %vm527_vm0, %v1225_v0  ;;  %vm530_vm2 = vcmask 257024  }
  0x26   : > { %s515_s14 = scalar_lea.vmem %s1417_s1, %s1362_s3  ;;  %v648_v15 = vpack.c.bf16 %v624_v11, %v623_v10  ;;  %v590_v16 = vld [vmem:[#allocation4 + $0x68] sm:$0xff]  ;;  %v605_v17 = vld [vmem:[#allocation4 + $0xe0] sm:$0xff]  ;;  %653 = vmatpush.bf16.msra.mxu1 %v632_v9  ;;  %v587_v23 = vld [vmem:[#allocation4 + $0x50] sm:$0xff]  ;;  %529 = vst.msk [vmem:[#allocation3 + $0x8] sm:$0xff] %vm527_vm0, %v1225_v0  ;;  %s511_s27 = scalar_lea.vmem %s1416_s0, %s1362_s3  ;;  %vm732_vm3 = vcmask 785408   ;;  %vm831_vm4 = vcmask 519168  }
  0x27   : > { %v533_v1 = vld [vmem:[%s515_s14] sm:$0xf]  ;;  %564 = vmatpush.msra.mxu2 %v543_v4  ;;  %v631_v18 = vpack.c.bf16 %v590_v16, %v589_v12  ;;  %v606_v19 = vld [vmem:[#allocation4 + $0xe8] sm:$0xff]  ;;  %v621_v20 = vld [vmem:[#allocation4 + $0x160] sm:$0xff]  ;;  %s1227_s18 = smov 32  }
  0x28   : > { %535 = vrot.lane.b32.xlu0 %v533_v1, %s1226_s16  ;;  %v622_v21 = vld [vmem:[#allocation4 + $0x168] sm:$0xff]  ;;  %679 = vmatpush.bf16.msra.mxu3 %v648_v15  ;;  %v588_v24 = vld [vmem:[#allocation4 + $0x58] sm:$0xff]  ;;  %v619_v25 = vld [vmem:[#allocation4 + $0x150] sm:$0xff]  ;;  %v639_v27 = vpack.c.bf16 %v606_v19, %v605_v17 }
  0x29   : > { %v647_v22 = vpack.c.bf16 %v622_v21, %v621_v20  ;;  %565 = vmatpush.msra.mxu2 %v542_v13  ;;  %v620_v26 = vld [vmem:[#allocation4 + $0x158] sm:$0xff]  ;;  %v630_v28 = vpack.c.bf16 %v588_v24, %v587_v23  ;;  %v603_v29 = vld [vmem:[#allocation4 + $0xd0] sm:$0xff]  ;;  %v585_v32 = vld [vmem:[#allocation4 + $0x40] sm:$0xff] }
  0x2a   : > { %654 = vmatpush.bf16.msra.mxu1 %v631_v18  ;;  %v604_v30 = vld [vmem:[#allocation4 + $0xd8] sm:$0xff]  ;;  %v646_v31 = vpack.c.bf16 %v620_v26, %v619_v25  ;;  %v586_v33 = vld [vmem:[#allocation4 + $0x48] sm:$0xff]  ;;  %v617_v34 = vld [vmem:[#allocation4 + $0x140] sm:$0xff] }
  0x2b   : > { %666 = vmatpush.bf16.msrb.mxu2 %v640_v14  ;;  %v618_v35 = vld [vmem:[#allocation4 + $0x148] sm:$0xff]  ;;  %v638_v36 = vpack.c.bf16 %v604_v30, %v603_v29  ;;  %v629_v37 = vpack.c.bf16 %v586_v33, %v585_v32  ;;  %v601_v38 = vld [vmem:[#allocation4 + $0xc0] sm:$0xff]  ;;  %v583_v41 = vld [vmem:[#allocation4 + $0x30] sm:$0xff] }
  0x2c   : > { %680 = vmatpush.bf16.msra.mxu3 %v647_v22  ;;  %v602_v39 = vld [vmem:[#allocation4 + $0xc8] sm:$0xff]  ;;  %v645_v40 = vpack.c.bf16 %v618_v35, %v617_v34  ;;  %v584_v42 = vld [vmem:[#allocation4 + $0x38] sm:$0xff]  ;;  %v615_v43 = vld [vmem:[#allocation4 + $0x130] sm:$0xff] }
  0x2d   : > { %v616_v44 = vld [vmem:[#allocation4 + $0x138] sm:$0xff]  ;;  %v637_v45 = vpack.c.bf16 %v602_v39, %v601_v38  ;;  %v628_v46 = vpack.c.bf16 %v584_v42, %v583_v41  ;;  %v599_v47 = vld [vmem:[#allocation4 + $0xb0] sm:$0xff]  ;;  %v581_v51 = vld [vmem:[#allocation4 + $0x20] sm:$0xff] }
  0x2e   : > { %655 = vmatpush.bf16.msra.mxu1 %v630_v28  ;;  %v600_v48 = vld [vmem:[#allocation4 + $0xb8] sm:$0xff]  ;;  %v644_v49 = vpack.c.bf16 %v616_v44, %v615_v43  ;;  %v582_v52 = vld [vmem:[#allocation4 + $0x28] sm:$0xff]  ;;  %v597_v53 = vld [vmem:[#allocation4 + $0xa0] sm:$0xff] }
  0x2f   : > { %667 = vmatpush.bf16.msrb.mxu2 %v639_v27  ;;  %v636_v50 = vpack.c.bf16 %v600_v48, %v599_v47  ;;  %v627_v54 = vpack.c.bf16 %v582_v52, %v581_v51  ;;  %v598_v55 = vld [vmem:[#allocation4 + $0xa8] sm:$0xff]  ;;  %v613_v56 = vld [vmem:[#allocation4 + $0x120] sm:$0xff]  ;;  %v541_v60 = vld [vmem:[%s518_s23] sm:$0x1] }
  0x30   : > { %681 = vmatpush.bf16.msra.mxu3 %v646_v31  ;;  %v614_v57 = vld [vmem:[#allocation4 + $0x128] sm:$0xff]  ;;  %v635_v58 = vpack.c.bf16 %v598_v55, %v597_v53  ;;  %v579_v61 = vld [vmem:[#allocation4 + $0x10] sm:$0xff]  ;;  %v580_v62 = vld [vmem:[#allocation4 + $0x18] sm:$0xff]  ;;  %975 = vmatmul.msk.f32.vlgmr.msra.gmra.mxu2 %vm527_vm0, %v541_v60 }
  0x31   : > { %v643_v59 = vpack.c.bf16 %v614_v57, %v613_v56  ;;  %v626_v63 = vpack.c.bf16 %v580_v62, %v579_v61  ;;  %v595_v1 = vld [vmem:[#allocation4 + $0x90] sm:$0xff]  ;;  %v596_v2 = vld [vmem:[#allocation4 + $0x98] sm:$0xff]  ;;  %v577_v6 = vld [vmem:[#allocation4] sm:$0xff] }
  0x32   : > { %656 = vmatpush.bf16.msra.mxu1 %v629_v37  ;;  %v611_v3 = vld [vmem:[#allocation4 + $0x110] sm:$0xff]  ;;  %v634_v4 = vpack.c.bf16 %v596_v2, %v595_v1  ;;  %v612_v5 = vld [vmem:[#allocation4 + $0x118] sm:$0xff]  ;;  %v578_v7 = vld [vmem:[#allocation4 + $0x8] sm:$0xff] }
  0x33   : > { %668 = vmatpush.bf16.msrb.mxu2 %v638_v36  ;;  %v642_v8 = vpack.c.bf16 %v612_v5, %v611_v3  ;;  %v625_v9 = vpack.c.bf16 %v578_v7, %v577_v6  ;;  %v593_v10 = vld [vmem:[#allocation4 + $0x80] sm:$0xff]  ;;  %v594_v11 = vld [vmem:[#allocation4 + $0x88] sm:$0xff]  ;;  %v532_v0 = vld [vmem:[%s511_s27] sm:$0xf] }
  0x34   : > { %682 = vmatpush.bf16.msra.mxu3 %v645_v40  ;;  %v609_v12 = vld [vmem:[#allocation4 + $0x100] sm:$0xff]  ;;  %v633_v13 = vpack.c.bf16 %v594_v11, %v593_v10  ;;  %v610_v14 = vld [vmem:[#allocation4 + $0x108] sm:$0xff]  ;;  %v720_v24 = vld [vmem:[#allocation8 + $0x50] sm:$0xff] }
  0x35   : > { %v641_v15 = vpack.c.bf16 %v610_v14, %v609_v12  ;;  %v721_v25 = vld [vmem:[#allocation8 + $0x58] sm:$0xff]  ;;  %v718_v26 = vld [vmem:[#allocation8 + $0x40] sm:$0xff]  ;;  %v719_v28 = vld [vmem:[#allocation8 + $0x48] sm:$0xff] }
  0x36   : > { %657 = vmatpush.bf16.msra.mxu1 %v628_v46  ;;  %v727_v27 = vpack.c.bf16 %v721_v25, %v720_v24  ;;  %v726_v29 = vpack.c.bf16 %v719_v28, %v718_v26  ;;  %v716_v30 = vld [vmem:[#allocation8 + $0x30] sm:$0xff]  ;;  %v717_v31 = vld [vmem:[#allocation8 + $0x38] sm:$0xff]  ;;  %v714_v34 = vld [vmem:[#allocation8 + $0x20] sm:$0xff] }
  0x37   : > { %669 = vmatpush.bf16.msrb.mxu2 %v637_v45  ;;  %v725_v33 = vpack.c.bf16 %v717_v31, %v716_v30  ;;  %v715_v35 = vld [vmem:[#allocation8 + $0x28] sm:$0xff]  ;;  %v546_v36 = vld [vmem:[%s1422_s6] sm:$0x1]  ;;  %v713_v42 = vld [vmem:[#allocation8 + $0x18] sm:$0xff] }
  0x38   : > { %683 = vmatpush.bf16.msra.mxu3 %v644_v49  ;;  %738 = vmatpush.bf16.msra.mxu0 %v727_v27  ;;  %v1045_v38 = vld [vmem:[%s1420_s4] ss:$0 sm:$0xff]  ;;  %v724_v39 = vpack.c.bf16 %v715_v35, %v714_v34  ;;  %v773_v5 = vld [vmem:[#allocation9 + $0x38] sm:$0xff]  ;;  %v770_v6 = vld [vmem:[#allocation9 + $0x20] sm:$0xff] }
  0x39   : > { %v712_v41 = vld [vmem:[#allocation8 + $0x10] sm:$0xff]  ;;  %v769_v11 = vld [vmem:[#allocation9 + $0x18] sm:$0xff]  ;;  %v802_v24 = vld [vmem:[#allocation11 + $0x20] sm:$0xff] }
  0x3a   : > { %658 = vmatpush.bf16.msra.mxu1 %v627_v54  ;;  %v723_v45 = vpack.c.bf16 %v713_v42, %v712_v41  ;;  %v768_v10 = vld [vmem:[#allocation9 + $0x10] sm:$0xff]  ;;  %v803_v26 = vld [vmem:[#allocation11 + $0x28] sm:$0xff]  ;;  %v798_v31 = vld [vmem:[#allocation11] sm:$0xff] }
  0x3b   : > { %670 = vmatpush.bf16.msrb.mxu2 %v636_v50  ;;  %v775_v12 = vpack.c.bf16 %v769_v11, %v768_v10  ;;  %v808_v27 = vpack.c.bf16 %v803_v26, %v802_v24  ;;  %v800_v28 = vld [vmem:[#allocation11 + $0x10] sm:$0xff] }
  0x3c   : > { %684 = vmatpush.bf16.msra.mxu3 %v643_v59  ;;  %739 = vmatpush.bf16.msra.mxu0 %v726_v29  ;;  %v711_v59 = vld [vmem:[#allocation8 + $0x8] sm:$0xff]  ;;  %v801_v29 = vld [vmem:[#allocation11 + $0x18] sm:$0xff]  ;;  %v1047_v41 = vld [vmem:[%s1427_s11] ss:$0 sm:$0xff] }
  0x3d   : > { %v807_v30 = vpack.c.bf16 %v801_v29, %v800_v28 }
  0x3e   : > { %659 = vmatpush.bf16.msra.mxu1 %v626_v63 }
  0x3f   : > { %671 = vmatpush.bf16.msrb.mxu2 %v635_v58  ;;  %v710_v58 = vld [vmem:[#allocation8] sm:$0xff] }
  0x40   : > { %685 = vmatpush.bf16.msra.mxu3 %v642_v8  ;;  %740 = vmatpush.bf16.msra.mxu0 %v725_v33  ;;  %v722_v60 = vpack.c.bf16 %v711_v59, %v710_v58  ;;  %v771_v8 = vld [vmem:[#allocation9 + $0x28] sm:$0xff] }
  0x42   : > { %660 = vmatpush.bf16.msra.mxu1 %v625_v9  ;;  %v776_v9 = vpack.c.bf16 %v771_v8, %v770_v6 }
  0x43   : > { %672 = vmatpush.bf16.msrb.mxu2 %v634_v4  ;;  %v772_v4 = vld [vmem:[#allocation9 + $0x30] sm:$0xff] }
  0x44   : > { %686 = vmatpush.bf16.msra.mxu3 %v641_v15  ;;  %741 = vmatpush.bf16.msra.mxu0 %v724_v39  ;;  %v777_v7 = vpack.c.bf16 %v773_v5, %v772_v4 }
  0x47   : > { %673 = vmatpush.bf16.msrb.mxu2 %v633_v13  ;;  %v1046_v13 = vld [vmem:[%s1424_s8] ss:$0 sm:$0xff] }
  0x48   : > { %742 = vmatpush.bf16.msra.mxu0 %v723_v45 }
  0x4c   : > { %743 = vmatpush.bf16.msra.mxu0 %v722_v60 }
  0x50   : > { %789 = vmatpush.bf16.msrb.mxu0 %v777_v7 }
  0x54   : > { %790 = vmatpush.bf16.msrb.mxu0 %v776_v9 }
  0x58   : > { %791 = vmatpush.bf16.msrb.mxu0 %v775_v12 }
  0x9a   : > { %v536_v16 = vpop.permute.xlu0 %535 }
  0x9b   : > { %v539_v17 = vsel %vm538_vm1, %v532_v0, %v536_v16 }
  0x9c   : > { %540 = vst [vmem:[#allocation2 + $0x8] sm:$0xf] %v539_v17 }
  0xa3   : > { %v571_v18 = vld [vmem:[#allocation2 + $0x7] sm:$0xf] }
  0xa4   : > { %v572_v19 = vld [vmem:[#allocation2 + $0x8] sm:$0xf]  ;;  %v574_v21 = vpack.c.bf16 %v571_v18, %v571_v18 }
  0xa5   : > { %v573_v20 = vld [vmem:[#allocation2 + $0x9] sm:$0xf]  ;;  %v575_v22 = vpack.c.bf16 %v572_v19, %v572_v19  ;;  %v766_v19 = vld [vmem:[#allocation9] sm:$0xff] }
  0xa6   : > { %v576_v23 = vpack.c.bf16 %v573_v20, %v573_v20  ;;  %661 = vmatmul.bf16.vlgmr.msra.gmra.mxu1 %v574_v21  ;;  %v767_v20 = vld [vmem:[#allocation9 + $0x8] sm:$0xff] }
  0xa7   : > { %674 = vmatmul.bf16.vlgmr.msrb.gmra.mxu2 %v575_v22  ;;  %v774_v21 = vpack.c.bf16 %v767_v20, %v766_v19  ;;  %v804_v22 = vld [vmem:[#allocation11 + $0x30] sm:$0xff] }
  0xa8   : > { %687 = vmatmul.bf16.vlgmr.msra.gmra.mxu3 %v576_v23  ;;  %v805_v23 = vld [vmem:[#allocation11 + $0x38] sm:$0xff] }
  0xa9   : > { %792 = vmatpush.bf16.msrb.mxu0 %v774_v21  ;;  %v809_v25 = vpack.c.bf16 %v805_v23, %v804_v22 }
  0xab   : > { %817 = vmatpush.bf16.msrb.mxu1 %v809_v25 }
  0xaf   : > { %818 = vmatpush.bf16.msrb.mxu1 %v808_v27 }
  0xb3   : > { %v567_v32 = vpop.f32.mrf.mxu2  ;;  %819 = vmatpush.bf16.msrb.mxu1 %v807_v30 }
  0xb4   : > { %v568_v40 = vadd.f32 %v567_v32, %v546_v36  ;;  %v799_v32 = vld [vmem:[#allocation11 + $0x8] sm:$0xff] }
  0xb5   : > { %v806_v33 = vpack.c.bf16 %v799_v32, %v798_v31 }
  0xb6   : > { %v570_v46 = vmax.f32 %v568_v40, 0.0 }
  0xb7   : > { %820 = vmatpush.bf16.msrb.mxu1 %v806_v33 }
  0xb8   : > { %v693_v51 = vperm.slane %v570_v46, 0 }
 0x123   : > { %v662_v37 = vpop.f32.mrf.mxu1 }
 0x124   : > { %v663_v43 = vadd.f32 %v1045_v38, %v662_v37 }
 0x12a   : > { %v675_v44 = vpop.f32.mrf.mxu2 }
 0x12b   : > { %v676_v47 = vadd.f32 %v675_v44, %v663_v43  ;;  %v688_v48 = vpop.f32.mrf.mxu3  ;;  %v664_v49 = vpop.f32.mrf.mxu1 }
 0x12d   : > { %v689_v50 = vadd.f32 %v688_v48, %v676_v47 }
 0x12f   : > { %v692_v52 = vmax.f32 %v689_v50, 0.0 }
 0x131   : > { %v694_v53 = vadd.f32 %v693_v51, %v692_v52 }
 0x132   : > { %v677_v54 = vpop.f32.mrf.mxu2 }
 0x133   : > { %695 = vst.msk [vmem:[#allocation3 + $0x8] sm:$0xf] %vm530_vm2, %v694_v53  ;;  %v690_v55 = vpop.f32.mrf.mxu3 }
 0x13a   : > { %v698_v56 = vld [vmem:[#allocation3 + $0x9] sm:$0xf] }
 0x13b   : > { %v697_v57 = vld [vmem:[#allocation3 + $0x8] sm:$0xf]  ;;  %704 = vrot.lane.b32.xlu1 %v698_v56, %s1226_s16  ;;  %s522_s16 = scalar_lea.vmem %s1428_s12, %s1362_s3 }
 0x13c   : > { %700 = vrot.lane.b32.xlu0 %v697_v57, %s1227_s18  ;;  %v696_v63 = vld [vmem:[#allocation3 + $0x7] sm:$0xf] }
 0x1ad   : > { %v705_v61 = vpop.permute.xlu1 %704 }
 0x1ae   : > { %v701_v62 = vpop.permute.xlu0 %700 }
 0x1af   : > { %v707_v1 = vsel %vm527_vm0, %v696_v63, %v701_v62 }
 0x1b0   : > { %v708_v2 = vsel %vm538_vm1, %v707_v1, %v705_v61 }
 0x1b1   : > { %v709_v3 = vpack.c.bf16 %v708_v2, %v708_v2 }
 0x1b3   : > { %976 = vmatmul.msk.bf16.vlgmr.msra.gmra.mxu0 %vm732_vm3, %v709_v3 }
 0x230   : > { %v745_v14 = vpop.f32.mrf.mxu0 }
 0x231   : > { %v746_v15 = vadd.f32 %v1046_v13, %v745_v14 }
 0x233   : > { %v749_v0 = vmax.f32 %v746_v15, 0.0 }
 0x235   : > { %750 = vst.msk [vmem:[#allocation3 + $0x8] sm:$0xf] %vm530_vm2, %v749_v0 }
 0x238   : > { %v747_v16 = vpop.f32.mrf.mxu0 }
 0x23c   : > { %v759_v17 = vld [vmem:[#allocation3 + $0x9] sm:$0xf] }
 0x23d   : > { %v752_v18 = vld [vmem:[#allocation3 + $0x8] sm:$0xf]  ;;  %761 = vrot.lane.b32.xlu1 %v759_v17, %s1227_s18 }
 0x23e   : > { %754 = vrot.lane.b32.xlu2 %v752_v18, %s1227_s18  ;;  %v751_v35 = vld [vmem:[#allocation3 + $0x7] sm:$0xf] }
 0x298   : > { %v755_v34 = vpop.permute.xlu2 %754 }
 0x299   : > { %v757_v36 = vsel %vm527_vm0, %v751_v35, %v755_v34 }
 0x29a   : > { %v758_v37 = vpack.c.bf16 %v757_v36, %v757_v36 }
 0x29c   : > { %977 = vmatmul.msk.bf16.vlgmr.msrb.gmra.mxu0 %vm538_vm1, %v758_v37 }
 0x2af   : > { %v762_v38 = vpop.permute.xlu1 %761 }
 0x2b0   : > { %v764_v39 = vsel %vm527_vm0, %v752_v18, %v762_v38 }
 0x2b1   : > { %v765_v40 = vpack.c.bf16 %v764_v39, %v764_v39 }
 0x2b3   : > { %978 = vmatmul.msk.bf16.vlgmr.msrb.gmra.mxu1 %vm538_vm1, %v765_v40 }
 0x319   : > { %v794_v42 = vpop.f32.mrf.mxu0 }
 0x31a   : > { %v795_v43 = vadd.f32 %v1047_v41, %v794_v42 }
 0x321   : > { %v796_v44 = vpop.f32.mrf.mxu0 }
 0x330   : > { %v822_v45 = vpop.f32.mrf.mxu1 }
 0x331   : > { %v823_v46 = vadd.f32 %v1047_v41, %v822_v45 }
 0x333   : > { %827 = vrot.lane.b32.xlu2 %v823_v46, %s1227_s18 }
 0x338   : > { %v824_v47 = vpop.f32.mrf.mxu1 }
 0x38d   : > { %v828_v48 = vpop.permute.xlu2 %827 }
 0x38e   : > { %v830_v49 = vsel %vm527_vm0, %v795_v43, %v828_v48 }
 0x38f   : > { %832 = vst.msk [vmem:[%s522_s16] sm:$0xf] %vm831_vm4, %v830_v49 }
 0x390 PF: > { %s25_s21 = sadd.s32 1, %s1216_s21  }
 0x391   : > { %p22_p7 = scmp.ge.s32.totalorder %s25_s21, 4  }
 0x393   :  { %24 = sbr.rel (!%p22_p7) target bundleno = 6 (0x6), region = 125 }
 0x398   :  { %852 = vsyncpa [#allocation5], 1 }
 0x399   :  { %854 = vsyncpa [#allocation5 + $0x1], 1 }
 0x39a   :  { %855 = vsyncpa [#allocation7], 1 }
 0x39b   :  { %856 = vsyncpa [#allocation10], 1 }

// kernel: _lambda_.12
= control target key start
LH: loop header
LB: loop body
LE: loop exit
PB: predicated region body
PF: predicated region fallthrough
CT: control target
= control target key end

     0   :  { %s1359_s0 = inlined_call_operand.vmem [shape: f32[2,8,32], index: 0, kind: input, shape index: {}]   ;;  %s1360_s1 = inlined_call_operand.vmem [shape: f32[2,8,32], index: 1, kind: input, shape index: {}]   ;;  %s1361_s2 = inlined_call_operand.vmem [shape: f32[2,1,32], index: 2, kind: input, shape index: {}]   ;;  %s1362_s3 = inlined_call_operand.hbm [shape: f32[192,16], index: 3, kind: input, shape index: {}]   ;;  %s1363_s4 = inlined_call_operand.vmem [shape: f32[1,16], index: 4, kind: input, shape index: {}, may-alias: {4,6,8,11}]   ;;  %s1364_s5 = inlined_call_operand.hbm [shape: f32[32,16], index: 5, kind: input, shape index: {}]   ;;  %s1365_s6 = inlined_call_operand.vmem [shape: f32[1,16], index: 6, kind: input, shape index: {}, may-alias: {4,6,8,11}]   ;;  %s1366_s7 = inlined_call_operand.hbm [shape: f32[48,16], index: 7, kind: input, shape index: {}]   ;;  %s1367_s8 = inlined_call_operand.vmem [shape: f32[1,16], index: 8, kind: input, shape index: {}, may-alias: {4,6,8,11}]   ;;  %s1368_s9 = inlined_call_operand.hbm [shape: f32[32,16], index: 9, kind: input, shape index: {}]   ;;  %s1369_s10 = inlined_call_operand.hbm [shape: f32[32,16], index: 10, kind: input, shape index: {}]   ;;  %s1370_s11 = inlined_call_operand.vmem [shape: f32[1,16], index: 11, kind: input, shape index: {}, may-alias: {4,6,8,11}]   ;;  %s1371_s12 = inlined_call_operand.vmem [shape: f32[2,8,32], index: 12, kind: output, shape index: {}]  }
   0x1   :  { %1372 = sst [smem:[#allocation15_spill]] %s1362_s3 }
   0x2   :  { %1373 = sst [smem:[#allocation16_spill]] %s1364_s5 }
   0x3   :  { %17 = vsyncpa [#allocation5], 0 }
   0x4   :  { %18 = vsyncpa [#allocation7], 0 }
   0x5   :  { %19 = vsyncpa [#allocation10], 0  ;;  %s1232_s21 = smov 0  }
   0x6 LB: > { %s1238_s22 = sadd.s32 4294967295, %s1154_s21   ;;  %p895_p0 = scmp.ge.s32.totalorder %s1154_s21, 1  ;;  %s1154_s21 = sphi %s1232_s21, %s25_s21  }
   0x7   : > { %p323_p1 = scmp.lt.s32.totalorder %s1154_s21, 3  ;;  %p954_p2 = scmp.eq.s32.totalorder %s1238_s22, 0 }
   0x8   : > { %s1374_s5 = sld [smem:[#allocation16_spill]]  ;;  %s385_s29 = sshll.u32 %s1368_s9, 4  ;;  %s386_s29 = int_to_ptr.hbm [resolvable:$true] %s385_s29 }
   0x9   : > { %p1246_p3 = pnand %p895_p0, %p323_p1  ;;  %s1156_s30 = smov [#allocation6]  }
   0xa   : > { %s353_s13 = sshll.u32 %s1156_s30, 4  ;;  %s1157_s15 = smov [#allocation9]   ;;  %s354_s13 = int_to_ptr.vmem [resolvable:$true] %s353_s13 }
   0xb   : > { %p938_p4 = pneg %p1246_p3  ;;  %s387_s16 = sshll.u32 %s1157_s15, 4  ;;  %s388_s16 = int_to_ptr.vmem [resolvable:$true] %s387_s16 }
   0xc   : > { %s1377_s3 = sld [smem:[#allocation15_spill]]  ;;  %s1158_s20 = smov 128  }
   0xd   : > { %p1257_p5 = pnand %p954_p2, %p938_p4  ;;  %s1159_s23 = smov 8  }
   0xe   : > { %s351_s25 = sshll.u32 %s1374_s5, 4  ;;  %s1160_s24 = smov [#allocation4]   ;;  %s352_s25 = int_to_ptr.hbm [resolvable:$true] %s351_s25 }
   0xf   : > { %944 = dma.hbm_to_vmem [thread:$0]  (!%p1257_p5), %s352_s25, 512, %s354_s13, [#allocation7], %s1158_s20, %s1158_s20, %s1159_s23  }
  0x10   : > { %950 = dma.hbm_to_vmem [thread:$0]  (!%p1257_p5), %s386_s29, 512, %s388_s16, [#allocation10], %s1158_s20, %s1158_s20, %s1159_s23  }
  0x11   : > { %s336_s27 = sshll.u32 %s1160_s24, 4  ;;  %s368_s15 = sshll.u32 %s1366_s7, 4  ;;  %s337_s27 = int_to_ptr.vmem [resolvable:$true] %s336_s27  ;;  %s369_s15 = int_to_ptr.hbm [resolvable:$true] %s368_s15 }
  0x12   : > { %s334_s19 = sshll.u32 %s1377_s3, 4  ;;  %s399_s3 = sshll.u32 %s1369_s10, 4  ;;  %s335_s19 = int_to_ptr.hbm [resolvable:$true] %s334_s19  ;;  %s400_s3 = int_to_ptr.hbm [resolvable:$true] %s399_s3 }
  0x13   : > { %941 = dma.hbm_to_vmem [thread:$0]  (!%p1257_p5), %s335_s19, 3072, %s337_s27, [#allocation5], %s1158_s20, %s1158_s20, %s1159_s23  }
  0x14   : > { %s1161_s5 = smov [#allocation8]   ;;  %s1162_s29 = smov [#allocation11]  }
  0x15   : > { %s370_s25 = sshll.u32 %s1161_s5, 4  ;;  %s401_s13 = sshll.u32 %s1162_s29, 4  ;;  %s371_s25 = int_to_ptr.vmem [resolvable:$true] %s370_s25  ;;  %s402_s13 = int_to_ptr.vmem [resolvable:$true] %s401_s13 }
  0x16   : > { %947 = dma.hbm_to_vmem [thread:$0]  (!%p1257_p5), %s369_s15, 768, %s371_s25, [#allocation7], %s1158_s20, %s1158_s20, %s1159_s23  }
  0x17   : > { %953 = dma.hbm_to_vmem [thread:$0]  (!%p1257_p5), %s400_s3, 512, %s402_s13, [#allocation10], %s1158_s20, %s1158_s20, %s1159_s23  }
  0x18   : > { %440 = sbr.rel (%p1246_p3) target bundleno = 1039 (0x40f), region = 68 }
  0x1d   : > { %1141 = dma.done.wait (%p954_p2), [#allocation5], 3072  }
  0x1e   : > { %1143 = vsyncadd (%p954_p2), [#allocation5], 4294964224 }
  0x1f   : > { %1145 = dma.done.wait (%p954_p2), [#allocation7], 1280  }
  0x20   : > { %1147 = vsyncadd (%p954_p2), [#allocation7], 4294966016 }
  0x21   : > { %1149 = dma.done.wait (%p954_p2), [#allocation10], 1024  }
  0x22   : > { %1151 = vsyncadd (%p954_p2), [#allocation10], 4294966272  ;;  %p508_p6 = scmp.lt.s32.totalorder %s1238_s22, 1  ;;  %vm524_vm0 = vcmask 523264   ;;  %vm528_vm1 = vcmask 130048   ;;  %v1163_v0 = vmov 0.0  }
  0x23   : > { %525 = vst.msk [vmem:[#allocation2] sm:$0xff] %vm524_vm0, %v1163_v0  ;;  %v603_v2 = vld [vmem:[#allocation4 + $0xb0] sm:$0xff]  ;;  %v604_v3 = vld [vmem:[#allocation4 + $0xb8] sm:$0xff]  ;;  %s1164_s16 = smov 32   ;;  %v601_v5 = vld [vmem:[#allocation4 + $0xa0] sm:$0xff]  ;;  %vm538_vm2 = vcmask 261120  }
  0x24   : > { %s1379_s22 = smov (!%p508_p6, %s1238_s22), 1  ;;  %526 = vst.msk [vmem:[#allocation2 + $0x8] sm:$0xff] %vm524_vm0, %v1163_v0  ;;  %v616_v4 = vpack.c.bf16 %v604_v3, %v603_v2  ;;  %v602_v6 = vld [vmem:[#allocation4 + $0xa8] sm:$0xff]  ;;  %v599_v8 = vld [vmem:[#allocation4 + $0x90] sm:$0xff]  ;;  %v600_v9 = vld [vmem:[#allocation4 + $0x98] sm:$0xff]  ;;  %s1165_s24 = smov 64  }
  0x25   : > { %527 = vst.msk [vmem:[#allocation2 + $0x10] sm:$0xff] %vm524_vm0, %v1163_v0  ;;  %s1302_s3 = sshll.u32 %s1379_s22, 3  ;;  %v615_v7 = vpack.c.bf16 %v602_v6, %v601_v5  ;;  %v597_v10 = vld [vmem:[#allocation4 + $0x80] sm:$0xff]  ;;  %v614_v11 = vpack.c.bf16 %v600_v9, %v599_v8  ;;  %v598_v12 = vld [vmem:[#allocation4 + $0x88] sm:$0xff]  ;;  %v595_v14 = vld [vmem:[#allocation4 + $0x70] sm:$0xff]  ;;  %s518_s30 = scalar_lea.vmem %s1361_s2, %s1379_s22  ;;  %vm681_vm3 = vcmask 392192  }
  0x26   : > { %529 = vst.msk [vmem:[#allocation3] sm:$0xff] %vm528_vm1, %v1163_v0  ;;  %s515_s14 = scalar_lea.vmem %s1360_s1, %s1302_s3  ;;  %641 = vmatpush.bf16.msra.mxu2 %v616_v4  ;;  %v613_v13 = vpack.c.bf16 %v598_v12, %v597_v10  ;;  %v596_v15 = vld [vmem:[#allocation4 + $0x78] sm:$0xff]  ;;  %v593_v16 = vld [vmem:[#allocation4 + $0x60] sm:$0xff]  ;;  %v594_v18 = vld [vmem:[#allocation4 + $0x68] sm:$0xff]  ;;  %s511_s23 = scalar_lea.vmem %s1359_s0, %s1302_s3 }
  0x27   : > { %531 = vst.msk [vmem:[#allocation3 + $0x10] sm:$0xff] %vm528_vm1, %v1163_v0  ;;  %v533_v1 = vld [vmem:[%s515_s14] sm:$0xff]  ;;  %v612_v17 = vpack.c.bf16 %v596_v15, %v595_v14  ;;  %v611_v19 = vpack.c.bf16 %v594_v18, %v593_v16  ;;  %v592_v21 = vld [vmem:[#allocation4 + $0x58] sm:$0xff]  ;;  %v589_v25 = vld [vmem:[#allocation4 + $0x40] sm:$0xff]  ;;  %s1166_s25 = smov 16   ;;  %s522_s19 = scalar_lea.vmem %s1371_s12, %s1302_s3 }
  0x28   : > { %530 = vst.msk [vmem:[#allocation3 + $0x8] sm:$0xff] %vm528_vm1, %v1163_v0  ;;  %535 = vrot.lane.b32.xlu0 %v533_v1, %s1164_s16  ;;  %v591_v20 = vld [vmem:[#allocation4 + $0x50] sm:$0xff]  ;;  %v545_v22 = vld [vmem:[#allocation6 + $0x18] sm:$0xff]  ;;  %v590_v26 = vld [vmem:[#allocation4 + $0x48] sm:$0xff] }
  0x29   : > { %624 = vmatpush.bf16.msra.mxu1 %v612_v17  ;;  %562 = vmatpush.msra.mxu0 %v545_v22  ;;  %v544_v23 = vld [vmem:[#allocation6 + $0x10] sm:$0xff]  ;;  %v610_v24 = vpack.c.bf16 %v592_v21, %v591_v20  ;;  %v609_v27 = vpack.c.bf16 %v590_v26, %v589_v25  ;;  %v588_v29 = vld [vmem:[#allocation4 + $0x38] sm:$0xff]  ;;  %v585_v31 = vld [vmem:[#allocation4 + $0x20] sm:$0xff] }
  0x2a   : > { %642 = vmatpush.bf16.msra.mxu2 %v615_v7  ;;  %v587_v28 = vld [vmem:[#allocation4 + $0x30] sm:$0xff]  ;;  %v586_v32 = vld [vmem:[#allocation4 + $0x28] sm:$0xff]  ;;  %v584_v37 = vld [vmem:[#allocation4 + $0x18] sm:$0xff] }
  0x2b   : > { %563 = vmatpush.msra.mxu0 %v544_v23  ;;  %v608_v30 = vpack.c.bf16 %v588_v29, %v587_v28  ;;  %v532_v33 = vld [vmem:[%s511_s23] sm:$0xff]  ;;  %v607_v34 = vpack.c.bf16 %v586_v32, %v585_v31  ;;  %v581_v43 = vld [vmem:[#allocation4] sm:$0xff]  ;;  %v582_v44 = vld [vmem:[#allocation4 + $0x8] sm:$0xff] }
  0x2c   : > { %v583_v36 = vld [vmem:[#allocation4 + $0x10] sm:$0xff]  ;;  %v605_v45 = vpack.c.bf16 %v582_v44, %v581_v43  ;;  %v543_v46 = vld [vmem:[#allocation6 + $0x8] sm:$0xff]  ;;  %v542_v47 = vld [vmem:[#allocation6] sm:$0xff] }
  0x2d   : > { %625 = vmatpush.bf16.msra.mxu1 %v611_v19  ;;  %v606_v39 = vpack.c.bf16 %v584_v37, %v583_v36  ;;  %564 = vmatpush.msra.mxu0 %v543_v46  ;;  %v541_v48 = vld [vmem:[%s518_s30] sm:$0x1]  ;;  %v672_v5 = vld [vmem:[#allocation8 + $0x20] sm:$0xff]  ;;  %v673_v6 = vld [vmem:[#allocation8 + $0x28] sm:$0xff] }
  0x2e   : > { %643 = vmatpush.bf16.msra.mxu2 %v614_v11  ;;  %v546_v55 = vld [vmem:[%s1365_s6] sm:$0x1]  ;;  %v676_v7 = vpack.c.bf16 %v673_v6, %v672_v5  ;;  %v671_v9 = vld [vmem:[#allocation8 + $0x18] sm:$0xff]  ;;  %v668_v11 = vld [vmem:[#allocation8] sm:$0xff] }
  0x2f   : > { %565 = vmatpush.msra.mxu0 %v542_v47  ;;  %v983_v58 = vld [vmem:[%s1363_s4] ss:$0 sm:$0xff]  ;;  %v669_v12 = vld [vmem:[#allocation8 + $0x8] sm:$0xff]  ;;  %v743_v20 = vld [vmem:[#allocation11 + $0x10] sm:$0xff] }
  0x30   : > { %911 = vmatmul.msk.f32.vlgmr.msra.gmra.mxu0 %vm538_vm2, %v541_v48  ;;  %690 = vmatpush.bf16.msra.mxu3 %v676_v7  ;;  %v670_v8 = vld [vmem:[#allocation8 + $0x10] sm:$0xff]  ;;  %v744_v21 = vld [vmem:[#allocation11 + $0x18] sm:$0xff]  ;;  %v716_v37 = vld [vmem:[#allocation9 + $0x8] sm:$0xff] }
  0x31   : > { %626 = vmatpush.bf16.msra.mxu1 %v610_v24  ;;  %v675_v10 = vpack.c.bf16 %v671_v9, %v670_v8  ;;  %v741_v22 = vld [vmem:[#allocation11] sm:$0xff]  ;;  %v746_v23 = vpack.c.bf16 %v744_v21, %v743_v20  ;;  %v742_v24 = vld [vmem:[#allocation11 + $0x8] sm:$0xff] }
  0x32   : > { %644 = vmatpush.bf16.msra.mxu2 %v613_v13  ;;  %v674_v13 = vpack.c.bf16 %v669_v12, %v668_v11  ;;  %v745_v25 = vpack.c.bf16 %v742_v24, %v741_v22  ;;  %v984_v26 = vld [vmem:[%s1367_s8] ss:$0 sm:$0xff] }
  0x33   : > { %v715_v36 = vld [vmem:[#allocation9] sm:$0xff] }
  0x34   : > { %691 = vmatpush.bf16.msra.mxu3 %v675_v10  ;;  %v985_v46 = vld [vmem:[%s1370_s11] ss:$0 sm:$0xff] }
  0x35   : > { %627 = vmatpush.bf16.msra.mxu1 %v609_v27 }
  0x38   : > { %692 = vmatpush.bf16.msra.mxu3 %v674_v13 }
  0x39   : > { %628 = vmatpush.bf16.msra.mxu1 %v608_v30 }
  0x3c   : > { %756 = vmatpush.bf16.msrb.mxu3 %v746_v23 }
  0x3d   : > { %629 = vmatpush.bf16.msra.mxu1 %v607_v34  ;;  %v718_v34 = vld [vmem:[#allocation9 + $0x18] sm:$0xff] }
  0x40   : > { %757 = vmatpush.bf16.msrb.mxu3 %v745_v25 }
  0x41   : > { %630 = vmatpush.bf16.msra.mxu1 %v606_v39 }
  0x45   : > { %631 = vmatpush.bf16.msra.mxu1 %v605_v45 }
  0x9a   : > { %v536_v35 = vpop.permute.xlu0 %535 }
  0x9b   : > { %v539_v38 = vsel %vm538_vm2, %v532_v33, %v536_v35  ;;  %v717_v33 = vld [vmem:[#allocation9 + $0x10] sm:$0xff] }
  0x9c   : > { %540 = vst.msk [vmem:[#allocation2 + $0x8] sm:$0xff] %vm524_vm0, %v539_v38  ;;  %v720_v35 = vpack.c.bf16 %v718_v34, %v717_v33  ;;  %v719_v38 = vpack.c.bf16 %v716_v37, %v715_v36 }
  0x9e   : > { %734 = vmatpush.bf16.msrb.mxu0 %v720_v35 }
  0xa2   : > { %735 = vmatpush.bf16.msrb.mxu0 %v719_v38 }
  0xa3   : > { %v572_v40 = vld [vmem:[#allocation2 + $0x8] sm:$0xff] }
  0xa4   : > { %v573_v41 = vld [vmem:[#allocation2 + $0x9] sm:$0xff]  ;;  %575 = vrot.lane.b32.xlu0 %v572_v40, %s1165_s24 }
  0xa5   : > { %v580_v42 = vpack.c.bf16 %v573_v41, %v573_v41  ;;  %v571_v50 = vld [vmem:[#allocation2 + $0x7] sm:$0xff] }
  0xa7   : > { %912 = vmatmul.msk.bf16.vlgmr.msra.gmra.mxu2 %vm524_vm0, %v580_v42 }
  0xad   : > { %v567_v56 = vpop.f32.mrf.mxu0 }
  0xae   : > { %v568_v57 = vadd.f32 %v567_v56, %v546_v55 }
  0xb0   : > { %v570_v59 = vmax.f32 %v568_v57, 0.0 }
  0xb2   : > { %v651_v62 = vperm.slane %v570_v59, 0 }
 0x116   : > { %v576_v49 = vpop.permute.xlu0 %575 }
 0x117   : > { %v578_v51 = vsel %vm524_vm0, %v571_v50, %v576_v49 }
 0x118   : > { %v579_v52 = vpack.c.bf16 %v578_v51, %v578_v51 }
 0x11a   : > { %632 = vmatmul.bf16.vlgmr.msra.gmra.mxu1 %v579_v52 }
 0x12a   : > { %v646_v53 = vpop.f32.mrf.mxu2 }
 0x132   : > { %v648_v54 = vpop.f32.mrf.mxu2 }
 0x197   : > { %v633_v60 = vpop.f32.mrf.mxu1 }
 0x198   : > { %v634_v61 = vadd.f32 %v983_v58, %v633_v60 }
 0x19a   : > { %v647_v63 = vadd.f32 %v646_v53, %v634_v61 }
 0x19c   : > { %v650_v0 = vmax.f32 %v647_v63, 0.0 }
 0x19e   : > { %v652_v1 = vadd.f32 %v651_v62, %v650_v0 }
 0x19f   : > { %v635_v2 = vpop.f32.mrf.mxu1 }
 0x1a0   : > { %653 = vst.msk [vmem:[#allocation3 + $0x8] sm:$0xff] %vm528_vm1, %v652_v1 }
 0x1a7   : > { %v655_v3 = vld [vmem:[#allocation3 + $0x8] sm:$0xff] }
 0x1a8   : > { %658 = vrot.lane.b32.xlu1 %v655_v3, %s1166_s25  ;;  %v656_v4 = vld [vmem:[#allocation3 + $0x9] sm:$0xff] }
 0x1a9   : > { %v654_v15 = vld [vmem:[#allocation3 + $0x7] sm:$0xff] }
 0x1b0   : > { %662 = vrot.lane.b32.xlu1 %v656_v4, %s1164_s16 }
 0x21a   : > { %v659_v14 = vpop.permute.xlu1 %658 }
 0x21b   : > { %v665_v16 = vsel %vm528_vm1, %v654_v15, %v659_v14 }
 0x222   : > { %v663_v17 = vpop.permute.xlu1 %662 }
 0x223   : > { %v666_v18 = vsel %vm538_vm2, %v665_v16, %v663_v17 }
 0x224   : > { %v667_v19 = vpack.c.bf16 %v666_v18, %v666_v18 }
 0x226   : > { %913 = vmatmul.msk.bf16.vlgmr.msra.gmra.mxu3 %vm681_vm3, %v667_v19 }
 0x2a9   : > { %v694_v27 = vpop.f32.mrf.mxu3 }
 0x2aa   : > { %v695_v28 = vadd.f32 %v984_v26, %v694_v27 }
 0x2ac   : > { %v698_v29 = vmax.f32 %v695_v28, 0.0 }
 0x2ae   : > { %699 = vst.msk [vmem:[#allocation3 + $0x8] sm:$0xff] %vm528_vm1, %v698_v29 }
 0x2b1   : > { %v696_v30 = vpop.f32.mrf.mxu3 }
 0x2b5   : > { %v708_v31 = vld [vmem:[#allocation3 + $0x9] sm:$0xff] }
 0x2b6   : > { %710 = vrot.lane.b32.xlu2 %v708_v31, %s1166_s25  ;;  %v701_v32 = vld [vmem:[#allocation3 + $0x8] sm:$0xff] }
 0x2b7   : > { %v700_v43 = vld [vmem:[#allocation3 + $0x7] sm:$0xff] }
 0x2be   : > { %703 = vrot.lane.b32.xlu2 %v701_v32, %s1166_s25 }
 0x310   : > { %v711_v39 = vpop.permute.xlu2 %710 }
 0x311   : > { %v713_v40 = vsel %vm528_vm1, %v701_v32, %v711_v39 }
 0x312   : > { %v714_v41 = vpack.c.bf16 %v713_v40, %v713_v40 }
 0x314   : > { %915 = vmatmul.msk.bf16.vlgmr.msrb.gmra.mxu3 %vm538_vm2, %v714_v41 }
 0x318   : > { %v704_v42 = vpop.permute.xlu2 %703 }
 0x319   : > { %v706_v44 = vsel %vm528_vm1, %v700_v43, %v704_v42 }
 0x31a   : > { %v707_v45 = vpack.c.bf16 %v706_v44, %v706_v44 }
 0x31c   : > { %914 = vmatmul.msk.bf16.vlgmr.msrb.gmra.mxu0 %vm538_vm2, %v707_v45 }
 0x397   : > { %v759_v47 = vpop.f32.mrf.mxu3 }
 0x398   : > { %v760_v48 = vadd.f32 %v985_v46, %v759_v47 }
 0x399   : > { %v737_v49 = vpop.f32.mrf.mxu0 }
 0x39a   : > { %v738_v50 = vadd.f32 %v985_v46, %v737_v49  ;;  %764 = vrot.lane.b32.xlu0 %v760_v48, %s1166_s25 }
 0x39f   : > { %v761_v51 = vpop.f32.mrf.mxu3 }
 0x3a1   : > { %v739_v52 = vpop.f32.mrf.mxu0 }
 0x40c   : > { %v765_v53 = vpop.permute.xlu0 %764 }
 0x40d   : > { %v767_v54 = vsel %vm528_vm1, %v738_v50, %v765_v53 }
 0x40e   : > { %768 = vst.msk [vmem:[%s522_s19] sm:$0xff] %vm538_vm2, %v767_v54 }
 0x40f PF: > { %s25_s21 = sadd.s32 1, %s1154_s21  }
 0x410   : > { %p22_p7 = scmp.ge.s32.totalorder %s25_s21, 4  }
 0x412   :  { %24 = sbr.rel (!%p22_p7) target bundleno = 6 (0x6), region = 125 }
 0x417   :  { %788 = vsyncpa [#allocation5], 1 }
 0x418   :  { %790 = vsyncpa [#allocation5 + $0x1], 1 }
 0x419   :  { %791 = vsyncpa [#allocation7], 1 }
 0x41a   :  { %792 = vsyncpa [#allocation10], 1 }

// kernel: _lambda_.13
= control target key start
LH: loop header
LB: loop body
LE: loop exit
PB: predicated region body
PF: predicated region fallthrough
CT: control target
= control target key end

     0   :  { %17 = vsyncpa [#allocation4], 0  ;;  %s1475_s0 = inlined_call_operand.vmem [shape: f32[2,16,16], index: 0, kind: input, shape index: {}]   ;;  %s1476_s1 = inlined_call_operand.vmem [shape: f32[2,1,32], index: 1, kind: input, shape index: {}]   ;;  %s1477_s2 = inlined_call_operand.hbm [shape: f32[16,16], index: 2, kind: input, shape index: {}]   ;;  %s1478_s3 = inlined_call_operand.vmem [shape: f32[1,16], index: 3, kind: input, shape index: {}, may-alias: {3,5}]   ;;  %s1479_s4 = inlined_call_operand.vmem [shape: f32[32,16], index: 4, kind: input, shape index: {}]   ;;  %s1480_s5 = inlined_call_operand.vmem [shape: f32[1,16], index: 5, kind: input, shape index: {}, may-alias: {3,5}]   ;;  %s1481_s6 = inlined_call_operand.vmem [shape: f32[2,48,32], index: 6, kind: input, shape index: {}]   ;;  %s1482_s7 = inlined_call_operand.vmem [shape: f32[2,1,32], index: 7, kind: input, shape index: {}, may-alias: {7,9}]   ;;  %s1483_s8 = inlined_call_operand.hbm [shape: f32[2,16,32], index: 8, kind: input, shape index: {}]   ;;  %s1484_s9 = inlined_call_operand.vmem [shape: f32[2,1,32], index: 9, kind: input, shape index: {}, may-alias: {7,9}]   ;;  %s1485_s10 = inlined_call_operand.hbm [shape: f32[16,4], index: 10, kind: input, shape index: {}]   ;;  %s1486_s11 = inlined_call_operand.vmem [shape: f32[1,4], index: 11, kind: input, shape index: {}]   ;;  %s1487_s12 = inlined_call_operand.vmem [shape: f32[2,16,4], index: 12, kind: output, shape index: {}]  }
   0x1   :  { %18 = vsyncpa [#allocation6], 0  ;;  %s1289_s21 = smov 0  }
   0x2 LB: > { %s1295_s22 = sadd.s32 4294967295, %s1213_s21   ;;  %p976_p0 = scmp.ge.s32.totalorder %s1213_s21, 1  ;;  %s1213_s21 = sphi %s1289_s21, %s24_s21  }
   0x3   : > { %p317_p1 = scmp.lt.s32.totalorder %s1213_s21, 3  ;;  %p1036_p2 = scmp.eq.s32.totalorder %s1295_s22, 0 }
   0x4   : > { %s357_s25 = sshll.u32 %s1483_s8, 4  ;;  %s328_s29 = sshll.u32 %s1477_s2, 4  ;;  %s358_s25 = int_to_ptr.hbm [resolvable:$true] %s357_s25  ;;  %s329_s29 = int_to_ptr.hbm [resolvable:$true] %s328_s29 }
   0x5   : > { %p1303_p3 = pnand %p976_p0, %p317_p1  ;;  %s1215_s30 = smov [#allocation5]  }
   0x6   : > { %s359_s13 = sshll.u32 %s1215_s30, 4  ;;  %s1216_s14 = smov [#allocation3]   ;;  %s360_s13 = int_to_ptr.vmem [resolvable:$true] %s359_s13 }
   0x7   : > { %p1026_p4 = pneg %p1303_p3  ;;  %s330_s15 = sshll.u32 %s1216_s14, 4  ;;  %s331_s15 = int_to_ptr.vmem [resolvable:$true] %s330_s15 }
   0x8   : > { %s374_s18 = sshll.u32 %s1485_s10, 4  ;;  %s1217_s19 = smov 128   ;;  %s375_s18 = int_to_ptr.hbm [resolvable:$true] %s374_s18 }
   0x9   : > { %p1027_p5 = pnand %p1036_p2, %p1026_p4  ;;  %s1218_s20 = smov 8  }
   0xa   : > { %s1219_s23 = smov [#allocation7]   ;;  %409 = sbr.rel (%p1303_p3) target bundleno = 1522 (0x5f2), region = 68 }
   0xb   : > { %1032 = dma.hbm_to_vmem [thread:$0]  (!%p1027_p5), %s358_s25, 512, %s360_s13, [#allocation6], %s1217_s19, %s1217_s19, %s1218_s20  }
   0xc   : > { %1029 = dma.hbm_to_vmem [thread:$0]  (!%p1027_p5), %s329_s29, 256, %s331_s15, [#allocation4], %s1217_s19, %s1217_s19, %s1218_s20  }
   0xd   : > { %s376_s24 = sshll.u32 %s1219_s23, 4  ;;  %s377_s24 = int_to_ptr.vmem [resolvable:$true] %s376_s24 }
   0xe   : > { %1035 = dma.hbm_to_vmem [thread:$0]  (!%p1027_p5), %s375_s18, 256, %s377_s24, [#allocation6], %s1217_s19, %s1217_s19, %s1218_s20  }
   0xf   : > { %1204 = dma.done.wait (%p1036_p2), [#allocation4], 256  }
  0x10   : > { %1206 = vsyncadd (%p1036_p2), [#allocation4], 4294967040 }
  0x11   : > { %1208 = dma.done.wait (%p1036_p2), [#allocation6], 768  }
  0x12   : > { %1210 = vsyncadd (%p1036_p2), [#allocation6], 4294966528  ;;  %p465_p6 = scmp.lt.s32.totalorder %s1295_s22, 1  ;;  %v482_v0 = vld [vmem:[#allocation3 + $0x8] sm:$0xff]  ;;  %v521_v1 = vld [vmem:[%s1479_s4 + $0x18] sm:$0xff]  ;;  %vm487_vm0 = vcmask 130048  }
  0x13   : > { %v481_v2 = vld [vmem:[#allocation3] sm:$0xff]  ;;  %508 = vmatpush.msra.mxu0 %v482_v0  ;;  %539 = vmatpush.msra.mxu1 %v521_v1  ;;  %v520_v3 = vld [vmem:[%s1479_s4 + $0x10] sm:$0xff]  ;;  %v519_v5 = vld [vmem:[%s1479_s4 + $0x8] sm:$0xff]  ;;  %vm523_vm1 = vcmask 261120   ;;  %v1220_v9 = vmov 0.0   ;;  %s1222_s30 = smov 32  }
  0x14   : > { %s1490_s22 = smov (!%p465_p6, %s1295_s22), 1  ;;  %v518_v6 = vld [vmem:[%s1479_s4] sm:$0xff]  ;;  %547 = vst.msk [vmem:[#allocation2] sm:$0xff] %vm487_vm0, %v1220_v9  ;;  %v588_v28 = vld [vmem:[%s1481_s6 + $0x28] sm:$0xff]  ;;  %v585_v30 = vld [vmem:[%s1481_s6 + $0x10] sm:$0xff]  ;;  %vm596_vm2 = vcmask 392192  }
  0x15   : > { %s1012_s25 = sshll.u32 %s1490_s22, 4  ;;  %s472_s19 = scalar_lea.vmem %s1476_s1, %s1490_s22  ;;  %509 = vmatpush.msra.mxu0 %v481_v2  ;;  %540 = vmatpush.msra.mxu1 %v520_v3  ;;  %548 = vst.msk [vmem:[#allocation2 + $0x8] sm:$0xff] %vm487_vm0, %v1220_v9  ;;  %v522_v11 = vld [vmem:[%s1480_s5] sm:$0x1]  ;;  %v586_v31 = vld [vmem:[%s1481_s6 + $0x18] sm:$0xff]  ;;  %v584_v34 = vld [vmem:[%s1481_s6 + $0x8] sm:$0xff] }
  0x16   : > { %s469_s28 = scalar_lea.vmem %s1475_s0, %s1012_s25  ;;  %v517_v7 = vld [vmem:[%s472_s19] sm:$0x1]  ;;  %550 = vst.msk [vmem:[#allocation2 + $0x18] sm:$0xff] %vm487_vm0, %v1220_v9  ;;  %v590_v32 = vpack.c.bf16 %v586_v31, %v585_v30  ;;  %s1223_s14 = smov 112  }
  0x17   : > { %v479_v4 = vld [vmem:[%s469_s28] sm:$0xff]  ;;  %541 = vmatpush.msra.mxu1 %v519_v5  ;;  %v480_v8 = vld [vmem:[%s469_s28 + $0x8] sm:$0xff]  ;;  %549 = vst.msk [vmem:[#allocation2 + $0x10] sm:$0xff] %vm487_vm0, %v1220_v9  ;;  %s1221_s28 = smov 16   ;;  %s477_s26 = scalar_lea.vmem %s1487_s12, %s1012_s25 }
  0x18   : > { %989 = vmatmul.msk.f32.vlgmr.msra.gmra.mxu0 %vm487_vm0, %v479_v4  ;;  %v1079_v12 = vld [vmem:[%s1478_s3] ss:$0 sm:$0xff] }
  0x19   : > { %542 = vmatpush.msra.mxu1 %v518_v6  ;;  %v587_v27 = vld [vmem:[%s1481_s6 + $0x20] sm:$0xff] }
  0x1a   : > { %991 = vmatmul.msk.f32.vlgmr.msra.gmra.mxu1 %vm523_vm1, %v517_v7  ;;  %v591_v29 = vpack.c.bf16 %v588_v28, %v587_v27  ;;  %v583_v33 = vld [vmem:[%s1481_s6] sm:$0xff] }
  0x1b   : > { %v589_v35 = vpack.c.bf16 %v584_v34, %v583_v33  ;;  %v1080_v49 = vld [vmem:[%s1482_s7] ss:$0 sm:$0xff]  ;;  %v1001_v33 = vld [vmem:[%s1481_s6 + $0x58] sm:$0xff] }
  0x1c   : > { %605 = vmatpush.bf16.msra.mxu2 %v591_v29  ;;  %v1081_v29 = vld [vmem:[%s1484_s9] ss:$0 sm:$0xff] }
  0x20   : > { %990 = vmatmul.msk.f32.gmra.mxu0 %vm487_vm0, %v480_v8  ;;  %606 = vmatpush.bf16.msra.mxu2 %v590_v32  ;;  %v1000_v32 = vld [vmem:[%s1481_s6 + $0x50] sm:$0xff] }
  0x21   : > { %v733_v34 = vpack.c.bf16 %v1001_v33, %v1000_v32 }
  0x23   : > { %747 = vmatpush.bf16.msrb.mxu0 %v733_v34  ;;  %v808_v34 = vld [vmem:[#allocation5 + $0x10] sm:$0xff] }
  0x24   : > { %607 = vmatpush.bf16.msra.mxu2 %v589_v35 }
  0x95   : > { %v511_v10 = vpop.f32.mrf.mxu0 }
  0x96   : > { %v1366_v15 = vadd.f32 %v1079_v12, %v511_v10 }
  0x97   : > { %v544_v13 = vpop.f32.mrf.mxu1 }
  0x98   : > { %v545_v14 = vadd.f32 %v544_v13, %v522_v11 }
  0x9a   : > { %v1368_v16 = vperm.slane %v545_v14, 0 }
  0x9c   : > { %v552_v18 = vadd.f32 %v1368_v16, %v1366_v15 }
  0x9d   : > { %v514_v17 = vpop.f32.mrf.mxu0 }
  0x9e   : > { %v1372_v19 = vadd.f32 %v1079_v12, %v514_v17  ;;  %554 = vst.msk [vmem:[#allocation2 + $0x8] sm:$0xff] %vm487_vm0, %v552_v18  ;;  %v665_v18 = vld [vmem:[#allocation5] sm:$0xff] }
  0xa0   : > { %v553_v20 = vadd.f32 %v1368_v16, %v1372_v19 }
  0xa2   : > { %555 = vst.msk [vmem:[#allocation2 + $0x10] sm:$0xff] %vm487_vm0, %v553_v20  ;;  %v666_v20 = vld [vmem:[#allocation5 + $0x8] sm:$0xff] }
  0xa5   : > { %v558_v21 = vld [vmem:[#allocation2 + $0x8] sm:$0xff] }
  0xa6   : > { %v556_v40 = vld [vmem:[#allocation2 + $0x7] sm:$0xff] }
  0xa9   : > { %v559_v22 = vld [vmem:[#allocation2 + $0x10] sm:$0xff] }
  0xaa   : > { %v1059_v23 = vpack.i.bf16 %v559_v22, %v558_v21  ;;  %v560_v24 = vld [vmem:[#allocation2 + $0x9] sm:$0xff]  ;;  %v561_v25 = vld [vmem:[#allocation2 + $0x11] sm:$0xff]  ;;  %v667_v21 = vpack.c.bf16 %v666_v20, %v665_v18 }
  0xab   : > { %v1064_v26 = vpack.i.bf16 %v561_v25, %v560_v24  ;;  %v557_v41 = vld [vmem:[#allocation2 + $0xf] sm:$0xff] }
  0xac   : > { %1060 = vrot.lane.b32.xlu0 %v1059_v23, %s1221_s28  ;;  %682 = vmatpush.bf16.msra.mxu3 %v667_v21 }
  0xb4   : > { %1065 = vrot.lane.b32.xlu0 %v1064_v26, %s1222_s30 }
 0x11e   : > { %v1061_v36 = vpop.permute.xlu0 %1060 }
 0x11f   : > { %v1063_v37 = vunpack.i.h.bf16 %v1061_v36  ;;  %v1062_v38 = vunpack.i.l.bf16 %v1061_v36 }
 0x121   : > { %v578_v44 = vsel %vm487_vm0, %v556_v40, %v1062_v38  ;;  %v579_v45 = vsel %vm487_vm0, %v557_v41, %v1063_v37 }
 0x126   : > { %v1066_v39 = vpop.permute.xlu0 %1065 }
 0x127   : > { %v1068_v42 = vunpack.i.h.bf16 %v1066_v39  ;;  %v1067_v43 = vunpack.i.l.bf16 %v1066_v39 }
 0x129   : > { %v580_v46 = vsel %vm523_vm1, %v578_v44, %v1067_v43  ;;  %v581_v47 = vsel %vm523_vm1, %v579_v45, %v1068_v42 }
 0x12a   : > { %v582_v48 = vpack.c.bf16 %v581_v47, %v580_v46  ;;  %v998_v46 = vld [vmem:[%s1481_s6 + $0x40] sm:$0xff]  ;;  %v996_v47 = vld [vmem:[%s1481_s6 + $0x30] sm:$0xff] }
 0x12c   : > { %992 = vmatmul.msk.bf16.vlgmr.msra.gmra.mxu2 %vm596_vm2, %v582_v48  ;;  %v997_v48 = vld [vmem:[%s1481_s6 + $0x38] sm:$0xff] }
 0x1af   : > { %v609_v50 = vpop.f32.mrf.mxu2 }
 0x1b0   : > { %v610_v51 = vadd.f32 %v1080_v49, %v609_v50 }
 0x1b2   : > { %v993_v52 = vmul.f32 -1.442695, %v610_v51 }
 0x1b4   : > { %1085 = vpow2.f32 %v993_v52 }
 0x1b7   : > { %v611_v53 = vpop.f32.mrf.mxu2 }
 0x1b8   : > { %v612_v54 = vadd.f32 %v1080_v49, %v611_v53  ;;  %v731_v49 = vpack.c.bf16 %v997_v48, %v996_v47 }
 0x1ba   : > { %v1086_v55 = vpop.eup %1085  ;;  %v994_v56 = vmul.f32 -1.442695, %v612_v54 }
 0x1bb   : > { %v622_v57 = vadd.f32 1.0, %v1086_v55 }
 0x1bc   : > { %1087 = vpow2.f32 %v994_v56 }
 0x1bd   : > { %1089 = vrcp.f32 %v622_v57  ;;  %v635_v63 = vand.u32 2147483648, %v622_v57  ;;  %v633_v1 = vand.u32 2147483647, %v622_v57  ;;  %vm629_vm4 = vweird.f32 %v622_v57 }
 0x1bf   : > { %v636_v4 = vor.u32 1.1754944e-38, %v635_v63  ;;  %vm634_vm6 = vcmp.eq.f32.partialorder %v633_v1, 8.507059e+37  ;;  %v1082_v63 = vld [vmem:[%s1482_s7 + $0x1] ss:$0 sm:$0xff] }
 0x1c2   : > { %v1088_v58 = vpop.eup %1087 }
 0x1c3   : > { %v1090_v59 = vpop.eup %1089  ;;  %v623_v60 = vadd.f32 1.0, %v1088_v58 }
 0x1c4   : > { %v625_v61 = vmul.f32 %v1090_v59, %v622_v57  ;;  %vm630_vm3 = vweird.f32 %v1090_v59 }
 0x1c5   : > { %1091 = vrcp.f32 %v623_v60  ;;  %vm631_vm5 = vmor %vm629_vm4, %vm630_vm3  ;;  %v650_v9 = vand.u32 2147483648, %v623_v60  ;;  %v648_v11 = vand.u32 2147483647, %v623_v60  ;;  %vm644_vm8 = vweird.f32 %v623_v60 }
 0x1c6   : > { %v626_v62 = vsub.f32 1.0, %v625_v61  ;;  %1093 = vtanh.f32 %v610_v51  ;;  %vm876_vm4 = vcmask 31744  }
 0x1c7   : > { %v651_v13 = vor.u32 1.1754944e-38, %v650_v9  ;;  %vm649_vm10 = vcmp.eq.f32.partialorder %v648_v11, 8.507059e+37  ;;  %1095 = vtanh.f32 %v612_v54 }
 0x1c8   : > { %v627_v0 = vmul.f32 %v1090_v59, %v626_v62 }
 0x1ca   : > { %v628_v2 = vadd.f32 %v1090_v59, %v627_v0 }
 0x1cb   : > { %v1092_v3 = vpop.eup %1091 }
 0x1cc   : > { %v632_v5 = vsel %vm631_vm5, %v1090_v59, %v628_v2  ;;  %v640_v6 = vmul.f32 %v1092_v3, %v623_v60  ;;  %vm645_vm7 = vweird.f32 %v1092_v3  ;;  %v1094_v23 = vpop.eup %1093 }
 0x1cd   : > { %v637_v7 = vsel %vm634_vm6, %v636_v4, %v632_v5  ;;  %vm646_vm9 = vmor %vm644_vm8, %vm645_vm7  ;;  %v1096_v24 = vpop.eup %1095 }
 0x1ce   : > { %656 = vrot.lane.b32.xlu1 %v637_v7, %s1223_s14  ;;  %v641_v8 = vsub.f32 1.0, %v640_v6 }
 0x1d0   : > { %v642_v10 = vmul.f32 %v1092_v3, %v641_v8 }
 0x1d2   : > { %v643_v12 = vadd.f32 %v1092_v3, %v642_v10 }
 0x1d4   : > { %v647_v14 = vsel %vm646_vm9, %v1092_v3, %v643_v12 }
 0x1d5   : > { %v652_v17 = vsel %vm649_vm10, %v651_v13, %v647_v14 }
 0x1d6   : > { %658 = vrot.lane.b32.xlu1 %v652_v17, %s1223_s14 }
 0x240   : > { %v657_v22 = vpop.permute.xlu1 %656 }
 0x241   : > { %v662_v26 = vmul.f32 %v1094_v23, %v657_v22 }
 0x248   : > { %v659_v25 = vpop.permute.xlu1 %658 }
 0x249   : > { %v663_v27 = vmul.f32 %v1096_v24, %v659_v25 }
 0x24b   : > { %v664_v28 = vpack.c.bf16 %v663_v27, %v662_v26 }
 0x24d   : > { %995 = vmatmul.msk.bf16.vlgmr.msra.gmra.mxu3 %vm487_vm0, %v664_v28 }
 0x2d0   : > { %v684_v30 = vpop.f32.mrf.mxu3 }
 0x2d1   : > { %v1412_v31 = vadd.f32 %v1081_v29, %v684_v30 }
 0x2d3   : > { %v689_v35 = vadd.f32 %v1412_v31, %v1366_v15 }
 0x2d5   : > { %v693_v36 = vadd.f32 %v689_v35, %v1368_v16  ;;  %v809_v35 = vld [vmem:[#allocation5 + $0x18] sm:$0xff] }
 0x2d7   : > { %695 = vst.msk [vmem:[#allocation2 + $0x8] sm:$0xff] %vm487_vm0, %v693_v36  ;;  %v810_v36 = vpack.c.bf16 %v809_v35, %v808_v34 }
 0x2d8   : > { %v686_v37 = vpop.f32.mrf.mxu3 }
 0x2d9   : > { %v1424_v38 = vadd.f32 %v1081_v29, %v686_v37  ;;  %826 = vmatpush.bf16.msrb.mxu1 %v810_v36 }
 0x2db   : > { %v690_v39 = vadd.f32 %v1424_v38, %v1372_v19 }
 0x2dd   : > { %v694_v40 = vadd.f32 %v690_v39, %v1368_v16  ;;  %v999_v16 = vld [vmem:[%s1481_s6 + $0x48] sm:$0xff] }
 0x2de   : > { %v699_v41 = vld [vmem:[#allocation2 + $0x8] sm:$0xff]  ;;  %v732_v19 = vpack.c.bf16 %v999_v16, %v998_v46  ;;  %v1083_v46 = vld [vmem:[%s1484_s9 + $0x1] ss:$0 sm:$0xff] }
 0x2df   : > { %696 = vst.msk [vmem:[#allocation2 + $0x10] sm:$0xff] %vm487_vm0, %v694_v40  ;;  %v697_v54 = vld [vmem:[#allocation2 + $0x6] sm:$0xff] }
 0x2e0   : > { %748 = vmatpush.bf16.msrb.mxu0 %v732_v19 }
 0x2e4   : > { %749 = vmatpush.bf16.msrb.mxu0 %v731_v49 }
 0x2e6   : > { %v700_v42 = vld [vmem:[#allocation2 + $0x10] sm:$0xff] }
 0x2e7   : > { %v1069_v43 = vpack.i.bf16 %v700_v42, %v699_v41  ;;  %v701_v15 = vld [vmem:[#allocation2 + $0xa] sm:$0xff]  ;;  %v702_v44 = vld [vmem:[#allocation2 + $0x12] sm:$0xff] }
 0x2e8   : > { %v1074_v45 = vpack.i.bf16 %v702_v44, %v701_v15  ;;  %v698_v55 = vld [vmem:[#allocation2 + $0xe] sm:$0xff]  ;;  %v838_v44 = vld [vmem:[#allocation7 + $0x8] sm:$0xff] }
 0x2e9   : > { %1070 = vrot.lane.b32.xlu2 %v1069_v43, %s1221_s28  ;;  %867 = vmatpush.msrb.mxu3 %v838_v44 }
 0x2f1   : > { %1075 = vrot.lane.b32.xlu2 %v1074_v45, %s1222_s30  ;;  %v837_v45 = vld [vmem:[#allocation7] sm:$0xff] }
 0x2f2   : > { %868 = vmatpush.msrb.mxu3 %v837_v45 }
 0x343   : > { %v1071_v50 = vpop.permute.xlu2 %1070 }
 0x344   : > { %v1073_v51 = vunpack.i.h.bf16 %v1071_v50  ;;  %v1072_v52 = vunpack.i.l.bf16 %v1071_v50 }
 0x346   : > { %v719_v58 = vsel %vm487_vm0, %v697_v54, %v1072_v52  ;;  %v720_v59 = vsel %vm487_vm0, %v698_v55, %v1073_v51 }
 0x34b   : > { %v1076_v53 = vpop.permute.xlu2 %1075 }
 0x34c   : > { %v1078_v56 = vunpack.i.h.bf16 %v1076_v53  ;;  %v1077_v57 = vunpack.i.l.bf16 %v1076_v53 }
 0x34e   : > { %v721_v60 = vsel %vm523_vm1, %v719_v58, %v1077_v57  ;;  %v722_v61 = vsel %vm523_vm1, %v720_v59, %v1078_v56 }
 0x34f   : > { %v723_v62 = vpack.c.bf16 %v722_v61, %v721_v60 }
 0x351   : > { %1003 = vmatmul.msk.bf16.vlgmr.msrb.gmra.mxu0 %vm596_vm2, %v723_v62 }
 0x3ce   : > { %v751_v0 = vpop.f32.mrf.mxu0 }
 0x3cf   : > { %v752_v1 = vadd.f32 %v1082_v63, %v751_v0 }
 0x3d1   : > { %v1004_v2 = vmul.f32 -1.442695, %v752_v1 }
 0x3d3   : > { %1097 = vpow2.f32 %v1004_v2 }
 0x3d6   : > { %v753_v3 = vpop.f32.mrf.mxu0 }
 0x3d7   : > { %v754_v4 = vadd.f32 %v1082_v63, %v753_v3 }
 0x3d9   : > { %v1098_v5 = vpop.eup %1097  ;;  %v1005_v6 = vmul.f32 -1.442695, %v754_v4 }
 0x3da   : > { %v764_v7 = vadd.f32 1.0, %v1098_v5 }
 0x3db   : > { %1099 = vpow2.f32 %v1005_v6 }
 0x3dc   : > { %1101 = vrcp.f32 %v764_v7  ;;  %v777_v13 = vand.u32 2147483648, %v764_v7  ;;  %v775_v17 = vand.u32 2147483647, %v764_v7  ;;  %vm771_vm12 = vweird.f32 %v764_v7 }
 0x3de   : > { %v778_v21 = vor.u32 1.1754944e-38, %v777_v13  ;;  %vm776_vm14 = vcmp.eq.f32.partialorder %v775_v17, 8.507059e+37 }
 0x3e1   : > { %v1100_v8 = vpop.eup %1099 }
 0x3e2   : > { %v1102_v9 = vpop.eup %1101  ;;  %v765_v10 = vadd.f32 1.0, %v1100_v8 }
 0x3e3   : > { %v767_v11 = vmul.f32 %v1102_v9, %v764_v7  ;;  %vm772_vm11 = vweird.f32 %v1102_v9 }
 0x3e4   : > { %1103 = vrcp.f32 %v765_v10  ;;  %vm773_vm13 = vmor %vm771_vm12, %vm772_vm11  ;;  %v792_v26 = vand.u32 2147483648, %v765_v10  ;;  %v790_v28 = vand.u32 2147483647, %v765_v10  ;;  %vm786_vm1 = vweird.f32 %v765_v10 }
 0x3e5   : > { %v768_v12 = vsub.f32 1.0, %v767_v11  ;;  %1105 = vtanh.f32 %v752_v1 }
 0x3e6   : > { %v793_v30 = vor.u32 1.1754944e-38, %v792_v26  ;;  %vm791_vm3 = vcmp.eq.f32.partialorder %v790_v28, 8.507059e+37  ;;  %1107 = vtanh.f32 %v754_v4 }
 0x3e7   : > { %v769_v14 = vmul.f32 %v1102_v9, %v768_v12 }
 0x3e9   : > { %v770_v18 = vadd.f32 %v1102_v9, %v769_v14 }
 0x3ea   : > { %v1104_v20 = vpop.eup %1103 }
 0x3eb   : > { %v774_v22 = vsel %vm773_vm13, %v1102_v9, %v770_v18  ;;  %v782_v23 = vmul.f32 %v1104_v20, %v765_v10  ;;  %vm787_vm15 = vweird.f32 %v1104_v20  ;;  %v1106_v39 = vpop.eup %1105 }
 0x3ec   : > { %v779_v24 = vsel %vm776_vm14, %v778_v21, %v774_v22  ;;  %vm788_vm2 = vmor %vm786_vm1, %vm787_vm15  ;;  %v1108_v40 = vpop.eup %1107 }
 0x3ed   : > { %798 = vrot.lane.b32.xlu0 %v779_v24, %s1223_s14  ;;  %v783_v25 = vsub.f32 1.0, %v782_v23 }
 0x3ef   : > { %v784_v27 = vmul.f32 %v1104_v20, %v783_v25 }
 0x3f1   : > { %v785_v29 = vadd.f32 %v1104_v20, %v784_v27 }
 0x3f3   : > { %v789_v32 = vsel %vm788_vm2, %v1104_v20, %v785_v29 }
 0x3f4   : > { %v794_v33 = vsel %vm791_vm3, %v793_v30, %v789_v32 }
 0x3f5   : > { %800 = vrot.lane.b32.xlu1 %v794_v33, %s1223_s14 }
 0x45f   : > { %v799_v37 = vpop.permute.xlu0 %798 }
 0x460   : > { %v804_v42 = vmul.f32 %v1106_v39, %v799_v37 }
 0x467   : > { %v801_v41 = vpop.permute.xlu1 %800 }
 0x468   : > { %v805_v43 = vmul.f32 %v1108_v40, %v801_v41 }
 0x46a   : > { %v806_v15 = vpack.c.bf16 %v805_v43, %v804_v42 }
 0x46c   : > { %1007 = vmatmul.msk.bf16.vlgmr.msrb.gmra.mxu1 %vm487_vm0, %v806_v15 }
 0x4e9   : > { %v828_v16 = vpop.f32.mrf.mxu1 }
 0x4ea   : > { %v829_v19 = vadd.f32 %v1083_v46, %v828_v16 }
 0x4ec   : > { %v833_v47 = vadd.f32 %v829_v19, %v1412_v31  ;;  %v1084_v31 = vld [vmem:[%s1486_s11] ss:$0 sm:$0xff] }
 0x4ee   : > { %v835_v48 = vmax.f32 %v833_v47, 0.0 }
 0x4f0   : > { %845 = vrot.lane.b32.xlu2 %v835_v48, %s1223_s14 }
 0x4f1   : > { %v830_v49 = vpop.f32.mrf.mxu1 }
 0x4f2   : > { %v831_v50 = vadd.f32 %v1083_v46, %v830_v49 }
 0x4f4   : > { %v834_v51 = vadd.f32 %v831_v50, %v1424_v38 }
 0x4f6   : > { %v836_v52 = vmax.f32 %v834_v51, 0.0 }
 0x4f8   : > { %847 = vrot.lane.b32.xlu0 %v836_v52, %s1223_s14 }
 0x54a   : > { %v846_v53 = vpop.permute.xlu2 %845 }
 0x54b   : > { %1008 = vmatmul.msk.f32.vlgmr.msrb.gmra.mxu3 %vm487_vm0, %v846_v53 }
 0x56a   : > { %v848_v54 = vpop.permute.xlu0 %847 }
 0x56b   : > { %1009 = vmatmul.msk.f32.gmra.mxu3 %vm487_vm0, %v848_v54 }
 0x5ce   : > { %v870_v55 = vpop.f32.mrf.mxu3 }
 0x5cf   : > { %v871_v38 = vadd.f32 %v1084_v31, %v870_v55 }
 0x5d1   : > { %877 = vst.msk [vmem:[%s477_s26] sm:$0xff] %vm876_vm4, %v871_v38 }
 0x5ee   : > { %v873_v56 = vpop.f32.mrf.mxu3 }
 0x5ef   : > { %v874_v57 = vadd.f32 %v1084_v31, %v873_v56 }
 0x5f1   : > { %878 = vst.msk [vmem:[%s477_s26 + $0x8] sm:$0xff] %vm876_vm4, %v874_v57 }
 0x5f2 PF: > { %s24_s21 = sadd.s32 1, %s1213_s21  }
 0x5f3   : > { %p21_p7 = scmp.ge.s32.totalorder %s24_s21, 4  }
 0x5f5   :  { %23 = sbr.rel (!%p21_p7) target bundleno = 2 (0x2), region = 118 }
 0x5fa   :  { %900 = vsyncpa [#allocation4], 1 }
 0x5fb   :  { %902 = vsyncpa [#allocation4 + $0x1], 1 }
 0x5fc   :  { %903 = vsyncpa [#allocation6], 1 }

</bundles_post_ra>
